<compile_context>
chip_gen: v7x
topology: tpu7x:2x2x1
jax: 0.10.0
libtpu: 0.0.40
codegen_flags: <defaults>
</compile_context>

<pallas_src>
import jax
import jax.numpy as jnp
from jax.experimental import pallas as pl
from jax.experimental.pallas import tpu as pltpu

K_CELL_SIZE = 0.014408772790049425 * 3.0
T_PARAM = 0.5
# NOTE: 2 * 3.14 (not pi) deliberately matches the PyTorch source; do NOT
# "fix" this to jnp.pi.
K_FREQ = 2.0 * 3.14 / K_CELL_SIZE
HIDDEN = 32
TN_CAP = 65536  # max points per grid step (lane axis); ~2 MiB/step double-buffered


def gyroid_sdf_kernel(x_ref, w1_ref, w2_ref, p_ref, o_ref):
    # x_ref: (3, tn) -- points live on the lane axis (lane-dense).
    x = x_ref[...]

    # Gyroid implicit equation, computed on the full (3, tn) tile so the EUP
    # sees one dense cos stream + one dense sin stream instead of six
    # 1-sublane slabs.
    kx = K_FREQ * x          # (3, tn) -- single VPU multiply
    c = jnp.cos(kx)          # (3, tn)
    s = jnp.sin(kx)          # (3, tn)
    gyroid = (
        c[0:1, :] * s[1:2, :]
        + c[1:2, :] * s[2:3, :]
        + c[2:3, :] * s[0:1, :]
        - T_PARAM ** 2
    )  # (1, tn)

    # Packed small params: columns [b1 | b2 | w3 | b3-in-row-0], shape (HIDDEN, 4).
    b1 = p_ref[:, 0:1]    # (HIDDEN, 1), broadcasts over lanes
    b2 = p_ref[:, 1:2]    # (HIDDEN, 1)
    w3 = p_ref[:, 2:3]    # (HIDDEN, 1)
    b3 = p_ref[0:1, 3:4]  # (1, 1)

    # sdf_net: 3 -> 32 -> 32 -> 1 MLP with ReLU, computed as W^T @ x so the
    # points (tn) axis stays lane-wide on the MXU output. Kept in f32.
    h = jnp.dot(w1_ref[...], x, preferred_element_type=jnp.float32) + b1   # (H, tn)
    h = jnp.maximum(h, 0.0)
    h = jnp.dot(w2_ref[...], h, preferred_element_type=jnp.float32) + b2   # (H, tn)
    h = jnp.maximum(h, 0.0)
    # Final 32 -> 1 layer: tiny K-reduction, keep it off the MXU
    # (VPU multiply + XLU sublane reduce); result stays (1, tn) lane-dense.
    sdf = jnp.sum(h * w3, axis=0, keepdims=True) + b3                      # (1, tn)

    # max(gyroid, sdf) -- lane-dense, unmasked store.
    o_ref[...] = jnp.maximum(gyroid, sdf)


def _round_up(v, m):
    return ((v + m - 1) // m) * m


def gyroid_lattice(x, params, *, tn_cap=TN_CAP, points_last=False):
    """Evaluate the gyroid lattice SDF.

    x: (N, 3) float32 by default, or (3, N) float32 if points_last=True
       (skips the wrapper-side HBM transpose pass entirely).
    Returns (N, 1) float32.
    """
    w1, b1, w2, b2, w3, b3 = params
    n = x.shape[1] if points_last else x.shape[0]

    # Adaptive tile size: as large as possible (amortizes the ~600-cycle
    # per-step overhead) but capped so the grid keeps >= 2 steps -- the
    # "parallel" axis can then shard across both v7x TensorCores. Lane axis
    # must stay a multiple of 128.
    tn = max(128, min(tn_cap, _round_up(pl.cdiv(n, 2), 128)))
    n_pad = pl.cdiv(n, tn) * tn

    if points_last:
        xt = x
        if n_pad != n:
            xt = jnp.pad(xt, ((0, 0), (0, n_pad - n)))
    else:
        # Pad-then-transpose in one expression so XLA fuses the pad into the
        # single transpose copy (one HBM round trip instead of two).
        xp = jnp.pad(x, ((0, n_pad - n), (0, 0))) if n_pad != n else x
        xt = jnp.transpose(xp)  # (3, n_pad)

    w1t = jnp.transpose(w1)  # (HIDDEN, 3)
    w2t = jnp.transpose(w2)  # (HIDDEN, HIDDEN)
    b3_col = jnp.zeros((HIDDEN, 1), jnp.float32).at[0, 0].set(b3[0, 0])
    packed = jnp.concatenate(
        [jnp.transpose(b1), jnp.transpose(b2), w3, b3_col], axis=1
    )  # (HIDDEN, 4): [b1 | b2 | w3 | b3]

    grid = (n_pad // tn,)
    resident = lambda i: (0, 0)  # weights stay resident across grid steps

    out = pl.pallas_call(
        gyroid_sdf_kernel,
        out_shape=jax.ShapeDtypeStruct((1, n_pad), jnp.float32),
        grid_spec=pltpu.PrefetchScalarGridSpec(
            num_scalar_prefetch=0,
            grid=grid,
            in_specs=[
                pl.BlockSpec((3, tn), lambda i: (0, i)),    # x tile (lane-dense)
                pl.BlockSpec((HIDDEN, 3), resident),        # W1^T
                pl.BlockSpec((HIDDEN, HIDDEN), resident),   # W2^T
                pl.BlockSpec((HIDDEN, 4), resident),        # packed biases + w3
            ],
            out_specs=pl.BlockSpec((1, tn), lambda i: (0, i)),  # lane-dense out
        ),
        compiler_params=pltpu.CompilerParams(
            # Single parallel grid axis: shards across both TensorCores on v7x
            # (grid >= 2 guaranteed for large N), no-op on v5e/v6e.
            dimension_semantics=("parallel",),
        ),
    )(xt, w1t, w2t, packed)

    return out[0, :n].reshape(n, 1)


def init_params(key):
    k1, k2, k3 = jax.random.split(key, 3)
    w1 = jax.random.normal(k1, (3, HIDDEN), jnp.float32) * 0.5
    b1 = jnp.zeros((1, HIDDEN), jnp.float32)
    w2 = jax.random.normal(k2, (HIDDEN, HIDDEN), jnp.float32) * (1.0 / jnp.sqrt(HIDDEN))
    b2 = jnp.zeros((1, HIDDEN), jnp.float32)
    w3 = jax.random.normal(k3, (HIDDEN, 1), jnp.float32) * (1.0 / jnp.sqrt(HIDDEN))
    b3 = jnp.zeros((1, 1), jnp.float32)
    return (w1, b1, w2, b2, w3, b3)


def reference(x, params):
    """Pure-JAX reference matching the PyTorch forward semantics."""
    w1, b1, w2, b2, w3, b3 = params
    gyroid = (
        jnp.cos(K_FREQ * x[:, 0]) * jnp.sin(K_FREQ * x[:, 1])
        + jnp.cos(K_FREQ * x[:, 1]) * jnp.sin(K_FREQ * x[:, 2])
        + jnp.cos(K_FREQ * x[:, 2]) * jnp.sin(K_FREQ * x[:, 0])
        - T_PARAM ** 2
    ).reshape(-1, 1)
    h = jnp.maximum(x @ w1 + b1, 0.0)
    h = jnp.maximum(h @ w2 + b2, 0.0)
    sdf = h @ w3 + b3
    return jnp.maximum(gyroid, sdf)


if __name__ == "__main__":
    key = jax.random.PRNGKey(0)
    kx, kp = jax.random.split(key)

    # Non-multiple of the tile size on purpose: exercises the padded-tail path
    # and (at 4000 points, tn=2048) the 2-step grid.
    N = 4000
    x = jax.random.uniform(kx, (N, 3), jnp.float32, minval=-1.0, maxval=1.0)
    params = init_params(kp)
    ref = reference(x, params)

    # Default (N, 3) layout.
    out = jax.block_until_ready(gyroid_lattice(x, params))
    assert out.shape == (N, 1)
    assert jnp.allclose(out, ref, atol=2e-4, rtol=2e-4), "mismatch vs reference"

    # Transpose-free fast path: caller already holds (3, N).
    out_t = jax.block_until_ready(
        gyroid_lattice(jnp.transpose(x), params, points_last=True)
    )
    assert jnp.allclose(out_t, ref, atol=2e-4, rtol=2e-4), "mismatch (points_last)"

    print("KERNEL_OK")
</pallas_src>

<mosaic_0001>
module attributes {stable_mosaic.version = 11 : i64} {
  func.func @gyroid_sdf_kernel(%arg0: i32, %arg1: memref<3x2048xf32, #tpu.memory_space<vmem>>, %arg2: memref<32x3xf32, #tpu.memory_space<vmem>>, %arg3: memref<32x32xf32, #tpu.memory_space<vmem>>, %arg4: memref<32x4xf32, #tpu.memory_space<vmem>>, %arg5: memref<1x2048xf32, #tpu.memory_space<vmem>>) attributes {dimension_semantics = [#tpu.dimension_semantics<parallel>], iteration_bounds = array<i64: 2>, scalar_prefetch = 0 : i64, scratch_operands = 0 : i64, tpu.core_type = #tpu.core_type<tc>, window_params = [{transform_indices = @transform_0, window_bounds = array<i64: 3, 2048>}, {pipeline_mode = #tpu.pipeline_mode<synchronous>, transform_indices = @transform_1, window_bounds = array<i64: 32, 3>}, {pipeline_mode = #tpu.pipeline_mode<synchronous>, transform_indices = @transform_2, window_bounds = array<i64: 32, 32>}, {pipeline_mode = #tpu.pipeline_mode<synchronous>, transform_indices = @transform_3, window_bounds = array<i64: 32, 4>}, {transform_indices = @transform_4, window_bounds = array<i64: 1, 2048>}]} {
    %c0 = arith.constant 0 : index
    %c0_0 = arith.constant 0 : index
    %0 = vector.load %arg1[%c0, %c0_0] : memref<3x2048xf32, #tpu.memory_space<vmem>>, vector<3x2048xf32>
    %cst = arith.constant 145.28186 : f32
    %1 = vector.broadcast %cst : f32 to vector<3x2048xf32>
    %2 = arith.mulf %1, %0 : vector<3x2048xf32>
    %3 = math.cos %2 : vector<3x2048xf32>
    %4 = math.sin %2 : vector<3x2048xf32>
    %5 = vector.extract_strided_slice %3 {offsets = [0, 0], sizes = [1, 2048], strides = [1, 1]} : vector<3x2048xf32> to vector<1x2048xf32>
    %6 = vector.extract_strided_slice %4 {offsets = [1, 0], sizes = [1, 2048], strides = [1, 1]} : vector<3x2048xf32> to vector<1x2048xf32>
    %7 = arith.mulf %5, %6 : vector<1x2048xf32>
    %8 = vector.extract_strided_slice %3 {offsets = [1, 0], sizes = [1, 2048], strides = [1, 1]} : vector<3x2048xf32> to vector<1x2048xf32>
    %9 = vector.extract_strided_slice %4 {offsets = [2, 0], sizes = [1, 2048], strides = [1, 1]} : vector<3x2048xf32> to vector<1x2048xf32>
    %10 = arith.mulf %8, %9 : vector<1x2048xf32>
    %11 = arith.addf %7, %10 : vector<1x2048xf32>
    %12 = vector.extract_strided_slice %3 {offsets = [2, 0], sizes = [1, 2048], strides = [1, 1]} : vector<3x2048xf32> to vector<1x2048xf32>
    %13 = vector.extract_strided_slice %4 {offsets = [0, 0], sizes = [1, 2048], strides = [1, 1]} : vector<3x2048xf32> to vector<1x2048xf32>
    %14 = arith.mulf %12, %13 : vector<1x2048xf32>
    %15 = arith.addf %11, %14 : vector<1x2048xf32>
    %cst_1 = arith.constant 2.500000e-01 : f32
    %16 = vector.broadcast %cst_1 : f32 to vector<1x2048xf32>
    %17 = arith.subf %15, %16 : vector<1x2048xf32>
    %c0_2 = arith.constant 0 : index
    %c0_3 = arith.constant 0 : index
    %18 = vector.load %arg4[%c0_2, %c0_3] : memref<32x4xf32, #tpu.memory_space<vmem>>, vector<32x1xf32>
    %c0_4 = arith.constant 0 : index
    %c1 = arith.constant 1 : index
    %19 = vector.load %arg4[%c0_4, %c1] : memref<32x4xf32, #tpu.memory_space<vmem>>, vector<32x1xf32>
    %c0_5 = arith.constant 0 : index
    %c2 = arith.constant 2 : index
    %20 = vector.load %arg4[%c0_5, %c2] : memref<32x4xf32, #tpu.memory_space<vmem>>, vector<32x1xf32>
    %c0_6 = arith.constant 0 : index
    %c3 = arith.constant 3 : index
    %21 = vector.load %arg4[%c0_6, %c3] : memref<32x4xf32, #tpu.memory_space<vmem>>, vector<1x1xf32>
    %c0_7 = arith.constant 0 : index
    %c0_8 = arith.constant 0 : index
    %22 = vector.load %arg2[%c0_7, %c0_8] : memref<32x3xf32, #tpu.memory_space<vmem>>, vector<32x3xf32>
    %cst_9 = arith.constant dense<0.000000e+00> : vector<32x2048xf32>
    %23 = tpu.matmul %22, %0, %cst_9 {dimension_numbers = #tpu.dot_dimension_numbers<[1], [0], [0], [1], [0, 0, 1, 1], [], []>} : vector<32x3xf32>, vector<3x2048xf32>, vector<32x2048xf32> -> vector<32x2048xf32>
    %24 = vector.broadcast %18 : vector<32x1xf32> to vector<32x2048xf32>
    %25 = arith.addf %23, %24 : vector<32x2048xf32>
    %cst_10 = arith.constant 0.000000e+00 : f32
    %26 = vector.broadcast %cst_10 : f32 to vector<32x2048xf32>
    %27 = arith.maximumf %25, %26 : vector<32x2048xf32>
    %c0_11 = arith.constant 0 : index
    %c0_12 = arith.constant 0 : index
    %28 = vector.load %arg3[%c0_11, %c0_12] : memref<32x32xf32, #tpu.memory_space<vmem>>, vector<32x32xf32>
    %cst_13 = arith.constant dense<0.000000e+00> : vector<32x2048xf32>
    %29 = tpu.matmul %28, %27, %cst_13 {dimension_numbers = #tpu.dot_dimension_numbers<[1], [0], [0], [1], [0, 0, 1, 1], [], []>} : vector<32x32xf32>, vector<32x2048xf32>, vector<32x2048xf32> -> vector<32x2048xf32>
    %30 = vector.broadcast %19 : vector<32x1xf32> to vector<32x2048xf32>
    %31 = arith.addf %29, %30 : vector<32x2048xf32>
    %cst_14 = arith.constant 0.000000e+00 : f32
    %32 = vector.broadcast %cst_14 : f32 to vector<32x2048xf32>
    %33 = arith.maximumf %31, %32 : vector<32x2048xf32>
    %34 = vector.broadcast %20 : vector<32x1xf32> to vector<32x2048xf32>
    %35 = arith.mulf %33, %34 : vector<32x2048xf32>
    %cst_15 = arith.constant dense<0.000000e+00> : vector<2048xf32>
    %36 = vector.multi_reduction <add>, %35, %cst_15 [0] : vector<32x2048xf32> to vector<2048xf32>
    %37 = vector.shape_cast %36 : vector<2048xf32> to vector<1x2048xf32>
    %38 = vector.broadcast %21 : vector<1x1xf32> to vector<1x2048xf32>
    %39 = arith.addf %37, %38 : vector<1x2048xf32>
    %40 = arith.maximumf %17, %39 : vector<1x2048xf32>
    %c0_16 = arith.constant 0 : index
    %c0_17 = arith.constant 0 : index
    %41 = vector.load %arg5[%c0_16, %c0_17] : memref<1x2048xf32, #tpu.memory_space<vmem>>, vector<1x2048xf32>
    tpu.vector_store %arg5[%c0_16, %c0_17], %40 {strides = array<i32>} : memref<1x2048xf32, #tpu.memory_space<vmem>>, vector<1x2048xf32>,
    return
  }
  func.func @transform_0(%arg0: i32) -> (i32, i32) {
    %c0_i32 = arith.constant 0 : i32
    %c0_i32_0 = arith.constant 0 : i32
    return %c0_i32, %arg0 : i32, i32
  }
  func.func @transform_1(%arg0: i32) -> (i32, i32) {
    %c0_i32 = arith.constant 0 : i32
    %c0_i32_0 = arith.constant 0 : i32
    %c0_i32_1 = arith.constant 0 : i32
    return %c0_i32, %c0_i32_0 : i32, i32
  }
  func.func @transform_2(%arg0: i32) -> (i32, i32) {
    %c0_i32 = arith.constant 0 : i32
    %c0_i32_0 = arith.constant 0 : i32
    %c0_i32_1 = arith.constant 0 : i32
    return %c0_i32, %c0_i32_0 : i32, i32
  }
  func.func @transform_3(%arg0: i32) -> (i32, i32) {
    %c0_i32 = arith.constant 0 : i32
    %c0_i32_0 = arith.constant 0 : i32
    %c0_i32_1 = arith.constant 0 : i32
    return %c0_i32, %c0_i32_0 : i32, i32
  }
  func.func @transform_4(%arg0: i32) -> (i32, i32) {
    %c0_i32 = arith.constant 0 : i32
    %c0_i32_0 = arith.constant 0 : i32
    return %c0_i32, %arg0 : i32, i32
  }
}

</mosaic_0001>

<bundles_post_ra>
// kernel: tpu_custom_call.1
= control target key start
LH: loop header
LB: loop body
LE: loop exit
PB: predicated region body
PF: predicated region fallthrough
CT: control target
= control target key end

     0   :  { %9 = vsyncpa [#allocation3], 0  ;;  %s6741_s0 = inlined_call_operand.hbm [shape: f32[3,4096], index: 0, kind: input, shape index: {}]   ;;  %s6742_s1 = inlined_call_operand.vmem [shape: f32[32,3], index: 1, kind: input, shape index: {}]   ;;  %s6743_s2 = inlined_call_operand.vmem [shape: f32[32,32], index: 2, kind: input, shape index: {}]   ;;  %s6744_s3 = inlined_call_operand.vmem [shape: f32[32,4], index: 3, kind: input, shape index: {}]   ;;  %s6745_s4 = inlined_call_operand.hbm [shape: f32[1,4096], index: 4, kind: output, shape index: {}]  }
   0x1   :  { %11 = vsyncpa [#allocation3 + $0x1], 0 }
   0x2   :  { %12 = vsyncpa [#allocation4], 0 }
   0x3   :  { %14 = vsyncpa [#allocation4 + $0x1], 0  ;;  %s4721_s15 = smov 0   ;;  %s4723_s16 = smov 0  }
   0x4   :  { %s4725_s17 = smov 0   ;;  %s4727_s18 = smov 0  }
   0x5 LB: > { %s4742_s19 = sadd.s32 4294967295, %s4680_s18   ;;  %s4188_s20 = sadd.s32 4294967294, %s4680_s18   ;;  %s4680_s18 = sphi %s4727_s18, %s6934_s18   ;;  %s4676_s17 = sphi %s4725_s17, %s6933_s17   ;;  %s4672_s16 = sphi %s4723_s16, %s6932_s16   ;;  %s4668_s15 = sphi %s4721_s15, %s6931_s15  }
   0x6   : > { %s4746_s21 = sadd.s32 1, %s4680_s18   ;;  %s27_s22 = sadd.s32 1, %s4676_s17 }
   0x7   : > { %s24_s23 = ssub.s32 %s4680_s18, %s4746_s21  ;;  %p34_p0 = scmp.ne.s32.totalorder %s4676_s17, %s4672_s16 }
   0x8   : > { %p25_p1 = scmp.eq.s32.totalorder %s24_s23, 0  ;;  %p35_p2 = scmp.eq.s32.totalorder %s4680_s18, 0 }
   0x9   : > { %p40_p3 = scmp.ne.s32.totalorder %s4672_s16, %s4668_s15  ;;  %p41_p4 = scmp.eq.s32.totalorder %s4742_s19, 0 }
   0xa   : > { %s4758_s24 = scalar_select %p25_p1, %s4676_s17, %s27_s22  }
   0xb   : > { %p4760_p5 = por %p35_p2, %p34_p0  ;;  %p4764_p6 = por %p41_p4, %p40_p3 }
   0xc   : > { %p127_p7 = scmp.eq.s32.totalorder %s4742_s19, 1  ;;  %p133_p8 = scmp.eq.s32.totalorder %s4188_s20, 1 }
   0xd   : > { %p4488_p10 = scmp.lt.s32.totalorder %s4680_s18, 2  ;;  %s162_s29 = sand.u32 1, %s4676_s17  }
   0xe   : > { %p4771_p11 = por %p127_p7, %p34_p0  ;;  %p4775_p12 = por %p133_p8, %p40_p3 }
   0xf   : > { %s4378_s30 = sshll.u32 %s4680_s18, 10  ;;  %s4191_s5 = sshll.u32 %s162_s29, 6 }
  0x10   : > { %s6799_s27 = scalar_select %p4771_p11, 1, 0 }
  0x11   : > { %s6800_s28 = scalar_select %p4775_p12, 1, 0 }
  0x12   : > { %s4784_s8 = scalar_lea.hbm %s6741_s0, %s4378_s30  ;;  %s166_s9 = scalar_lea.vmem [#allocation2], %s4191_s5 }
  0x13   : > { %s174_s10 = sshll.u32 %s166_s9, 4  ;;  %p4788_p13 = pnand %p4488_p10, %p4760_p5  ;;  %s4792_s10 = int_to_ptr.vmem [resolvable:$true] %s174_s10 }
  0x14   : > { %s163_s12 = scalar_lea.sflag [#allocation3], %s162_s29  ;;  %s4584_s13 = scalar_lea.hbm %s4784_s8, 1024 }
  0x15   : > { %p4585_p2 = scmp.ne.s32.totalorder %s4784_s8, %s4584_s13  ;;  %p4586_p3 = pneg %p4788_p13 }
  0x16   : > { %s4589_s22 = scalar_lea.hbm %s6741_s0, 2048  ;;  %p4590_p5 = scmp.lt.u32.totalorder %s4784_s8, %s6741_s0 }
  0x17   : > { %p4587_p4 = pnand %p4586_p3, %p4585_p2  ;;  %p4591_p8 = scmp.lt.u32.totalorder %s4589_s22, %s4584_s13 }
  0x18   : > { %p4593_p9 = scmp.lt.u32.totalorder %s4584_s13, %s4784_s8 }
  0x19   : > { %p4588_p7 = pneg %p4587_p4  ;;  %p4592_p10 = por %p4591_p8, %p4590_p5 }
  0x1b   : > { %p4594_p0 = por %p4593_p9, %p4592_p10 }
  0x1d   : > { %p4595_p1 = pnand %p4594_p0, %p4588_p7 }
  0x1f   : > { %4598 = shalt.err (!%p4595_p1)
}
  0x20   : > { %s4599_s29 = scalar_lea.vmem %s4792_s10, 1024  ;;  %s4682_s30 = smov [#allocation2]  }
  0x21   : > { %p4600_p2 = scmp.ne.s32.totalorder %s4792_s10, %s4599_s29  ;;  %s4604_s5 = sshll.u32 %s4682_s30, 4  ;;  %s4605_s5 = int_to_ptr.vmem [resolvable:$false] %s4604_s5 }
  0x22   : > { %s4606_s6 = scalar_lea.vmem %s4605_s5, 2048  ;;  %p4607_p11 = scmp.lt.s32.totalorder %s4792_s10, %s4605_s5 }
  0x23   : > { %p4602_p4 = pnand %p4600_p2, %p4586_p3  ;;  %p4608_p5 = scmp.lt.s32.totalorder %s4606_s6, %s4599_s29 }
  0x25   : > { %p4603_p12 = pneg %p4602_p4  ;;  %p4609_p8 = por %p4608_p5, %p4607_p11 }
  0x27   : > { %p4610_p9 = pnand %p4609_p8, %p4603_p12 }
  0x29   : > { %4613 = shalt.err (!%p4610_p9)
}
  0x2a   : > { %4483 = dma.hbm_to_vmem [thread:$0]  (!%p4788_p13), %s4784_s8, 1024, %s4792_s10, %s163_s12  }
  0x2b   : > { %p6802_p0 = scmp.lt.s32.totalorder %s4680_s18, 3  ;;  %p6803_p1 = scmp.ge.s32.totalorder %s4680_s18, 1 }
  0x2d   : > { %p180_p3 = pnand %p6803_p1, %p6802_p0 }
  0x2f   : > { %183 = sbr.rel (%p180_p3) target bundleno = 704 (0x2c0), region = 36 }
  0x36   : > { %s4826_s7 = sand.u32 1, %s4672_s16  }
  0x37   : > { %s4195_s9 = sshll.u32 %s4826_s7, 6  ;;  %s186_s13 = scalar_lea.sflag [#allocation3], %s4826_s7 }
  0x38   : > { %s4830_s14 = scalar_lea.vmem [#allocation2], %s4195_s9 }
  0x39   : > { %4659 = dma.done.wait (%p4764_p6), %s186_s13, 1024  }
  0x3a   : > { %4661 = vsyncadd (%p4764_p6), %s186_s13, 4294966272  ;;  %v6747_v0 = vmov 0.0   ;;  %v216_v1 = vld [vmem:[%s4830_s14] sm:$0x77]  ;;  %vm2098_vm0 = vcmask 1042432   ;;  %vm2085_vm1 = vcmask 23552  }
  0x3b   : > { %2195 = vmatprep.mubr.f32.mxu0 %v6747_v0  ;;  %2284 = vmatprep.mubr.f32.mxu1 %v6747_v0  ;;  %v4840_v2 = vld [vmem:[%s4830_s14 + $0x8] sm:$0x77]  ;;  %v4842_v3 = vmul.f32 145.28186, %v216_v1  ;;  %v2077_v4 = vcombine.high %v216_v1, %v216_v1  ;;  %v4849_v6 = vld [vmem:[%s6742_s1] sm:$0xff]  ;;  %v4905_v22 = vld [vmem:[%s6742_s1 + $0x10] sm:$0xff] }
  0x3c   : > { %v2078_v5 = vcombine.high %v4840_v2, %v4840_v2  ;;  %v4852_v7 = vld [vmem:[%s4830_s14 + $0x10] sm:$0x77]  ;;  %v4858_v9 = vld [vmem:[%s4830_s14 + $0x18] sm:$0x77]  ;;  %v4870_v12 = vld [vmem:[%s4830_s14 + $0x20] sm:$0x77] }
  0x3d   : > { %v235_v8 = vand.u32 2139095040, %v4842_v3  ;;  %4293 = vmatprep.subr.msk.mxu0 %vm2098_vm0, %v2077_v4  ;;  %v2079_v11 = vcombine.high %v4852_v7, %v4852_v7  ;;  %6804 = vst [vmem:[#allocation8_spill] sm:$0xff] %v4870_v12  ;;  %v4873_v13 = vld [vmem:[%s4830_s14 + $0x28] sm:$0x77]  ;;  %v232_v14 = vand.u32 2147483647, %v4842_v3  ;;  %v2080_v16 = vcombine.high %v4858_v9, %v4858_v9 }
  0x3e   : > { %4299 = vmatprep.subr.msk.mxu1 %vm2098_vm0, %v2078_v5  ;;  %4294 = vmatpush1.msk.msra.mxu0 %vm2098_vm0, %v216_v1  ;;  %v4881_v15 = vld [vmem:[%s6742_s1 + $0x8] sm:$0xff]  ;;  %v2081_v18 = vcombine.high %v4870_v12, %v4870_v12  ;;  %v2082_v19 = vcombine.high %v4873_v13, %v4873_v13  ;;  %v4919_v27 = vld [vmem:[%s6742_s1 + $0x18] sm:$0xff]  ;;  %v6753_v29 = vmov 683565275   ;;  %v6751_v31 = vmov 2475754826  }
  0x3f   : > { %4300 = vmatpush1.msk.msra.mxu1 %vm2098_vm0, %v4840_v2  ;;  %v236_v10 = vshrl.u32 %v235_v8, 23  ;;  %4295 = vmatmul.mubr.msk.f32.vlgmr.msra.gmra.mrb[0].mxu0 %vm2085_vm1, %v4849_v6  ;;  %v239_v21 = vand.u32 8388607, %v232_v14  ;;  %v6749_v33 = vmov 2131351028   ;;  %vm234_vm9 = vcmp.lt.s32.totalorder %v4842_v3, 0 }
  0x40   : > { %4301 = vmatmul.mubr.msk.f32.vlgmr.msra.gmra.mrb[0].mxu1 %vm2085_vm1, %v4849_v6  ;;  %2201 = vmatprep.mubr.f32.mxu0 %v6747_v0  ;;  %v6755_v35 = vmov 2102212464   ;;  %v6757_v37 = vmov 920167782   ;;  %v6759_v44 = vmov 1326507024  }
  0x41   : > { %2290 = vmatprep.mubr.f32.mxu1 %v6747_v0  ;;  %v4197_v17 = vadd.s32 4294967169, %v236_v10  ;;  %4305 = vmatprep.subr.msk.mxu0 %vm2098_vm0, %v2079_v11  ;;  %v240_v25 = vor.u32 8388608, %v239_v21  ;;  %vm233_vm10 = vcmp.le.f32.partialorder %v232_v14, 0.7853982  ;;  %s4379_s6 = sshll.u32 %s4742_s19, 8  ;;  %s4104_s10 = scalar_lea.sflag [#allocation4], %s4826_s7 }
  0x42   : > { %4311 = vmatprep.subr.msk.mxu1 %vm2098_vm0, %v2080_v16  ;;  %4306 = vmatpush1.msk.msra.mxu0 %vm2098_vm0, %v4852_v7  ;;  %s6696_s8 = scalar_lea.hbm %s6745_s4, %s4379_s6  ;;  %p6928_p11 = scmp.ne.s32.totalorder %s6799_s27, 0 }
  0x43   : > { %v242_v20 = vadd.s32 1, %v4197_v17  ;;  %4296 = vmatmul.mubr.msk.f32.gmra.mrb[2].mxu0 %vm2085_vm1, %v4881_v15  ;;  %4312 = vmatpush1.msk.msra.mxu1 %vm2098_vm0, %v4858_v9  ;;  %v280_v46 = vshll.u32 %v240_v25, 8  ;;  %s4695_s11 = smov [#allocation5]  }
  0x44   : > { %4302 = vmatmul.mubr.msk.f32.gmra.mrb[2].mxu1 %vm2085_vm1, %v4881_v15  ;;  %2207 = vmatprep.mubr.f32.mxu0 %v6747_v0  ;;  %s4618_s12 = sshll.u32 %s4695_s11, 4  ;;  %s4619_s12 = int_to_ptr.vmem [resolvable:$false] %s4618_s12 }
  0x45   : > { %vm243_vm2 = vcmp.gt.s32.totalorder %v242_v20, 0  ;;  %2296 = vmatprep.mubr.f32.mxu1 %v6747_v0  ;;  %4317 = vmatprep.subr.msk.mxu0 %vm2098_vm0, %v2081_v18  ;;  %s4620_s20 = scalar_lea.vmem %s4619_s12, 512 }
  0x46   : > { %v244_v23 = vsel %vm243_vm2, %v242_v20, 0  ;;  %4323 = vmatprep.subr.msk.mxu1 %vm2098_vm0, %v2082_v19 }
  0x47   : > { %v246_v24 = vand.u32 31, %v244_v23  ;;  %4297 = vmatmul.mubr.msk.f32.gmra.mrb[4].mxu0 %vm2085_vm1, %v4905_v22  ;;  %v245_v26 = vshrl.u32 %v244_v23, 5 }
  0x48   : > { %4303 = vmatmul.mubr.msk.f32.gmra.mrb[4].mxu1 %vm2085_vm1, %v4905_v22  ;;  %2213 = vmatprep.mubr.f32.mxu0 %v6747_v0 }
  0x49   : > { %2302 = vmatprep.mubr.f32.mxu1 %v6747_v0  ;;  %v247_v28 = vsub.s32 32, %v246_v24  ;;  %v249_v30 = vshll.u32 %v6753_v29, %v246_v24  ;;  %v252_v32 = vshll.u32 %v6751_v31, %v246_v24  ;;  %v255_v34 = vshll.u32 %v6749_v33, %v246_v24 }
  0x4a   : > { %v258_v36 = vshll.u32 %v6755_v35, %v246_v24  ;;  %v261_v38 = vshll.u32 %v6757_v37, %v246_v24  ;;  %vm264_vm3 = vcmp.lt.s32.totalorder %v245_v26, 1  ;;  %vm267_vm4 = vcmp.lt.s32.totalorder %v245_v26, 4 }
  0x4b   : > { %v248_v39 = vshrl.u32 %v6753_v29, %v247_v28  ;;  %v250_v40 = vshrl.u32 %v6751_v31, %v247_v28  ;;  %v253_v41 = vshrl.u32 %v6749_v33, %v247_v28  ;;  %v256_v42 = vshrl.u32 %v6755_v35, %v247_v28  ;;  %4298 = vmatmul.mubr.msk.f32.gmra.mrb[6].mxu0 %vm2085_vm1, %v4919_v27 }
  0x4c   : > { %v259_v43 = vshrl.u32 %v6757_v37, %v247_v28  ;;  %v262_v45 = vshrl.u32 %v6759_v44, %v247_v28  ;;  %4304 = vmatmul.mubr.msk.f32.gmra.mrb[6].mxu1 %vm2085_vm1, %v4919_v27  ;;  %2373 = vmatprep.mubr.f32.mxu0 %v6747_v0  ;;  %vm265_vm5 = vcmp.lt.s32.totalorder %v245_v26, 2  ;;  %vm266_vm6 = vcmp.lt.s32.totalorder %v245_v26, 3 }
  0x4d   : > { %v251_v47 = vor.u32 %v250_v40, %v249_v30  ;;  %v254_v48 = vor.u32 %v253_v41, %v252_v32  ;;  %v257_v49 = vor.u32 %v256_v42, %v255_v34  ;;  %2462 = vmatprep.mubr.f32.mxu1 %v6747_v0 }
  0x4e   : > { %v260_v50 = vor.u32 %v259_v43, %v258_v36  ;;  %v263_v51 = vor.u32 %v262_v45, %v261_v38 }
  0x4f   : > { %v268_v52 = vsel %vm264_vm3, %v248_v39, %v251_v47  ;;  %v269_v53 = vsel %vm267_vm4, %v257_v49, 2102212464  ;;  %v272_v54 = vsel %vm264_vm3, %v251_v47, %v254_v48  ;;  %v276_v55 = vsel %vm264_vm3, %v254_v48, %v257_v49  ;;  %4307 = vmatmul.mubr.msk.f32.vlgmr.msra.gmra.mrb[8].mxu0 %vm2085_vm1, %v4849_v6 }
  0x50   : > { %v270_v56 = vsel %vm266_vm6, %v254_v48, %v269_v53  ;;  %v273_v57 = vsel %vm267_vm4, %v260_v50, 920167782  ;;  %v277_v58 = vsel %vm267_vm4, %v263_v51, 1326507024  ;;  %4313 = vmatmul.mubr.msk.f32.vlgmr.msra.gmra.mrb[8].mxu1 %vm2085_vm1, %v4849_v6  ;;  %2379 = vmatprep.mubr.f32.mxu0 %v6747_v0  ;;  %vm324_vm3 = vweird.f32 %v4842_v3 }
  0x51   : > { %v274_v59 = vsel %vm266_vm6, %v257_v49, %v273_v57  ;;  %v278_v60 = vsel %vm266_vm6, %v260_v50, %v277_v58  ;;  %2468 = vmatprep.mubr.f32.mxu1 %v6747_v0  ;;  %v271_v61 = vsel %vm265_vm5, %v268_v52, %v270_v56  ;;  %4318 = vmatpush1.msk.msra.mxu0 %vm2098_vm0, %v4870_v12 }
  0x52   : > { %v275_v62 = vsel %vm265_vm5, %v272_v54, %v274_v59  ;;  %v279_v63 = vsel %vm265_vm5, %v276_v55, %v278_v60  ;;  %4324 = vmatpush1.msk.msra.mxu1 %vm2098_vm0, %v4873_v13  ;;  %v287_v10 = vmul.u32 %v280_v46, %v271_v61 }
  0x53   : > { %v4952_v1 = vmul.u32.u64.low %v280_v46, %v279_v63  ;;  %v4953_v4 = vmul.u32.u64.high %v280_v46, %v279_v63, %v4952_v1  ;;  %v4955_v5 = vmul.u32.u64.low %v280_v46, %v275_v62  ;;  %v4956_v8 = vmul.u32.u64.high %v280_v46, %v275_v62, %v4955_v5  ;;  %4308 = vmatmul.mubr.msk.f32.gmra.mrb[10].mxu0 %vm2085_vm1, %v4881_v15 }
  0x54   : > { %4314 = vmatmul.mubr.msk.f32.gmra.mrb[10].mxu1 %vm2085_vm1, %v4881_v15  ;;  %2385 = vmatprep.mubr.f32.mxu0 %v6747_v0 }
  0x55   : > { %2474 = vmatprep.mubr.f32.mxu1 %v6747_v0  ;;  %vm289_vm7 = vc.u32 %v4953_v4, %v4955_v5  ;;  %v290_v11 = vadd.s32 1, %v4956_v8  ;;  %v288_v26 = vadd.s32 %v4955_v5, %v4953_v4 }
  0x57   : > { %4309 = vmatmul.mubr.msk.f32.gmra.mrb[12].mxu0 %vm2085_vm1, %v4905_v22  ;;  %v291_v13 = vsel %vm289_vm7, %v290_v11, %v4956_v8 }
  0x58   : > { %4315 = vmatmul.mubr.msk.f32.gmra.mrb[12].mxu1 %vm2085_vm1, %v4905_v22  ;;  %2391 = vmatprep.mubr.f32.mxu0 %v6747_v0  ;;  %v292_v16 = vadd.s32 %v291_v13, %v287_v10 }
  0x59   : > { %2480 = vmatprep.mubr.f32.mxu1 %v6747_v0 }
  0x5a   : > { %v293_v17 = vadd.s32 536870912, %v292_v16 }
  0x5b   : > { %4310 = vmatmul.mubr.msk.f32.gmra.mrb[14].mxu0 %vm2085_vm1, %v4919_v27 }
  0x5c   : > { %4316 = vmatmul.mubr.msk.f32.gmra.mrb[14].mxu1 %vm2085_vm1, %v4919_v27  ;;  %2551 = vmatprep.mubr.f32.mxu0 %v6747_v0  ;;  %v294_v18 = vshrl.u32 %v293_v17, 30 }
  0x5d   : > { %2640 = vmatprep.mubr.f32.mxu1 %v6747_v0 }
  0x5e   : > { %v295_v19 = vshll.u32 %v294_v18, 30  ;;  %v318_v45 = vsub.s32 4, %v294_v18 }
  0x5f   : > { %4319 = vmatmul.mubr.msk.f32.vlgmr.msra.gmra.mrb[16].mxu0 %vm2085_vm1, %v4849_v6 }
  0x60   : > { %4325 = vmatmul.mubr.msk.f32.vlgmr.msra.gmra.mrb[16].mxu1 %vm2085_vm1, %v4849_v6  ;;  %2557 = vmatprep.mubr.f32.mxu0 %v6747_v0  ;;  %v296_v20 = vsub.s32 %v292_v16, %v295_v19  ;;  %v319_v48 = vsel %vm234_vm9, %v318_v45, %v294_v18  ;;  %v223_v19 = vld [vmem:[%s4830_s14 + $0x38] sm:$0x77] }
  0x61   : > { %2646 = vmatprep.mubr.f32.mxu1 %v6747_v0  ;;  %v321_v51 = vsel %vm233_vm10, 0, %v319_v48 }
  0x62   : > { %v298_v21 = vsub.s32 0, %v296_v20  ;;  %v1149_v52 = vadd.s32 3, %v321_v51  ;;  %v325_v53 = vand.u32 3, %v321_v51 }
  0x63   : > { %4320 = vmatmul.mubr.msk.f32.gmra.mrb[18].mxu0 %vm2085_vm1, %v4881_v15 }
  0x64   : > { %4326 = vmatmul.mubr.msk.f32.gmra.mrb[18].mxu1 %vm2085_vm1, %v4881_v15  ;;  %2563 = vmatprep.mubr.f32.mxu0 %v6747_v0  ;;  %v4198_v23 = vmin.u32 %v298_v21, %v296_v20  ;;  %v1150_v54 = vand.u32 3, %v1149_v52  ;;  %vm330_vm11 = vcmp.eq.s32.totalorder %v325_v53, 2  ;;  %vm327_vm13 = vcmp.eq.s32.totalorder %v325_v53, 0 }
  0x65   : > { %2652 = vmatprep.mubr.f32.mxu1 %v6747_v0  ;;  %vm326_vm15 = vcmp.lt.s32.totalorder %v325_v53, 2  ;;  %v2084_v21 = vcombine.high %v223_v19, %v223_v19  ;;  %v5110_v52 = vmul.f32 145.28186, %v4852_v7 }
  0x66   : > { %v300_v24 = vclz %v4198_v23  ;;  %vm1155_vm12 = vcmp.eq.s32.totalorder %v1150_v54, 2  ;;  %vm1152_vm14 = vcmp.eq.s32.totalorder %v1150_v54, 0  ;;  %vm1151_vm2 = vcmp.lt.s32.totalorder %v1150_v54, 2  ;;  %v5024_v23 = vld [vmem:[%s6744_s3] sm:$0xff] }
  0x67   : > { %4321 = vmatmul.mubr.msk.f32.gmra.mrb[20].mxu0 %vm2085_vm1, %v4905_v22  ;;  %4335 = vmatprep.subr.msk.mxu1 %vm2098_vm0, %v2084_v21  ;;  %6807 = vst [vmem:[#allocation11_spill] sm:$0xff] %v5110_v52 }
  0x68   : > { %4327 = vmatmul.mubr.msk.f32.gmra.mrb[20].mxu1 %vm2085_vm1, %v4905_v22  ;;  %2569 = vmatprep.mubr.f32.mxu0 %v6747_v0  ;;  %v4199_v25 = vadd.s32 4294967294, %v300_v24  ;;  %v5032_v24 = vld [vmem:[%s6744_s3 + $0x10] sm:$0xff] }
  0x69   : > { %2658 = vmatprep.mubr.f32.mxu1 %v6747_v0  ;;  %4336 = vmatpush1.msk.msra.mxu1 %vm2098_vm0, %v223_v19 }
  0x6a   : > { %vm4200_vm8 = vcmp.lt.s32.totalorder %v4199_v25, 0 }
  0x6b   : > { %4322 = vmatmul.mubr.msk.f32.gmra.mrb[22].mxu0 %vm2085_vm1, %v4919_v27  ;;  %v303_v28 = vsel %vm4200_vm8, 0, %v4199_v25  ;;  %v4690_v25 = vmov 0  }
  0x6c   : > { %4328 = vmatmul.mubr.msk.f32.gmra.mrb[22].mxu1 %vm2085_vm1, %v4919_v27  ;;  %2729 = vmatprep.mubr.f32.mxu0 %v6747_v0  ;;  %v304_v30 = vsub.s32 32, %v303_v28  ;;  %v305_v32 = vshll.u32 %v296_v20, %v303_v28  ;;  %v308_v34 = vsub.s32 4294967266, %v303_v28 }
  0x6d   : > { %2818 = vmatprep.mubr.f32.mxu1 %v6747_v0  ;;  %4534 = vset.pattern.permute.xlu0 %v4690_v25 }
  0x6e   : > { %v306_v36 = vshrl.u32 %v288_v26, %v304_v30  ;;  %v309_v38 = vadd.s32 127, %v308_v34  ;;  %2051 = vperm.xlu0 %4534, %v5024_v23   ;;  %4535 = vset.pattern.permute.xlu1 %v4690_v25  ;;  %v5050_v26 = vld [vmem:[%s6744_s3 + $0x18] sm:$0xff] }
  0x6f   : > { %2061 = vperm.xlu1 %4535, %v5032_v24  }
  0x70   : > { %v307_v39 = vor.u32 %v306_v36, %v305_v32  ;;  %v310_v40 = vshll.u32 %v309_v38, 23  ;;  %4337 = vmatmul.mubr.msk.f32.vlgmr.msra.gmra.mrb[24].mxu1 %vm2085_vm1, %v4849_v6 }
  0x71   : > { %2824 = vmatprep.mubr.f32.mxu1 %v6747_v0 }
  0x72   : > { %v311_v41 = vor.u32 4788187, %v310_v40  ;;  %v314_v42 = vcvt.s32.f32 %v307_v39 }
  0x73   : > { %2066 = vperm.xlu1 %4535, %v5050_v26  }
  0x74   : > { %v312_v43 = vand.u32 2147483647, %v311_v41  ;;  %4338 = vmatmul.mubr.msk.f32.gmra.mrb[26].mxu1 %vm2085_vm1, %v4881_v15 }
  0x75   : > { %2830 = vmatprep.mubr.f32.mxu1 %v6747_v0 }
  0x76   : > { %v315_v46 = vmul.f32 %v314_v42, %v312_v43 }
  0x78   : > { %v316_v47 = vxor.u32 2147483648, %v315_v46  ;;  %4339 = vmatmul.mubr.msk.f32.gmra.mrb[28].mxu1 %vm2085_vm1, %v4905_v22 }
  0x79   : > { %2836 = vmatprep.mubr.f32.mxu1 %v6747_v0 }
  0x7a   : > { %v317_v49 = vsel %vm234_vm9, %v316_v47, %v315_v46 }
  0x7b   : > { %v320_v50 = vsel %vm233_vm10, %v4842_v3, %v317_v49  ;;  %v222_v3 = vld [vmem:[%s4830_s14 + $0x30] sm:$0x77] }
  0x7c   : > { %4549 = vcosq.f32 %v320_v50  ;;  %v2083_v20 = vcombine.high %v222_v3, %v222_v3  ;;  %4340 = vmatmul.mubr.msk.f32.gmra.mrb[30].mxu1 %vm2085_vm1, %v4919_v27 }
  0x7d   : > { %4551 = vsinq.f32 %v320_v50  ;;  %3093 = vmatprep.mubr.f32.mxu1 %v6747_v0 }
  0x7e   : > { %4329 = vmatprep.subr.msk.mxu0 %vm2098_vm0, %v2083_v20 }
  0x7f   : > { %4330 = vmatpush1.msk.msra.mxu0 %vm2098_vm0, %v222_v3 }
  0x80   : > { %4331 = vmatmul.mubr.msk.f32.vlgmr.msra.gmra.mrb[24].mxu0 %vm2085_vm1, %v4849_v6  ;;  %v5041_v6 = vld [vmem:[%s6744_s3 + $0x8] sm:$0xff] }
  0x81   : > { %2735 = vmatprep.mubr.f32.mxu0 %v6747_v0  ;;  %2056 = vperm.xlu0 %4534, %v5041_v6  }
  0x84   : > { %4332 = vmatmul.mubr.msk.f32.gmra.mrb[26].mxu0 %vm2085_vm1, %v4881_v15 }
  0x85   : > { %2741 = vmatprep.mubr.f32.mxu0 %v6747_v0 }
  0x86   : > { %v4550_v55 = vpop.eup %4549 }
  0x87   : > { %v4552_v56 = vpop.eup %4551  ;;  %v331_v57 = vxor.u32 2147483648, %v4550_v55 }
  0x88   : > { %v328_v14 = vxor.u32 2147483648, %v4552_v56  ;;  %4333 = vmatmul.mubr.msk.f32.gmra.mrb[28].mxu0 %vm2085_vm1, %v4905_v22 }
  0x89   : > { %v332_v58 = vsel %vm330_vm11, %v331_v57, %v4552_v56  ;;  %v1157_v59 = vsel %vm1155_vm12, %v331_v57, %v4552_v56  ;;  %2747 = vmatprep.mubr.f32.mxu0 %v6747_v0  ;;  %vm2927_vm11 = vcmask 261120  }
  0x8a   : > { %v329_v60 = vsel %vm327_vm13, %v4550_v55, %v328_v14  ;;  %v1154_v61 = vsel %vm1152_vm14, %v4550_v55, %v328_v14  ;;  %v441_v14 = vand.u32 2139095040, %v5110_v52 }
  0x8b   : > { %v333_v62 = vsel %vm326_vm15, %v329_v60, %v332_v58  ;;  %v1158_v63 = vsel %vm1151_vm2, %v1154_v61, %v1157_v59 }
  0x8c   : > { %v334_v1 = vsel %vm324_vm3, nan, %v333_v62  ;;  %v1159_v4 = vsel %vm324_vm3, nan, %v1158_v63  ;;  %4334 = vmatmul.mubr.msk.f32.gmra.mrb[30].mxu0 %vm2085_vm1, %v4919_v27  ;;  %v5084_v27 = vmul.f32 145.28186, %v4840_v2  ;;  %v442_v62 = vshrl.u32 %v441_v14, 23 }
  0x8d   : > { %v4261_v5 = vrot.slane %v1159_v4, 9  ;;  %v1968_v8 = vrot.slane %v1159_v4, 6  ;;  %3004 = vmatprep.mubr.f32.mxu0 %v6747_v0 }
  0x8e   : > { %6806 = vst [vmem:[#allocation10_spill] sm:$0xff] %v5084_v27  ;;  %v338_v43 = vand.u32 2139095040, %v5084_v27 }
  0x8f   : > { %v1920_v10 = vmul.f32 %v4261_v5, %v334_v1  ;;  %v1984_v11 = vmul.f32 %v1968_v8, %v334_v1  ;;  %v4205_v8 = vadd.s32 4294967169, %v442_v62 }
  0x90   : > { %v339_v2 = vshrl.u32 %v338_v43, 23 }
  0x91   : > { %v4269_v13 = vrot.slane %v1920_v10, 9  ;;  %v4277_v16 = vrot.slane %v1984_v11, 10  ;;  %v448_v19 = vadd.s32 1, %v4205_v8 }
  0x92   : > { %v4201_v54 = vadd.s32 4294967169, %v339_v2 }
  0x93   : > { %v1960_v17 = vadd.f32 %v4269_v13, %v1920_v10  ;;  %vm449_vm1 = vcmp.gt.s32.totalorder %v448_v19, 0 }
  0x94   : > { %v345_v59 = vadd.s32 1, %v4201_v54  ;;  %v450_v62 = vsel %vm449_vm1, %v448_v19, 0 }
  0x95   : > { %v5011_v18 = vadd.f32 %v4277_v16, %v1960_v17 }
  0x96   : > { %vm346_vm0 = vcmp.gt.s32.totalorder %v345_v59, 0 }
  0x97   : > { %6805 = vst [vmem:[#allocation9_spill] sm:$0xff] %v5011_v18  ;;  %v347_v11 = vsel %vm346_vm0, %v345_v59, 0  ;;  %v6826_v59 = vmov 2475754826  }
  0x98   : > { %v349_v3 = vand.u32 31, %v347_v11 }
  0x9a   : > { %v350_v2 = vsub.s32 32, %v349_v3  ;;  %v361_v33 = vshll.u32 %v6755_v35, %v349_v3  ;;  %v364_v29 = vshll.u32 %v6757_v37, %v349_v3 }
  0x9c   : > { %v362_v31 = vshrl.u32 %v6757_v37, %v350_v2  ;;  %v365_v18 = vshrl.u32 %v6759_v44, %v350_v2  ;;  %v353_v19 = vshrl.u32 %v6826_v59, %v350_v2 }
 0x112   : > { %v5067_v15 = vpop.f32.mrb[0].mxu0 }
 0x113   : > { %v5069_v28 = vpop.f32.mrb[0].mxu1  ;;  %v5071_v30 = vpop.f32.mrb[1].mxu0 }
 0x114   : > { %v5073_v22 = vpop.f32.mrb[1].mxu1 }
 0x116   : > { %v5075_v32 = vpop.f32.mrb[2].mxu0 }
 0x117   : > { %v5077_v34 = vpop.f32.mrb[2].mxu1  ;;  %v5079_v36 = vpop.f32.mrb[3].mxu0 }
 0x118   : > { %v5081_v38 = vpop.f32.mrb[3].mxu1 }
 0x11a   : > { %v5086_v39 = vpop.f32.mrb[4].mxu0 }
 0x11b   : > { %v5088_v40 = vpop.f32.mrb[4].mxu1  ;;  %v5090_v41 = vpop.f32.mrb[5].mxu0 }
 0x11c   : > { %v5092_v42 = vpop.f32.mrb[5].mxu1 }
 0x11e   : > { %v5095_v45 = vpop.f32.mrb[6].mxu0 }
 0x11f   : > { %v5097_v46 = vpop.f32.mrb[6].mxu1  ;;  %v5099_v47 = vpop.f32.mrb[7].mxu0 }
 0x120   : > { %v5101_v48 = vpop.f32.mrb[7].mxu1 }
 0x122   : > { %v5103_v49 = vpop.f32.mrb[8].mxu0 }
 0x123   : > { %v5105_v50 = vpop.f32.mrb[8].mxu1  ;;  %v5107_v51 = vpop.f32.mrb[9].mxu0 }
 0x124   : > { %v5112_v53 = vpop.f32.mrb[9].mxu1 }
 0x126   : > { %v5114_v55 = vpop.f32.mrb[10].mxu0 }
 0x127   : > { %v5116_v56 = vpop.f32.mrb[10].mxu1  ;;  %v5118_v57 = vpop.f32.mrb[11].mxu0 }
 0x128   : > { %v5121_v58 = vpop.f32.mrb[11].mxu1 }
 0x12a   : > { %v5123_v60 = vpop.f32.mrb[12].mxu0 }
 0x12b   : > { %v5125_v61 = vpop.f32.mrb[12].mxu1  ;;  %v5127_v7 = vpop.f32.mrb[13].mxu0 }
 0x12c   : > { %v5129_v63 = vpop.f32.mrb[13].mxu1 }
 0x12d   : > { %6808 = vst [vmem:[#allocation12_spill] sm:$0xff] %v5129_v63 }
 0x12e   : > { %v5131_v1 = vpop.f32.mrb[14].mxu0 }
 0x12f   : > { %6809 = vst [vmem:[#allocation13_spill] sm:$0xff] %v5131_v1  ;;  %v5133_v4 = vpop.f32.mrb[14].mxu1  ;;  %v5135_v5 = vpop.f32.mrb[15].mxu0 }
 0x130   : > { %6810 = vst [vmem:[#allocation14_spill] sm:$0xff] %v5133_v4  ;;  %6811 = vst [vmem:[#allocation15_spill] sm:$0xff] %v5135_v5  ;;  %v5137_v10 = vpop.f32.mrb[15].mxu1  ;;  %v6832_v5 = vand.u32 2147483647, %v5084_v27 }
 0x131   : > { %6812 = vst [vmem:[#allocation16_spill] sm:$0xff] %v5137_v10 }
 0x132   : > { %v5139_v13 = vpop.f32.mrb[16].mxu0  ;;  %v342_v4 = vand.u32 8388607, %v6832_v5  ;;  %v5199_v5 = vmul.f32 145.28186, %v4858_v9 }
 0x133   : > { %6813 = vst [vmem:[#allocation17_spill] sm:$0xff] %v5139_v13  ;;  %v5141_v16 = vpop.f32.mrb[16].mxu1  ;;  %v5143_v17 = vpop.f32.mrb[17].mxu0  ;;  %v366_v13 = vor.u32 %v365_v18, %v364_v29 }
 0x134   : > { %6814 = vst [vmem:[#allocation18_spill] sm:$0xff] %v5141_v16  ;;  %6815 = vst [vmem:[#allocation19_spill] sm:$0xff] %v5143_v17  ;;  %v5145_v20 = vpop.f32.mrb[17].mxu1  ;;  %v452_v16 = vand.u32 31, %v450_v62 }
 0x135   : > { %6816 = vst [vmem:[#allocation20_spill] sm:$0xff] %v5145_v20  ;;  %v6828_v20 = vmov 2102212464   ;;  %6835 = vst [vmem:[#allocation34_spill] sm:$0xff] %v5199_v5 }
 0x136   : > { %v5147_v21 = vpop.f32.mrb[18].mxu0  ;;  %v359_v17 = vshrl.u32 %v6828_v20, %v350_v2  ;;  %v5189_v12 = vsub.s32 32, %v452_v16  ;;  %v458_v27 = vshll.u32 %v6826_v59, %v452_v16 }
 0x137   : > { %6817 = vst [vmem:[#allocation21_spill] sm:$0xff] %v5147_v21  ;;  %v5149_v25 = vpop.f32.mrb[18].mxu1  ;;  %v5151_v43 = vpop.f32.mrb[19].mxu0  ;;  %v6827_v21 = vmov 2131351028  }
 0x138   : > { %6818 = vst [vmem:[#allocation22_spill] sm:$0xff] %v5149_v25  ;;  %6819 = vst [vmem:[#allocation23_spill] sm:$0xff] %v5151_v43  ;;  %v5153_v54 = vpop.f32.mrb[19].mxu1  ;;  %v358_v35 = vshll.u32 %v6827_v21, %v349_v3  ;;  %v456_v18 = vshrl.u32 %v6826_v59, %v5189_v12 }
 0x139   : > { %6820 = vst [vmem:[#allocation24_spill] sm:$0xff] %v5153_v54  ;;  %v5168_v54 = vshrl.u32 %v347_v11, 5  ;;  %v363_v11 = vor.u32 %v362_v31, %v361_v33  ;;  %6834 = vst [vmem:[#allocation33_spill] sm:$0xff] %v5189_v12  ;;  %v343_v33 = vor.u32 8388608, %v342_v4 }
 0x13a   : > { %v5155_v14 = vpop.f32.mrb[20].mxu0  ;;  %v360_v63 = vor.u32 %v359_v17, %v358_v35  ;;  %v464_v17 = vshll.u32 %v6828_v20, %v452_v16 }
 0x13b   : > { %6821 = vst [vmem:[#allocation25_spill] sm:$0xff] %v5155_v14  ;;  %v5158_v0 = vpop.f32.mrb[20].mxu1  ;;  %v5160_v8 = vpop.f32.mrb[21].mxu0  ;;  %v6825_v14 = vmov 683565275   ;;  %vm370_vm4 = vcmp.lt.s32.totalorder %v5168_v54, 4 }
 0x13c   : > { %6822 = vst [vmem:[#allocation26_spill] sm:$0xff] %v5158_v0  ;;  %6823 = vst [vmem:[#allocation27_spill] sm:$0xff] %v5160_v8  ;;  %v5166_v43 = vpop.f32.mrb[21].mxu1  ;;  %v352_v25 = vshll.u32 %v6825_v14, %v349_v3  ;;  %v355_v0 = vshll.u32 %v6826_v59, %v349_v3  ;;  %v356_v8 = vshrl.u32 %v6827_v21, %v350_v2  ;;  %vm367_vm5 = vcmp.lt.s32.totalorder %v5168_v54, 1 }
 0x13d   : > { %6824 = vst [vmem:[#allocation28_spill] sm:$0xff] %v5166_v43  ;;  %vm369_vm6 = vcmp.lt.s32.totalorder %v5168_v54, 3  ;;  %v376_v29 = vsel %vm370_vm4, %v363_v11, 920167782  ;;  %v380_v31 = vsel %vm370_vm4, %v366_v13, 1326507024  ;;  %v351_v59 = vshrl.u32 %v6825_v14, %v350_v2 }
 0x13e   : > { %v5176_v37 = vpop.f32.mrb[22].mxu0  ;;  %v354_v1 = vor.u32 %v353_v19, %v352_v25  ;;  %v5187_v3 = vor.u32 %v356_v8, %v355_v0  ;;  %v6836_v25 = vmov 920167782   ;;  %v377_v4 = vsel %vm369_vm6, %v360_v63, %v376_v29 }
 0x13f   : > { %v5178_v44 = vpop.f32.mrb[22].mxu1  ;;  %v5180_v43 = vpop.f32.mrb[23].mxu0  ;;  %v465_v8 = vshrl.u32 %v6836_v25, %v5189_v12  ;;  %v381_v9 = vsel %vm369_vm6, %v363_v11, %v380_v31  ;;  %v5214_v13 = vshrl.u32 %v450_v62, 5  ;;  %vm368_vm7 = vcmp.lt.s32.totalorder %v5168_v54, 2 }
 0x140   : > { %6829 = vst [vmem:[#allocation29_spill] sm:$0xff] %v5178_v44  ;;  %6830 = vst [vmem:[#allocation30_spill] sm:$0xff] %v5180_v43  ;;  %v5182_v10 = vpop.f32.mrb[23].mxu1  ;;  %v375_v0 = vsel %vm367_vm5, %v354_v1, %v5187_v3  ;;  %v379_v35 = vsel %vm367_vm5, %v5187_v3, %v360_v63  ;;  %v455_v19 = vshll.u32 %v6825_v14, %v452_v16  ;;  %v544_v11 = vand.u32 2139095040, %v5199_v5 }
 0x141   : > { %6831 = vst [vmem:[#allocation31_spill] sm:$0xff] %v5182_v10  ;;  %6833 = vst [vmem:[#allocation32_spill] sm:$0xff] %v5187_v3  ;;  %v4691_v3 = vmov 1   ;;  %v459_v29 = vshrl.u32 %v6827_v21, %v5189_v12  ;;  %v461_v10 = vshll.u32 %v6827_v21, %v452_v16  ;;  %v462_v62 = vshrl.u32 %v6828_v20, %v5189_v12 }
 0x142   : > { %4537 = vset.pattern.permute.xlu1 %v4691_v3  ;;  %4536 = vset.pattern.permute.xlu0 %v4691_v3  ;;  %v5229_v31 = vor.u32 %v465_v8, %v464_v17  ;;  %v5232_v43 = vshll.u32 %v343_v33, 8  ;;  %v6838_v3 = vand.u32 2147483647, %v5110_v52  ;;  %vm473_vm8 = vcmp.lt.s32.totalorder %v5214_v13, 4 }
 0x143   : > { %2916 = vperm.xlu1 %4537, %v5041_v6   ;;  %2912 = vperm.xlu0 %4536, %v5024_v23   ;;  %v5241_v21 = vsel %vm368_vm7, %v375_v0, %v377_v4  ;;  %v5245_v5 = vsel %vm368_vm7, %v379_v35, %v381_v9  ;;  %v5248_v17 = vshll.u32 %v6836_v25, %v452_v16  ;;  %v6839_v2 = vmov 1326507024  }
 0x144   : > { %6837 = vst [vmem:[#allocation35_spill] sm:$0xff] %v5232_v43  ;;  %v5236_v44 = vand.u32 8388607, %v6838_v3  ;;  %v5252_v33 = vshrl.u32 %v6839_v2, %v5189_v12  ;;  %v5254_v8 = vor.u32 %v456_v18, %v455_v19  ;;  %v5256_v3 = vor.u32 %v459_v29, %v458_v27  ;;  %v5301_v19 = vpop.permute.xlu0 %2051 }
 0x145   : > { %v5258_v52 = vor.u32 %v462_v62, %v461_v10  ;;  %v545_v20 = vshrl.u32 %v544_v11, 23  ;;  %vm470_vm9 = vcmp.lt.s32.totalorder %v5214_v13, 1  ;;  %vm472_vm10 = vcmp.lt.s32.totalorder %v5214_v13, 3 }
 0x146   : > { %6840 = vst [vmem:[#allocation36_spill] sm:$0xff] %v5254_v8  ;;  %v479_v16 = vsel %vm473_vm8, %v5229_v31, 920167782  ;;  %v5269_v18 = vsel %vm367_vm5, %v351_v59, %v354_v1  ;;  %v5273_v27 = vmul.u32.u64.low %v5232_v43, %v5241_v21  ;;  %v5274_v10 = vmul.u32.u64.high %v5232_v43, %v5241_v21, %v5273_v27 }
 0x147   : > { %2920 = vperm.xlu1 %4537, %v5032_v24   ;;  %2924 = vperm.xlu0 %4536, %v5050_v26   ;;  %v5280_v35 = vsel %vm370_vm4, %v360_v63, 2102212464  ;;  %v5284_v4 = vmul.u32.u64.low %v5232_v43, %v5245_v5  ;;  %v5285_v9 = vmul.u32.u64.high %v5232_v43, %v5245_v5, %v5284_v4  ;;  %v469_v1 = vor.u32 %v5252_v33, %v5248_v17  ;;  %v5311_v33 = vpop.permute.xlu1 %2061 }
 0x148   : > { %6841 = vst [vmem:[#allocation37_spill] sm:$0xff] %v5273_v27  ;;  %v5294_v21 = vsel %vm470_vm9, %v5254_v8, %v5256_v3  ;;  %v5299_v63 = vsel %vm472_vm10, %v5258_v52, %v479_v16  ;;  %v4209_v59 = vadd.s32 4294967169, %v545_v20  ;;  %v4692_v5 = vmov 2   ;;  %v5323_v0 = vpop.permute.xlu0 %2056 }
 0x149   : > { %6842 = vst [vmem:[#allocation38_spill] sm:$0xff] %v5285_v9  ;;  %v2198_v29 = vadd.f32 %v5067_v15, %v5301_v19  ;;  %v2287_v62 = vadd.f32 %v5069_v28, %v5301_v19  ;;  %v2200_v11 = vadd.f32 %v5071_v30, %v5301_v19  ;;  %v2289_v17 = vadd.f32 %v5073_v22, %v5301_v19 }
 0x14a   : > { %v2210_v20 = vadd.f32 %v5086_v39, %v5311_v33  ;;  %v2299_v16 = vadd.f32 %v5088_v40, %v5311_v33  ;;  %v2212_v15 = vadd.f32 %v5090_v41, %v5311_v33  ;;  %v2301_v28 = vadd.f32 %v5092_v42, %v5311_v33  ;;  %v2044_v40 = vld [vmem:[%s6744_s3] sm:$0x1] }
 0x14b   : > { %4538 = vset.pattern.permute.xlu1 %v4692_v5  ;;  %4539 = vset.pattern.permute.xlu0 %v4692_v5  ;;  %v2843_v30 = vmax.f32 %v2198_v29, 0.0  ;;  %v2845_v22 = vmax.f32 %v2287_v62, 0.0  ;;  %v2844_v4 = vmax.f32 %v2200_v11, 0.0  ;;  %v2846_v5 = vmax.f32 %v2289_v17, 0.0  ;;  %v5336_v62 = vpop.permute.xlu1 %2066 }
 0x14c   : > { %3717 = vperm.xlu1 %4538, %v5024_v23   ;;  %3721 = vperm.xlu0 %4539, %v5041_v6   ;;  %v2875_v23 = vmax.f32 %v2210_v20, 0.0  ;;  %v2877_v2 = vmax.f32 %v2299_v16, 0.0  ;;  %v2876_v39 = vmax.f32 %v2212_v15, 0.0  ;;  %v2878_v25 = vmax.f32 %v2301_v28, 0.0 }
 0x14d   : > { %v2204_v41 = vadd.f32 %v5075_v32, %v5323_v0  ;;  %v2293_v6 = vadd.f32 %v5077_v34, %v5323_v0  ;;  %v2206_v42 = vadd.f32 %v5079_v36, %v5323_v0  ;;  %v2295_v29 = vadd.f32 %v5081_v38, %v5323_v0 }
 0x14e   : > { %v2216_v11 = vadd.f32 %v5095_v45, %v5336_v62  ;;  %v2305_v17 = vadd.f32 %v5097_v46, %v5336_v62  ;;  %v2218_v32 = vadd.f32 %v5099_v47, %v5336_v62  ;;  %v2307_v34 = vadd.f32 %v5101_v48, %v5336_v62 }
 0x14f   : > { %v4693_v36 = vmov 3   ;;  %v2859_v20 = vmax.f32 %v2204_v41, 0.0  ;;  %v2861_v38 = vmax.f32 %v2293_v6, 0.0  ;;  %v2860_v16 = vmax.f32 %v2206_v42, 0.0 }
 0x150   : > { %3725 = vperm.xlu1 %4538, %v5032_v24   ;;  %4540 = vset.pattern.permute.xlu0 %v4693_v36  ;;  %v2862_v15 = vmax.f32 %v2295_v29, 0.0  ;;  %v2891_v24 = vmax.f32 %v2216_v11, 0.0  ;;  %v2893_v28 = vmax.f32 %v2305_v17, 0.0  ;;  %v2892_v8 = vmax.f32 %v2218_v32, 0.0  ;;  %v6846_v11 = vld [vmem:[#allocation13_spill] sm:$0xff]  ;;  %v6848_v36 = vld [vmem:[#allocation15_spill] sm:$0xff] }
 0x151   : > { %3942 = vperm.xlu0 %4540, %v2044_v40   ;;  %v2894_v45 = vmax.f32 %v2307_v34, 0.0  ;;  %v4382_v43 = vpack.c.bf16 %v2859_v20, %v2843_v30  ;;  %v4390_v9 = vpack.c.bf16 %v2861_v38, %v2845_v22  ;;  %v4380_v46 = vpack.c.bf16 %v2860_v16, %v2844_v4  ;;  %v6849_v38 = vld [vmem:[#allocation16_spill] sm:$0xff] }
 0x152   : > { %v4388_v27 = vpack.c.bf16 %v2862_v15, %v2846_v5  ;;  %v4386_v47 = vpack.c.bf16 %v2891_v24, %v2875_v23  ;;  %v4394_v14 = vpack.c.bf16 %v2893_v28, %v2877_v2  ;;  %v4384_v48 = vpack.c.bf16 %v2892_v8, %v2876_v39  ;;  %v6843_v23 = vld [vmem:[#allocation8_spill] sm:$0xff]  ;;  %v6850_v15 = vld [vmem:[#allocation17_spill] sm:$0xff] }
 0x153   : > { %v4392_v12 = vpack.c.bf16 %v2894_v45, %v2878_v25  ;;  %v5350_v41 = vsel %vm473_vm8, %v469_v1, 1326507024  ;;  %4381 = vmatprep.subr.bf16.mxu0 %v4380_v46  ;;  %v2376_v40 = vadd.f32 %v5103_v49, %v5301_v19  ;;  %v2465_v30 = vadd.f32 %v5105_v50, %v5301_v19 }
 0x154   : > { %3729 = vperm.xlu1 %4538, %v5050_v26   ;;  %4389 = vmatprep.subr.bf16.mxu1 %v4388_v27  ;;  %v2378_v22 = vadd.f32 %v5107_v51, %v5301_v19  ;;  %v5358_v26 = vadd.s32 1, %v4209_v59  ;;  %v2467_v25 = vadd.f32 %v5112_v53, %v5301_v19  ;;  %v2382_v2 = vadd.f32 %v5114_v55, %v5323_v0 }
 0x155   : > { %4383 = vmatpush1.bf16.msra.mxu0 %v4382_v43  ;;  %4391 = vmatpush1.bf16.msra.mxu1 %v4390_v9  ;;  %v2471_v8 = vadd.f32 %v5116_v56, %v5323_v0  ;;  %v2847_v49 = vmax.f32 %v2376_v40, 0.0  ;;  %v2849_v27 = vmax.f32 %v2465_v30, 0.0  ;;  %v2384_v50 = vadd.f32 %v5118_v57, %v5323_v0  ;;  %v6853_v30 = vld [vmem:[#allocation19_spill] sm:$0xff] }
 0x156   : > { %4385 = vmatprep.subr.bf16.mxu0 %v4384_v48  ;;  %4393 = vmatprep.subr.bf16.mxu1 %v4392_v12  ;;  %v2848_v51 = vmax.f32 %v2378_v22, 0.0  ;;  %v2863_v43 = vmax.f32 %v2382_v2, 0.0  ;;  %v2473_v53 = vadd.f32 %v5121_v58, %v5323_v0  ;;  %v2388_v55 = vadd.f32 %v5123_v60, %v5311_v33  ;;  %v5379_v58 = vld [vmem:[%s6743_s2] sm:$0xff]  ;;  %v6852_v48 = vld [vmem:[#allocation18_spill] sm:$0xff] }
 0x157   : > { %v2865_v9 = vmax.f32 %v2471_v8, 0.0  ;;  %v2864_v1 = vmax.f32 %v2384_v50, 0.0  ;;  %v2477_v56 = vadd.f32 %v5125_v61, %v5311_v33  ;;  %v2390_v12 = vadd.f32 %v5127_v7, %v5311_v33  ;;  %v6845_v61 = vld [vmem:[#allocation12_spill] sm:$0xff] }
 0x158   : > { %v2850_v59 = vmax.f32 %v2467_v25, 0.0  ;;  %v4398_v4 = vpack.c.bf16 %v2863_v43, %v2847_v49  ;;  %v2866_v5 = vmax.f32 %v2473_v53, 0.0  ;;  %v5382_v39 = vmul.f32 145.28186, %v6843_v23  ;;  %v6854_v49 = vld [vmem:[#allocation20_spill] sm:$0xff]  ;;  %v6857_v23 = vld [vmem:[#allocation23_spill] sm:$0xff] }
 0x159   : > { %v4406_v57 = vpack.c.bf16 %v2865_v9, %v2849_v27  ;;  %4387 = vmatpush1.bf16.msra.mxu0 %v4386_v47  ;;  %4395 = vmatpush1.bf16.msra.mxu1 %v4394_v14  ;;  %v4396_v60 = vpack.c.bf16 %v2864_v1, %v2848_v51  ;;  %v2879_v6 = vmax.f32 %v2388_v55, 0.0  ;;  %v2479_v42 = vadd.f32 %v6845_v61, %v5311_v33  ;;  %v6847_v14 = vld [vmem:[#allocation14_spill] sm:$0xff]  ;;  %v5405_v47 = vld [vmem:[%s6743_s2 + $0x8] sm:$0xff] }
 0x15a   : > { %6844 = vst [vmem:[#allocation8_spill] sm:$0xff] %v5382_v39  ;;  %v4404_v7 = vpack.c.bf16 %v2866_v5, %v2850_v59  ;;  %v2881_v29 = vmax.f32 %v2477_v56, 0.0  ;;  %v2394_v17 = vadd.f32 %v6846_v11, %v5336_v62  ;;  %v2483_v32 = vadd.f32 %v6847_v14, %v5336_v62  ;;  %v6855_v56 = vld [vmem:[#allocation21_spill] sm:$0xff]  ;;  %v5425_v59 = vld [vmem:[%s6743_s2 + $0x10] sm:$0xff]  ;;  %v6861_v14 = vld [vmem:[#allocation27_spill] sm:$0xff] }
 0x15b   : > { %v2880_v34 = vmax.f32 %v2390_v12, 0.0  ;;  %v2396_v20 = vadd.f32 %v6848_v36, %v5336_v62  ;;  %v2485_v16 = vadd.f32 %v6849_v38, %v5336_v62  ;;  %v2554_v24 = vadd.f32 %v6850_v15, %v5301_v19  ;;  %4397 = vmatprep.subr.bf16.mxu0 %v4396_v60  ;;  %v6860_v11 = vld [vmem:[#allocation26_spill] sm:$0xff]  ;;  %v6862_v38 = vld [vmem:[#allocation28_spill] sm:$0xff] }
 0x15c   : > { %4341 = vmatmul.mubr.msk.f32.vlgmr.msra.gmra.mrb[32].mxu0 %vm2927_vm11, %v5379_v58  ;;  %4345 = vmatmul.mubr.msk.f32.vlgmr.msra.gmra.mrb[32].mxu1 %vm2927_vm11, %v5379_v58  ;;  %v6851_v28 = vmov 0.0   ;;  %v2895_v45 = vmax.f32 %v2394_v17, 0.0  ;;  %v2897_v46 = vmax.f32 %v2483_v32, 0.0  ;;  %v2643_v40 = vadd.f32 %v6852_v48, %v5301_v19 }
 0x15d   : > { %3010 = vmatprep.mubr.f32.mxu0 %v6851_v28  ;;  %3099 = vmatprep.mubr.f32.mxu1 %v6851_v28  ;;  %v2556_v22 = vadd.f32 %v6853_v30, %v5301_v19  ;;  %vm471_vm12 = vcmp.lt.s32.totalorder %v5214_v13, 2  ;;  %v2882_v25 = vmax.f32 %v2479_v42, 0.0  ;;  %v2896_v2 = vmax.f32 %v2396_v20, 0.0 }
 0x15e   : > { %4405 = vmatprep.subr.bf16.mxu1 %v4404_v7  ;;  %v2898_v8 = vmax.f32 %v2485_v16, 0.0  ;;  %v2645_v27 = vadd.f32 %v6854_v49, %v5301_v19  ;;  %v4402_v50 = vpack.c.bf16 %v2895_v45, %v2879_v6  ;;  %v4410_v51 = vpack.c.bf16 %v2897_v46, %v2881_v29  ;;  %4399 = vmatpush1.bf16.msra.mxu0 %v4398_v4  ;;  %v6858_v6 = vld [vmem:[#allocation24_spill] sm:$0xff]  ;;  %v6859_v7 = vld [vmem:[#allocation25_spill] sm:$0xff]  ;;  %v6865_v49 = vld [vmem:[#allocation31_spill] sm:$0xff] }
 0x15f   : > { %4407 = vmatpush1.bf16.msra.mxu1 %v4406_v57  ;;  %v2851_v43 = vmax.f32 %v2554_v24, 0.0  ;;  %v2853_v9 = vmax.f32 %v2643_v40, 0.0  ;;  %v4400_v53 = vpack.c.bf16 %v2896_v2, %v2880_v34  ;;  %v2852_v55 = vmax.f32 %v2556_v22, 0.0  ;;  %v6856_v57 = vld [vmem:[#allocation22_spill] sm:$0xff]  ;;  %v6863_v22 = vld [vmem:[#allocation29_spill] sm:$0xff] }
 0x160   : > { %4342 = vmatmul.mubr.msk.f32.gmra.mrb[34].mxu0 %vm2927_vm11, %v5405_v47  ;;  %4346 = vmatmul.mubr.msk.f32.gmra.mrb[34].mxu1 %vm2927_vm11, %v5405_v47  ;;  %v4408_v1 = vpack.c.bf16 %v2898_v8, %v2882_v25  ;;  %v2560_v12 = vadd.f32 %v6855_v56, %v5323_v0  ;;  %v2854_v4 = vmax.f32 %v2645_v27, 0.0  ;;  %v2649_v5 = vadd.f32 %v6856_v57, %v5323_v0  ;;  %v6864_v2 = vld [vmem:[#allocation30_spill] sm:$0xff]  ;;  %v6866_v56 = vld [vmem:[#allocation32_spill] sm:$0xff] }
 0x161   : > { %3016 = vmatprep.mubr.f32.mxu0 %v6851_v28  ;;  %3105 = vmatprep.mubr.f32.mxu1 %v6851_v28  ;;  %v2562_v60 = vadd.f32 %v6857_v23, %v5323_v0  ;;  %v2651_v61 = vadd.f32 %v6858_v6, %v5323_v0  ;;  %v2566_v29 = vadd.f32 %v6859_v7, %v5311_v33  ;;  %vm552_vm13 = vcmp.gt.s32.totalorder %v5358_v26, 0 }
 0x162   : > { %v2867_v42 = vmax.f32 %v2560_v12, 0.0  ;;  %4401 = vmatprep.subr.bf16.mxu0 %v4400_v53  ;;  %4409 = vmatprep.subr.bf16.mxu1 %v4408_v1  ;;  %v2655_v17 = vadd.f32 %v6860_v11, %v5311_v33  ;;  %v2568_v32 = vadd.f32 %v6861_v14, %v5311_v33  ;;  %v2869_v34 = vmax.f32 %v2649_v5, 0.0 }
 0x163   : > { %v2868_v36 = vmax.f32 %v2562_v60, 0.0  ;;  %v2870_v20 = vmax.f32 %v2651_v61, 0.0  ;;  %4403 = vmatpush1.bf16.msra.mxu0 %v4402_v50  ;;  %4411 = vmatpush1.bf16.msra.mxu1 %v4410_v51  ;;  %v2657_v16 = vadd.f32 %v6862_v38, %v5311_v33  ;;  %v482_v15 = vsel %vm470_vm9, %v5256_v3, %v5258_v52  ;;  %v6874_v38 = vld [vmem:[#allocation35_spill] sm:$0xff] }
 0x164   : > { %v484_v24 = vsel %vm472_vm10, %v5229_v31, %v5350_v41  ;;  %4343 = vmatmul.mubr.msk.f32.gmra.mrb[36].mxu0 %vm2927_vm11, %v5425_v59  ;;  %4347 = vmatmul.mubr.msk.f32.gmra.mrb[36].mxu1 %vm2927_vm11, %v5425_v59  ;;  %v4414_v45 = vpack.c.bf16 %v2867_v42, %v2851_v43  ;;  %v647_v46 = vand.u32 2139095040, %v5382_v39  ;;  %v4422_v48 = vpack.c.bf16 %v2869_v34, %v2853_v9  ;;  %v5460_v31 = vld [vmem:[%s6743_s2 + $0x18] sm:$0xff]  ;;  %v6872_v34 = vld [vmem:[#allocation37_spill] sm:$0xff] }
 0x165   : > { %3022 = vmatprep.mubr.f32.mxu0 %v6851_v28  ;;  %3111 = vmatprep.mubr.f32.mxu1 %v6851_v28  ;;  %v4412_v41 = vpack.c.bf16 %v2868_v36, %v2852_v55  ;;  %v4420_v40 = vpack.c.bf16 %v2870_v20, %v2854_v4  ;;  %v2572_v30 = vadd.f32 %v5176_v37, %v5336_v62  ;;  %v2883_v50 = vmax.f32 %v2566_v29, 0.0  ;;  %v6873_v36 = vld [vmem:[#allocation38_spill] sm:$0xff] }
 0x166   : > { %v2661_v25 = vadd.f32 %v6863_v22, %v5336_v62  ;;  %v2574_v8 = vadd.f32 %v6864_v2, %v5336_v62  ;;  %v2663_v27 = vadd.f32 %v6865_v49, %v5336_v62  ;;  %v2885_v51 = vmax.f32 %v2655_v17, 0.0 }
 0x167   : > { %v2884_v43 = vmax.f32 %v2568_v32, 0.0  ;;  %v2886_v9 = vmax.f32 %v2657_v16, 0.0  ;;  %4413 = vmatprep.subr.bf16.mxu0 %v4412_v41  ;;  %4421 = vmatprep.subr.bf16.mxu1 %v4420_v40  ;;  %v2899_v37 = vmax.f32 %v2572_v30, 0.0  ;;  %v373_v12 = vsel %vm369_vm6, %v6866_v56, %v5280_v35  ;;  %v4581_v41 = vld [vmem:[%s4830_s14 + $0x28] sm:$0x77]  ;;  %v6882_v56 = vld [vmem:[#allocation34_spill] sm:$0xff] }
 0x168   : > { %4344 = vmatmul.mubr.msk.f32.gmra.mrb[38].mxu0 %vm2927_vm11, %v5460_v31  ;;  %4348 = vmatmul.mubr.msk.f32.gmra.mrb[38].mxu1 %vm2927_vm11, %v5460_v31  ;;  %v2901_v53 = vmax.f32 %v2661_v25, 0.0  ;;  %v2900_v1 = vmax.f32 %v2574_v8, 0.0  ;;  %v2902_v55 = vmax.f32 %v2663_v27, 0.0  ;;  %v485_v4 = vsel %vm471_vm12, %v482_v15, %v484_v24 }
 0x169   : > { %v6867_v57 = vor.u32 8388608, %v5236_v44  ;;  %v648_v23 = vshrl.u32 %v647_v46, 23  ;;  %3182 = vmatprep.mubr.f32.mxu0 %v6851_v28  ;;  %3271 = vmatprep.mubr.f32.mxu1 %v6851_v28  ;;  %v4418_v60 = vpack.c.bf16 %v2899_v37, %v2883_v50  ;;  %v481_v35 = vsel %vm471_vm12, %v5294_v21, %v5299_v63  ;;  %v6869_v63 = vld [vmem:[#allocation33_spill] sm:$0xff] }
 0x16a   : > { %v4426_v6 = vpack.c.bf16 %v2901_v53, %v2885_v51  ;;  %v4416_v61 = vpack.c.bf16 %v2900_v1, %v2884_v43  ;;  %v4424_v42 = vpack.c.bf16 %v2902_v55, %v2886_v9  ;;  %v553_v44 = vsel %vm552_vm13, %v5358_v26, 0 }
 0x16b   : > { %v5482_v5 = vshll.u32 %v6867_v57, 8  ;;  %v374_v7 = vsel %vm368_vm7, %v5269_v18, %v373_v12  ;;  %v393_v29 = vadd.s32 1, %v5274_v10  ;;  %v4213_v21 = vadd.s32 4294967169, %v648_v23 }
 0x16c   : > { %4349 = vmatmul.mubr.msk.f32.vlgmr.msra.gmra.mrb[40].mxu0 %vm2927_vm11, %v5379_v58  ;;  %4353 = vmatmul.mubr.msk.f32.vlgmr.msra.gmra.mrb[40].mxu1 %vm2927_vm11, %v5379_v58  ;;  %v6870_v54 = vmov 683565275   ;;  %v555_v32 = vand.u32 31, %v553_v44  ;;  %vm392_vm14 = vc.u32 %v6873_v36, %v6872_v34  ;;  %v475_v20 = vsel %vm473_vm8, %v5258_v52, 2102212464 }
 0x16d   : > { %v5502_v11 = vmul.u32.u64.low %v5482_v5, %v485_v4  ;;  %v5503_v17 = vmul.u32.u64.high %v5482_v5, %v485_v4, %v5502_v11  ;;  %3188 = vmatprep.mubr.f32.mxu0 %v6851_v28  ;;  %3277 = vmatprep.mubr.f32.mxu1 %v6851_v28  ;;  %v454_v18 = vshrl.u32 %v6870_v54, %v6869_v63  ;;  %v390_v16 = vmul.u32 %v6874_v38, %v374_v7 }
 0x16e   : > { %v5510_v26 = vmul.u32.u64.low %v5482_v5, %v481_v35  ;;  %v5511_v14 = vmul.u32.u64.high %v5482_v5, %v481_v35, %v5510_v26  ;;  %4415 = vmatpush1.bf16.msra.mxu0 %v4414_v45  ;;  %4423 = vmatpush1.bf16.msra.mxu1 %v4422_v48  ;;  %v654_v15 = vadd.s32 1, %v4213_v21  ;;  %v394_v24 = vsel %vm392_vm14, %v393_v29, %v5274_v10  ;;  %v6875_v45 = vld [vmem:[#allocation36_spill] sm:$0xff] }
 0x16f   : > { %6868 = vst [vmem:[#allocation12_spill] sm:$0xff] %v5503_v17  ;;  %4417 = vmatprep.subr.bf16.mxu0 %v4416_v61  ;;  %4425 = vmatprep.subr.bf16.mxu1 %v4424_v42  ;;  %v474_v52 = vsel %vm470_vm9, %v454_v18, %v6875_v45  ;;  %v476_v46 = vsel %vm472_vm10, %v5256_v3, %v475_v20  ;;  %v5533_v48 = vsub.s32 32, %v555_v32  ;;  %v5536_v40 = vmul.f32 145.28186, %v4581_v41 }
 0x170   : > { %6871 = vst [vmem:[#allocation13_spill] sm:$0xff] %v5510_v26  ;;  %4350 = vmatmul.mubr.msk.f32.gmra.mrb[42].mxu0 %vm2927_vm11, %v5405_v47  ;;  %4354 = vmatmul.mubr.msk.f32.gmra.mrb[42].mxu1 %vm2927_vm11, %v5405_v47  ;;  %v5542_v10 = vadd.s32 %v394_v24, %v390_v16  ;;  %v477_v30 = vsel %vm471_vm12, %v474_v52, %v476_v46  ;;  %vm655_vm15 = vcmp.gt.s32.totalorder %v654_v15, 0  ;;  %v496_v3 = vadd.s32 1, %v5511_v14 }
 0x171   : > { %3194 = vmatprep.mubr.f32.mxu0 %v6851_v28  ;;  %3283 = vmatprep.mubr.f32.mxu1 %v6851_v28  ;;  %6876 = vst [vmem:[#allocation14_spill] sm:$0xff] %v5536_v40  ;;  %vm495_vm2 = vc.u32 %v5503_v17, %v5510_v26  ;;  %v6877_v22 = vmov 2102212464   ;;  %v6878_v2 = vmov 920167782   ;;  %v5554_v49 = vshrl.u32 %v553_v44, 5 }
 0x172   : > { %4419 = vmatpush1.bf16.msra.mxu0 %v4418_v60  ;;  %4427 = vmatpush1.bf16.msra.mxu1 %v4426_v6  ;;  %v567_v25 = vshll.u32 %v6877_v22, %v555_v32  ;;  %v568_v8 = vshrl.u32 %v6878_v2, %v5533_v48  ;;  %v570_v13 = vshll.u32 %v6878_v2, %v555_v32  ;;  %v6879_v27 = vmov 1326507024  }
 0x173   : > { %v571_v50 = vshrl.u32 %v6879_v27, %v5533_v48  ;;  %v750_v51 = vand.u32 2139095040, %v5536_v40  ;;  %v558_v43 = vshll.u32 %v6870_v54, %v555_v32  ;;  %v6880_v9 = vmov 2475754826  }
 0x174   : > { %4351 = vmatmul.mubr.msk.f32.gmra.mrb[44].mxu0 %vm2927_vm11, %v5425_v59  ;;  %4355 = vmatmul.mubr.msk.f32.gmra.mrb[44].mxu1 %vm2927_vm11, %v5425_v59  ;;  %v561_v37 = vshll.u32 %v6880_v9, %v555_v32  ;;  %v6881_v53 = vmov 2131351028   ;;  %v656_v55 = vsel %vm655_vm15, %v654_v15, 0  ;;  %v6781_v12 = vand.u32 2147483647, %v6882_v56 }
 0x175   : > { %3200 = vmatprep.mubr.f32.mxu0 %v6851_v28  ;;  %3289 = vmatprep.mubr.f32.mxu1 %v6851_v28  ;;  %v564_v1 = vshll.u32 %v6881_v53, %v555_v32  ;;  %v559_v4 = vshrl.u32 %v6880_v9, %v5533_v48  ;;  %v562_v57 = vshrl.u32 %v6881_v53, %v5533_v48  ;;  %v396_v60 = vadd.s32 536870912, %v5542_v10 }
 0x176   : > { %v565_v23 = vshrl.u32 %v6877_v22, %v5533_v48  ;;  %v493_v6 = vmul.u32 %v5482_v5, %v477_v30  ;;  %v569_v61 = vor.u32 %v568_v8, %v567_v25  ;;  %v572_v42 = vor.u32 %v571_v50, %v570_v13 }
 0x177   : > { %vm576_vm3 = vcmp.lt.s32.totalorder %v5554_v49, 4  ;;  %v658_v35 = vand.u32 31, %v656_v55  ;;  %v751_v44 = vshrl.u32 %v750_v51, 23  ;;  %v497_v7 = vsel %vm495_vm2, %v496_v3, %v5511_v14 }
 0x178   : > { %4352 = vmatmul.mubr.msk.f32.gmra.mrb[46].mxu0 %vm2927_vm11, %v5460_v31  ;;  %4356 = vmatmul.mubr.msk.f32.gmra.mrb[46].mxu1 %vm2927_vm11, %v5460_v31  ;;  %v548_v5 = vand.u32 8388607, %v6781_v12  ;;  %v5589_v29 = vor.u32 %v559_v4, %v558_v43  ;;  %v5591_v11 = vor.u32 %v562_v57, %v561_v37  ;;  %v5593_v21 = vor.u32 %v565_v23, %v564_v1 }
 0x179   : > { %3360 = vmatprep.mubr.f32.mxu0 %v6851_v28  ;;  %3449 = vmatprep.mubr.f32.mxu1 %v6851_v28  ;;  %v5597_v63 = vshrl.u32 %v396_v60, 30  ;;  %vm573_vm0 = vcmp.lt.s32.totalorder %v5554_v49, 1  ;;  %vm575_vm1 = vcmp.lt.s32.totalorder %v5554_v49, 3  ;;  %v582_v18 = vsel %vm576_vm3, %v569_v61, 920167782 }
 0x17a   : > { %v5603_v14 = vadd.s32 %v497_v7, %v493_v6  ;;  %v586_v32 = vsel %vm576_vm3, %v572_v42, 1326507024  ;;  %v5607_v20 = vsub.s32 32, %v658_v35  ;;  %v4217_v38 = vadd.s32 4294967169, %v751_v44 }
 0x17b   : > { %6883 = vst [vmem:[#allocation15_spill] sm:$0xff] %v5597_v63  ;;  %v549_v16 = vor.u32 8388608, %v548_v5  ;;  %vm574_vm4 = vcmp.lt.s32.totalorder %v5554_v49, 2  ;;  %v581_v15 = vsel %vm573_vm0, %v5589_v29, %v5591_v11  ;;  %v583_v24 = vsel %vm575_vm1, %v5593_v21, %v582_v18 }
 0x17c   : > { %4357 = vmatmul.mubr.msk.f32.vlgmr.msra.gmra.mrb[48].mxu0 %vm2927_vm11, %v5379_v58  ;;  %4361 = vmatmul.mubr.msk.f32.vlgmr.msra.gmra.mrb[48].mxu1 %vm2927_vm11, %v5379_v58  ;;  %v398_v45 = vshll.u32 %v5597_v63, 30  ;;  %v585_v52 = vsel %vm573_vm0, %v5591_v11, %v5593_v21  ;;  %v587_v46 = vsel %vm575_vm1, %v569_v61, %v586_v32  ;;  %v499_v41 = vadd.s32 536870912, %v5603_v14 }
 0x17d   : > { %3366 = vmatprep.mubr.f32.mxu0 %v6851_v28  ;;  %3455 = vmatprep.mubr.f32.mxu1 %v6851_v28  ;;  %v670_v30 = vshll.u32 %v6877_v22, %v658_v35  ;;  %v671_v3 = vshrl.u32 %v6878_v2, %v5607_v20  ;;  %v757_v25 = vadd.s32 1, %v4217_v38  ;;  %v584_v8 = vsel %vm574_vm4, %v581_v15, %v583_v24 }
 0x17e   : > { %v6780_v13 = vand.u32 2147483647, %v5382_v39  ;;  %v5637_v50 = vshrl.u32 %v656_v55, 5  ;;  %v588_v51 = vsel %vm574_vm4, %v585_v52, %v587_v46  ;;  %v5645_v43 = vshll.u32 %v549_v16, 8 }
 0x17f   : > { %v661_v37 = vshll.u32 %v6870_v54, %v658_v35  ;;  %v664_v1 = vshll.u32 %v6880_v9, %v658_v35  ;;  %v662_v55 = vshrl.u32 %v6880_v9, %v5607_v20  ;;  %v665_v4 = vshrl.u32 %v6881_v53, %v5607_v20 }
 0x180   : > { %4358 = vmatmul.mubr.msk.f32.gmra.mrb[50].mxu0 %vm2927_vm11, %v5405_v47  ;;  %4362 = vmatmul.mubr.msk.f32.gmra.mrb[50].mxu1 %vm2927_vm11, %v5405_v47  ;;  %v667_v57 = vshll.u32 %v6881_v53, %v658_v35  ;;  %v668_v23 = vshrl.u32 %v6877_v22, %v5607_v20  ;;  %v5659_v60 = vsub.s32 %v5542_v10, %v398_v45  ;;  %v5661_v6 = vshrl.u32 %v499_v41, 30 }
 0x181   : > { %3372 = vmatprep.mubr.f32.mxu0 %v6851_v28  ;;  %3461 = vmatprep.mubr.f32.mxu1 %v6851_v28  ;;  %v672_v61 = vor.u32 %v671_v3, %v670_v30  ;;  %vm758_vm5 = vcmp.gt.s32.totalorder %v757_v25, 0  ;;  %v651_v42 = vand.u32 8388607, %v6780_v13  ;;  %v673_v44 = vshll.u32 %v6878_v2, %v658_v35 }
 0x182   : > { %6884 = vst [vmem:[#allocation16_spill] sm:$0xff] %v5659_v60  ;;  %6885 = vst [vmem:[#allocation17_spill] sm:$0xff] %v5661_v6  ;;  %v674_v7 = vshrl.u32 %v6879_v27, %v5607_v20  ;;  %vm679_vm6 = vcmp.lt.s32.totalorder %v5637_v50, 4  ;;  %v5674_v10 = vmul.u32.u64.low %v5645_v43, %v588_v51  ;;  %v5675_v5 = vmul.u32.u64.high %v5645_v43, %v588_v51, %v5674_v10 }
 0x183   : > { %v5678_v18 = vmul.u32.u64.low %v5645_v43, %v584_v8  ;;  %v5679_v32 = vmul.u32.u64.high %v5645_v43, %v584_v8, %v5678_v18  ;;  %v663_v35 = vor.u32 %v662_v55, %v661_v37  ;;  %v666_v38 = vor.u32 %v665_v4, %v664_v1 }
 0x184   : > { %4359 = vmatmul.mubr.msk.f32.gmra.mrb[52].mxu0 %vm2927_vm11, %v5425_v59  ;;  %4363 = vmatmul.mubr.msk.f32.gmra.mrb[52].mxu1 %vm2927_vm11, %v5425_v59  ;;  %6886 = vst [vmem:[#allocation18_spill] sm:$0xff] %v5675_v5  ;;  %v669_v16 = vor.u32 %v668_v23, %v667_v57  ;;  %v759_v15 = vsel %vm758_vm5, %v757_v25, 0  ;;  %v557_v24 = vshrl.u32 %v6870_v54, %v5533_v48  ;;  %vm676_vm7 = vcmp.lt.s32.totalorder %v5637_v50, 1 }
 0x185   : > { %3378 = vmatprep.mubr.f32.mxu0 %v6851_v28  ;;  %3467 = vmatprep.mubr.f32.mxu1 %v6851_v28  ;;  %6887 = vst [vmem:[#allocation19_spill] sm:$0xff] %v5678_v18  ;;  %vm678_vm8 = vcmp.lt.s32.totalorder %v5637_v50, 3  ;;  %v685_v45 = vsel %vm679_vm6, %v672_v61, 920167782  ;;  %v578_v52 = vsel %vm576_vm3, %v5593_v21, 2102212464  ;;  %v675_v41 = vor.u32 %v674_v7, %v673_v44 }
 0x186   : > { %v652_v46 = vor.u32 8388608, %v651_v42  ;;  %v401_v30 = vsub.s32 0, %v5659_v60  ;;  %v761_v3 = vand.u32 31, %v759_v15  ;;  %v501_v25 = vshll.u32 %v5661_v6, 30  ;;  %v4582_v44 = vld [vmem:[%s4830_s14 + $0x30] sm:$0x77] }
 0x187   : > { %vm677_vm9 = vcmp.lt.s32.totalorder %v5637_v50, 2  ;;  %v684_v48 = vsel %vm676_vm7, %v663_v35, %v666_v38  ;;  %v686_v8 = vsel %vm678_vm8, %v669_v16, %v685_v45  ;;  %v577_v21 = vsel %vm573_vm0, %v557_v24, %v5589_v29 }
 0x188   : > { %4360 = vmatmul.mubr.msk.f32.gmra.mrb[54].mxu0 %vm2927_vm11, %v5460_v31  ;;  %4364 = vmatmul.mubr.msk.f32.gmra.mrb[54].mxu1 %vm2927_vm11, %v5460_v31  ;;  %v579_v51 = vsel %vm575_vm1, %v5591_v11, %v578_v52  ;;  %v6779_v37 = vand.u32 2147483647, %v5536_v40  ;;  %v689_v1 = vsel %vm679_vm6, %v675_v41, 1326507024  ;;  %v5709_v55 = vshll.u32 %v652_v46, 8 }
 0x189   : > { %3538 = vmatprep.mubr.f32.mxu0 %v6851_v28  ;;  %3627 = vmatprep.mubr.f32.mxu1 %v6851_v28  ;;  %v5712_v4 = vmin.u32 %v401_v30, %v5659_v60  ;;  %v687_v57 = vsel %vm677_vm9, %v684_v48, %v686_v8  ;;  %v5716_v23 = vsub.s32 32, %v761_v3  ;;  %v5719_v29 = vsub.s32 %v5603_v14, %v501_v25 }
 0x18a   : > { %v5723_v11 = vsel %vm574_vm4, %v577_v21, %v579_v51  ;;  %v599_v42 = vadd.s32 1, %v5679_v32  ;;  %v5727_v7 = vmul.f32 145.28186, %v4582_v44  ;;  %vm598_vm10 = vc.u32 %v5675_v5, %v5678_v18 }
 0x18b   : > { %v688_v10 = vsel %vm676_vm7, %v666_v38, %v669_v16  ;;  %v690_v24 = vsel %vm678_vm8, %v672_v61, %v689_v1  ;;  %v754_v14 = vand.u32 8388607, %v6779_v37  ;;  %v660_v49 = vshrl.u32 %v6870_v54, %v5607_v20 }
 0x18c   : > { %v681_v45 = vsel %vm679_vm6, %v669_v16, 2102212464  ;;  %v5742_v52 = vmul.u32.u64.low %v5709_v55, %v687_v57  ;;  %v5743_v46 = vmul.u32.u64.high %v5709_v55, %v687_v57, %v5742_v52  ;;  %v773_v41 = vshll.u32 %v6877_v22, %v761_v3 }
 0x18d   : > { %v774_v30 = vshrl.u32 %v6878_v2, %v5716_v23  ;;  %v776_v61 = vshll.u32 %v6878_v2, %v761_v3  ;;  %v777_v25 = vshrl.u32 %v6879_v27, %v5716_v23  ;;  %v5754_v20 = vsel %vm677_vm9, %v688_v10, %v690_v24 }
 0x18e   : > { %v5756_v16 = vshrl.u32 %v759_v15, 5  ;;  %v764_v48 = vshll.u32 %v6870_v54, %v761_v3  ;;  %v767_v8 = vshll.u32 %v6880_v9, %v761_v3  ;;  %v765_v21 = vshrl.u32 %v6880_v9, %v5716_v23 }
 0x18f   : > { %v768_v51 = vshrl.u32 %v6881_v53, %v5716_v23  ;;  %v770_v1 = vshll.u32 %v6881_v53, %v761_v3  ;;  %v771_v57 = vshrl.u32 %v6877_v22, %v5716_v23  ;;  %v680_v44 = vsel %vm676_vm7, %v660_v49, %v663_v35 }
 0x190   : > { %v682_v15 = vsel %vm678_vm8, %v666_v38, %v681_v45  ;;  %v755_v10 = vor.u32 8388608, %v754_v14  ;;  %v853_v24 = vand.u32 2139095040, %v5727_v7  ;;  %v775_v12 = vor.u32 %v774_v30, %v773_v41  ;;  %v2731_v14 = vpop.f32.mrb[24].mxu0 }
 0x191   : > { %v778_v40 = vor.u32 %v777_v25, %v776_v61  ;;  %v5779_v3 = vsel %vm598_vm10, %v599_v42, %v5679_v32  ;;  %v5783_v35 = vmul.u32.u64.low %v5709_v55, %v5754_v20  ;;  %v5784_v38 = vmul.u32.u64.high %v5709_v55, %v5754_v20, %v5783_v35  ;;  %v2820_v42 = vpop.f32.mrb[24].mxu1  ;;  %v2733_v30 = vpop.f32.mrb[25].mxu0 }
 0x192   : > { %vm782_vm12 = vcmp.lt.s32.totalorder %v5756_v16, 4  ;;  %v5790_v49 = vsel %vm677_vm9, %v680_v44, %v682_v15  ;;  %v5792_v45 = vor.u32 %v765_v21, %v764_v48  ;;  %v5794_v41 = vor.u32 %v768_v51, %v767_v8  ;;  %v2822_v20 = vpop.f32.mrb[25].mxu1  ;;  %v4583_v8 = vld [vmem:[%s4830_s14 + $0x38] sm:$0x77]  ;;  %v2737_v15 = vpop.f32.mrb[26].mxu0  ;;  %s4196_s14 = sshll.u32 %s4826_s7, 4 }
 0x193   : > { %v5796_v32 = vor.u32 %v771_v57, %v770_v1  ;;  %vm779_vm13 = vcmp.lt.s32.totalorder %v5756_v16, 1  ;;  %vm781_vm14 = vcmp.lt.s32.totalorder %v5756_v16, 3  ;;  %v5800_v61 = vshll.u32 %v755_v10, 8  ;;  %s6613_s5 = scalar_lea.vmem [#allocation5], %s4196_s14 }
 0x194   : > { %v854_v25 = vshrl.u32 %v853_v24, 23  ;;  %v788_v50 = vsel %vm782_vm12, %v775_v12, 920167782  ;;  %v792_v48 = vsel %vm782_vm12, %v778_v40, 1326507024  ;;  %v2732_v51 = vadd.f32 %v2731_v14, %v5301_v19  ;;  %v2826_v14 = vpop.f32.mrb[26].mxu1 }
 0x195   : > { %v5807_v21 = vmul.f32 145.28186, %v4583_v8  ;;  %v5811_v1 = vadd.s32 1, %v5743_v46  ;;  %vm780_vm15 = vcmp.lt.s32.totalorder %v5756_v16, 2  ;;  %v2821_v57 = vadd.f32 %v2820_v42, %v5301_v19  ;;  %v2739_v8 = vpop.f32.mrb[27].mxu0  ;;  %v2828_v39 = vpop.f32.mrb[27].mxu1 }
 0x196   : > { %v2734_v44 = vadd.f32 %v2733_v30, %v5301_v19  ;;  %v787_v40 = vsel %vm779_vm13, %v5792_v45, %v5794_v41  ;;  %v791_v10 = vsel %vm779_vm13, %v5794_v41, %v5796_v32  ;;  %v2823_v24 = vadd.f32 %v2822_v20, %v5301_v19  ;;  %v2743_v26 = vpop.f32.mrb[28].mxu0  ;;  %v2832_v17 = vpop.f32.mrb[28].mxu1  ;;  %s4118_s9 = sshll.u32 %s6613_s5, 4  ;;  %s6698_s9 = int_to_ptr.vmem [resolvable:$true] %s4118_s9 }
 0x197   : > { %v2738_v35 = vadd.f32 %v2737_v15, %v5323_v0  ;;  %v789_v42 = vsel %vm781_vm14, %v5796_v32, %v788_v50  ;;  %v793_v30 = vsel %vm781_vm14, %v775_v12, %v792_v48  ;;  %v2827_v37 = vadd.f32 %v2826_v14, %v5323_v0  ;;  %s4614_s19 = scalar_lea.vmem %s6698_s9, 256  ;;  %p4621_p7 = scmp.lt.s32.totalorder %s6698_s9, %s4619_s12 }
 0x198   : > { %v2740_v13 = vadd.f32 %v2739_v8, %v5323_v0  ;;  %v956_v56 = vand.u32 2139095040, %v5807_v21  ;;  %v2855_v6 = vmax.f32 %v2732_v51, 0.0  ;;  %v2829_v20 = vadd.f32 %v2828_v39, %v5323_v0  ;;  %v2745_v8 = vpop.f32.mrb[29].mxu0  ;;  %v2834_v0 = vpop.f32.mrb[29].mxu1  ;;  %p4615_p6 = scmp.ne.s32.totalorder %s6698_s9, %s4614_s19  ;;  %p4622_p10 = scmp.lt.s32.totalorder %s4620_s20, %s4614_s19 }
 0x199   : > { %v2871_v19 = vmax.f32 %v2738_v35, 0.0  ;;  %v2857_v15 = vmax.f32 %v2821_v57, 0.0  ;;  %v2856_v63 = vmax.f32 %v2734_v44, 0.0  ;;  %v2873_v18 = vmax.f32 %v2827_v37, 0.0 }
 0x19a   : > { %v2872_v5 = vmax.f32 %v2740_v13, 0.0  ;;  %v790_v50 = vsel %vm780_vm15, %v787_v40, %v789_v42  ;;  %v2858_v12 = vmax.f32 %v2823_v24, 0.0  ;;  %v2874_v14 = vmax.f32 %v2829_v20, 0.0  ;;  %p4616_p12 = pnand %p4615_p6, %p6928_p11  ;;  %p4623_p2 = por %p4622_p10, %p4621_p7 }
 0x19b   : > { %v4430_v48 = vpack.c.bf16 %v2871_v19, %v2855_v6  ;;  %v794_v60 = vsel %vm780_vm15, %v791_v10, %v793_v30  ;;  %v4221_v51 = vadd.s32 4294967169, %v854_v25  ;;  %v4438_v35 = vpack.c.bf16 %v2873_v18, %v2857_v15  ;;  %v2749_v25 = vpop.f32.mrb[30].mxu0 }
 0x19c   : > { %v4428_v34 = vpack.c.bf16 %v2872_v5, %v2856_v63  ;;  %v763_v39 = vshrl.u32 %v6870_v54, %v5716_v23  ;;  %v957_v13 = vshrl.u32 %v956_v56, 23  ;;  %v4436_v37 = vpack.c.bf16 %v2874_v14, %v2858_v12  ;;  %v2751_v23 = vpop.f32.mrb[31].mxu0  ;;  %p4617_p13 = pneg %p4616_p12 }
 0x19d   : > { %v2744_v57 = vadd.f32 %v2743_v26, %v5311_v33  ;;  %v5843_v44 = vmul.u32.u64.low %v5800_v61, %v790_v50  ;;  %v5844_v6 = vmul.u32.u64.high %v5800_v61, %v790_v50, %v5843_v44  ;;  %v2833_v40 = vadd.f32 %v2832_v17, %v5311_v33  ;;  %v2838_v26 = vpop.f32.mrb[30].mxu1 }
 0x19e   : > { %v2746_v10 = vadd.f32 %v2745_v8, %v5311_v33  ;;  %4429 = vmatprep.subr.bf16.mxu0 %v4428_v34  ;;  %v5850_v63 = vmul.u32.u64.low %v5800_v61, %v794_v60  ;;  %v5851_v5 = vmul.u32.u64.high %v5800_v61, %v794_v60, %v5850_v63  ;;  %v2835_v56 = vadd.f32 %v2834_v0, %v5311_v33  ;;  %4437 = vmatprep.subr.bf16.mxu1 %v4436_v37  ;;  %v2840_v30 = vpop.f32.mrb[31].mxu1  ;;  %p4624_p4 = pnand %p4623_p2, %p4617_p13 }
 0x19f   : > { %v2750_v18 = vadd.f32 %v2749_v25, %v5336_v62  ;;  %4431 = vmatpush1.bf16.msra.mxu0 %v4430_v48  ;;  %v784_v17 = vsel %vm782_vm12, %v5796_v32, 2102212464  ;;  %v860_v24 = vadd.s32 1, %v4221_v51  ;;  %v2839_v42 = vadd.f32 %v2838_v26, %v5336_v62  ;;  %4439 = vmatpush1.bf16.msra.mxu1 %v4438_v35 }
 0x1a0   : > { %v2752_v34 = vadd.f32 %v2751_v23, %v5336_v62  ;;  %v4225_v60 = vadd.s32 4294967169, %v957_v13  ;;  %v2887_v19 = vmax.f32 %v2744_v57, 0.0  ;;  %v2841_v20 = vadd.f32 %v2840_v30, %v5336_v62 }
 0x1a1   : > { %v2903_v33 = vmax.f32 %v2750_v18, 0.0  ;;  %v2889_v15 = vmax.f32 %v2833_v40, 0.0  ;;  %v2888_v50 = vmax.f32 %v2746_v10, 0.0  ;;  %v2905_v12 = vmax.f32 %v2839_v42, 0.0 }
 0x1a2   : > { %v2904_v48 = vmax.f32 %v2752_v34, 0.0  ;;  %vm701_vm2 = vc.u32 %v5784_v38, %v5742_v52  ;;  %v2890_v32 = vmax.f32 %v2835_v56, 0.0  ;;  %v2906_v8 = vmax.f32 %v2841_v20, 0.0 }
 0x1a3   : > { %v4434_v14 = vpack.c.bf16 %v2903_v33, %v2887_v19  ;;  %v6888_v51 = vmul.u32 %v5645_v43, %v5723_v11  ;;  %vm861_vm3 = vcmp.gt.s32.totalorder %v860_v24, 0  ;;  %v4442_v0 = vpack.c.bf16 %v2905_v12, %v2889_v15 }
 0x1a4   : > { %v4432_v13 = vpack.c.bf16 %v2904_v48, %v2888_v50  ;;  %v699_v62 = vmul.u32 %v5709_v55, %v5790_v49  ;;  %v783_v37 = vsel %vm779_vm13, %v763_v39, %v5792_v45  ;;  %v785_v57 = vsel %vm781_vm14, %v5794_v41, %v784_v17 }
 0x1a5   : > { %v5867_v35 = vadd.s32 %v5779_v3, %v6888_v51  ;;  %v4440_v40 = vpack.c.bf16 %v2906_v8, %v2890_v32  ;;  %v703_v43 = vsel %vm701_vm2, %v5811_v1, %v5743_v46  ;;  %v963_v11 = vadd.s32 1, %v4225_v60 }
 0x1a6   : > { %4433 = vmatprep.subr.bf16.mxu0 %v4432_v13  ;;  %v862_v3 = vsel %vm861_vm3, %v860_v24, 0  ;;  %v403_v10 = vclz %v5712_v4  ;;  %v786_v55 = vsel %vm780_vm15, %v783_v37, %v785_v57  ;;  %v805_v49 = vadd.s32 1, %v5844_v6 }
 0x1a7   : > { %4441 = vmatprep.subr.bf16.mxu1 %v4440_v40  ;;  %4435 = vmatpush1.bf16.msra.mxu0 %v4434_v14  ;;  %v6889_v45 = vsub.s32 0, %v5719_v29  ;;  %v602_v39 = vadd.s32 536870912, %v5867_v35  ;;  %v5887_v46 = vadd.s32 %v703_v43, %v699_v62  ;;  %vm804_vm0 = vc.u32 %v5851_v5, %v5843_v44 }
 0x1a8   : > { %4443 = vmatpush1.bf16.msra.mxu1 %v4442_v0  ;;  %v864_v1 = vand.u32 31, %v862_v3  ;;  %vm964_vm1 = vcmp.gt.s32.totalorder %v963_v11, 0  ;;  %v802_v4 = vmul.u32 %v5800_v61, %v786_v55  ;;  %v4203_v16 = vadd.s32 4294967294, %v403_v10 }
 0x1a9   : > { %v4206_v41 = vmin.u32 %v6889_v45, %v5719_v29  ;;  %v806_v25 = vsel %vm804_vm0, %v805_v49, %v5844_v6  ;;  %v5899_v56 = vshrl.u32 %v602_v39, 30  ;;  %v705_v18 = vadd.s32 536870912, %v5887_v46 }
 0x1aa   : > { %4365 = vmatmul.mubr.msk.f32.vlgmr.msra.gmra.mrb[56].mxu0 %vm2927_vm11, %v5379_v58  ;;  %v965_v26 = vsel %vm964_vm1, %v963_v11, 0  ;;  %v5902_v23 = vsub.s32 32, %v864_v1  ;;  %v5906_v61 = vadd.s32 %v806_v25, %v802_v4  ;;  %vm4204_vm4 = vcmp.lt.s32.totalorder %v4203_v16, 0 }
 0x1ab   : > { %4369 = vmatmul.mubr.msk.f32.vlgmr.msra.gmra.mrb[56].mxu1 %vm2927_vm11, %v5379_v58  ;;  %3544 = vmatprep.mubr.f32.mxu0 %v6851_v28  ;;  %v506_v63 = vclz %v4206_v41  ;;  %v967_v58 = vand.u32 31, %v965_v26  ;;  %v604_v17 = vshll.u32 %v5899_v56, 30  ;;  %v5915_v24 = vshrl.u32 %v705_v18, 30 }
 0x1ac   : > { %3633 = vmatprep.mubr.f32.mxu1 %v6851_v28  ;;  %v850_v42 = vand.u32 2147483647, %v5727_v7  ;;  %v5918_v34 = vshrl.u32 %v862_v3, 5  ;;  %v867_v30 = vshll.u32 %v6870_v54, %v864_v1  ;;  %v877_v60 = vshrl.u32 %v6878_v2, %v5902_v23 }
 0x1ad   : > { %v5912_v6 = vadd.s32 4294967294, %v506_v63  ;;  %v808_v19 = vadd.s32 536870912, %v5906_v61  ;;  %v868_v33 = vshrl.u32 %v6880_v9, %v5902_v23  ;;  %v870_v20 = vshll.u32 %v6880_v9, %v864_v1 }
 0x1ae   : > { %4366 = vmatmul.mubr.msk.f32.gmra.mrb[58].mxu0 %vm2927_vm11, %v5405_v47  ;;  %v871_v15 = vshrl.u32 %v6881_v53, %v5902_v23  ;;  %v873_v50 = vshll.u32 %v6881_v53, %v864_v1  ;;  %v874_v12 = vshrl.u32 %v6877_v22, %v5902_v23  ;;  %v5938_v48 = vsub.s32 32, %v967_v58 }
 0x1af   : > { %4370 = vmatmul.mubr.msk.f32.gmra.mrb[58].mxu1 %vm2927_vm11, %v5405_v47  ;;  %3550 = vmatprep.mubr.f32.mxu0 %v6851_v28  ;;  %v876_v47 = vshll.u32 %v6877_v22, %v864_v1  ;;  %v5942_v32 = vsel %vm4204_vm4, 0, %v4203_v16  ;;  %v5945_v14 = vsub.s32 %v5867_v35, %v604_v17  ;;  %v879_v8 = vshll.u32 %v6878_v2, %v864_v1 }
 0x1b0   : > { %3639 = vmatprep.mubr.f32.mxu1 %v6851_v28  ;;  %v707_v51 = vshll.u32 %v5915_v24, 30  ;;  %v857_v0 = vand.u32 8388607, %v850_v42  ;;  %v953_v62 = vand.u32 2147483647, %v5807_v21  ;;  %vm4208_vm5 = vcmp.lt.s32.totalorder %v5912_v6, 0 }
 0x1b1   : > { %v878_v13 = vor.u32 %v877_v60, %v876_v47  ;;  %v5959_v35 = vor.u32 %v868_v33, %v867_v30  ;;  %v5961_v37 = vor.u32 %v871_v15, %v870_v20  ;;  %vm885_vm6 = vcmp.lt.s32.totalorder %v5918_v34, 4 }
 0x1b2   : > { %4367 = vmatmul.mubr.msk.f32.gmra.mrb[60].mxu0 %vm2927_vm11, %v5425_v59  ;;  %v875_v57 = vor.u32 %v874_v12, %v873_v50  ;;  %vm882_vm7 = vcmp.lt.s32.totalorder %v5918_v34, 1  ;;  %v979_v40 = vshll.u32 %v6877_v22, %v967_v58  ;;  %v980_v43 = vshrl.u32 %v6878_v2, %v5938_v48 }
 0x1b3   : > { %4371 = vmatmul.mubr.msk.f32.gmra.mrb[60].mxu1 %vm2927_vm11, %v5425_v59  ;;  %3556 = vmatprep.mubr.f32.mxu0 %v6851_v28  ;;  %v880_v59 = vshrl.u32 %v6879_v27, %v5902_v23  ;;  %v5970_v3 = vshrl.u32 %v965_v26, 5  ;;  %v982_v10 = vshll.u32 %v6878_v2, %v967_v58  ;;  %v983_v55 = vshrl.u32 %v6879_v27, %v5938_v48 }
 0x1b4   : > { %3645 = vmatprep.mubr.f32.mxu1 %v6851_v28  ;;  %v5957_v28 = vshrl.u32 %v808_v19, 30  ;;  %vm884_vm8 = vcmp.lt.s32.totalorder %v5918_v34, 3  ;;  %v970_v49 = vshll.u32 %v6870_v54, %v967_v58  ;;  %v973_v45 = vshll.u32 %v6880_v9, %v967_v58 }
 0x1b5   : > { %v881_v11 = vor.u32 %v880_v59, %v879_v8  ;;  %v971_v41 = vshrl.u32 %v6880_v9, %v5938_v48  ;;  %v974_v39 = vshrl.u32 %v6881_v53, %v5938_v48  ;;  %v976_v2 = vshll.u32 %v6881_v53, %v967_v58 }
 0x1b6   : > { %4368 = vmatmul.mubr.msk.f32.gmra.mrb[62].mxu0 %vm2927_vm11, %v5460_v31  ;;  %v977_v27 = vshrl.u32 %v6877_v22, %v5938_v48  ;;  %v607_v1 = vsub.s32 0, %v5945_v14  ;;  %v858_v4 = vor.u32 8388608, %v857_v0  ;;  %v960_v16 = vand.u32 8388607, %v953_v62 }
 0x1b7   : > { %4372 = vmatmul.mubr.msk.f32.gmra.mrb[62].mxu1 %vm2927_vm11, %v5460_v31  ;;  %v891_v31 = vsel %vm885_vm6, %v878_v13, 920167782  ;;  %v981_v25 = vor.u32 %v980_v43, %v979_v40  ;;  %v810_v63 = vshll.u32 %v5957_v28, 30  ;;  %v895_v9 = vsel %vm885_vm6, %v881_v11, 1326507024 }
 0x1b8   : > { %v984_v18 = vor.u32 %v983_v55, %v982_v10  ;;  %vm988_vm11 = vcmp.lt.s32.totalorder %v5970_v3, 4  ;;  %v5995_v53 = vsub.s32 %v5887_v46, %v707_v51  ;;  %vm883_vm9 = vcmp.lt.s32.totalorder %v5918_v34, 2 }
 0x1b9   : > { %v890_v22 = vsel %vm882_vm7, %v5959_v35, %v5961_v37  ;;  %v892_v26 = vsel %vm884_vm8, %v875_v57, %v891_v31  ;;  %v894_v58 = vsel %vm882_vm7, %v5961_v37, %v875_v57  ;;  %v972_v17 = vor.u32 %v971_v41, %v970_v49  ;;  %v6890_v41 = vld [vmem:[#allocation37_spill] sm:$0xff] }
 0x1ba   : > { %v975_v30 = vor.u32 %v974_v39, %v973_v45  ;;  %v978_v47 = vor.u32 %v977_v27, %v976_v2  ;;  %v896_v46 = vsel %vm884_vm8, %v878_v13, %v895_v9  ;;  %vm985_vm10 = vcmp.lt.s32.totalorder %v5970_v3, 1 }
 0x1bb   : > { %vm987_vm12 = vcmp.lt.s32.totalorder %v5970_v3, 3  ;;  %v994_v60 = vsel %vm988_vm11, %v981_v25, 920167782  ;;  %v6014_v19 = vsub.s32 %v5906_v61, %v810_v63  ;;  %v6016_v33 = vshll.u32 %v858_v4, 8 }
 0x1bc   : > { %v961_v20 = vor.u32 8388608, %v960_v16  ;;  %v998_v15 = vsel %vm988_vm11, %v984_v18, 1326507024  ;;  %v411_v50 = vsub.s32 4294967266, %v5942_v32  ;;  %v6024_v12 = vsel %vm4208_vm5, 0, %v5912_v6 }
 0x1bd   : > { %v4210_v8 = vmin.u32 %v607_v1, %v5945_v14  ;;  %v893_v59 = vsel %vm883_vm9, %v890_v22, %v892_v26  ;;  %v897_v61 = vsel %vm883_vm9, %v894_v58, %v896_v46  ;;  %vm986_vm13 = vcmp.lt.s32.totalorder %v5970_v3, 2 }
 0x1be   : > { %v993_v51 = vsel %vm985_vm10, %v972_v17, %v975_v30  ;;  %v995_v0 = vsel %vm987_vm12, %v978_v47, %v994_v60  ;;  %v710_v13 = vsub.s32 0, %v5995_v53  ;;  %v866_v6 = vshrl.u32 %v6870_v54, %v5902_v23  ;;  %v6891_v60 = vld [vmem:[#allocation16_spill] sm:$0xff] }
 0x1bf   : > { %v997_v40 = vsel %vm985_vm10, %v975_v30, %v978_v47  ;;  %v999_v43 = vsel %vm987_vm12, %v981_v25, %v998_v15  ;;  %v813_v11 = vsub.s32 0, %v6014_v19  ;;  %v6049_v31 = vshll.u32 %v961_v20, 8 }
 0x1c0   : > { %v6045_v10 = vmul.u32.u64.low %v6016_v33, %v893_v59  ;;  %v6046_v55 = vmul.u32.u64.high %v6016_v33, %v893_v59, %v6045_v10  ;;  %v6052_v49 = vmul.u32.u64.low %v6016_v33, %v897_v61  ;;  %v6053_v45 = vmul.u32.u64.high %v6016_v33, %v897_v61, %v6052_v49  ;;  %v6893_v59 = vld [vmem:[#allocation13_spill] sm:$0xff] }
 0x1c1   : > { %v996_v23 = vsel %vm986_vm13, %v993_v51, %v995_v0  ;;  %v391_v39 = vadd.s32 %v6890_v41, %v6873_v36  ;;  %v407_v2 = vsub.s32 32, %v5942_v32  ;;  %v887_v27 = vsel %vm885_vm6, %v875_v57, 2102212464 }
 0x1c2   : > { %v1000_v1 = vsel %vm986_vm13, %v997_v40, %v999_v43  ;;  %v412_v4 = vadd.s32 127, %v411_v50  ;;  %v514_v16 = vsub.s32 4294967266, %v6024_v12  ;;  %v609_v25 = vclz %v4210_v8  ;;  %v6892_v8 = vld [vmem:[#allocation12_spill] sm:$0xff] }
 0x1c3   : > { %v4214_v63 = vmin.u32 %v710_v13, %v5995_v53  ;;  %v4218_v9 = vmin.u32 %v813_v11, %v6014_v19  ;;  %v886_v36 = vsel %vm882_vm7, %v866_v6, %v5959_v35  ;;  %v888_v57 = vsel %vm884_vm8, %v5961_v37, %v887_v27 }
 0x1c4   : > { %v6071_v18 = vmul.u32.u64.low %v6049_v31, %v996_v23  ;;  %v6072_v22 = vmul.u32.u64.high %v6049_v31, %v996_v23, %v6071_v18  ;;  %v969_v26 = vshrl.u32 %v6870_v54, %v5938_v48  ;;  %v408_v20 = vshll.u32 %v6891_v60, %v5942_v32 }
 0x1c5   : > { %v6081_v58 = vmul.u32.u64.low %v6049_v31, %v1000_v1  ;;  %v6082_v46 = vmul.u32.u64.high %v6049_v31, %v1000_v1, %v6081_v58  ;;  %v409_v35 = vshrl.u32 %v391_v39, %v407_v2  ;;  %v990_v15 = vsel %vm988_vm11, %v978_v47, 2102212464 }
 0x1c6   : > { %v413_v50 = vshll.u32 %v412_v4, 23  ;;  %v494_v61 = vadd.s32 %v6893_v59, %v6892_v8  ;;  %v510_v37 = vsub.s32 32, %v6024_v12  ;;  %v712_v51 = vclz %v4214_v63 }
 0x1c7   : > { %v515_v0 = vadd.s32 127, %v514_v16  ;;  %v4211_v54 = vadd.s32 4294967294, %v609_v25  ;;  %v889_v48 = vsel %vm883_vm9, %v886_v36, %v888_v57  ;;  %v908_v13 = vadd.s32 1, %v6046_v55 }
 0x1c8   : > { %v815_v6 = vclz %v4218_v9  ;;  %vm907_vm14 = vc.u32 %v6053_v45, %v6045_v10  ;;  %v989_v32 = vsel %vm985_vm10, %v969_v26, %v972_v17  ;;  %v991_v47 = vsel %vm987_vm12, %v975_v30, %v990_v15 }
 0x1c9   : > { %v410_v40 = vor.u32 %v409_v35, %v408_v20  ;;  %v414_v43 = vor.u32 4788187, %v413_v50  ;;  %v511_v11 = vshll.u32 %v5719_v29, %v6024_v12  ;;  %v4215_v49 = vadd.s32 4294967294, %v712_v51  ;;  %v6894_v20 = vld [vmem:[#allocation18_spill] sm:$0xff]  ;;  %v6895_v35 = vld [vmem:[#allocation19_spill] sm:$0xff] }
 0x1ca   : > { %v905_v34 = vmul.u32 %v6016_v33, %v889_v48  ;;  %vm4212_vm15 = vcmp.lt.s32.totalorder %v4211_v54, 0  ;;  %v909_v23 = vsel %vm907_vm14, %v908_v13, %v6046_v55  ;;  %v992_v41 = vsel %vm986_vm13, %v989_v32, %v991_v47 }
 0x1cb   : > { %v1011_v39 = vadd.s32 1, %v6072_v22  ;;  %v512_v17 = vshrl.u32 %v494_v61, %v510_v37  ;;  %v516_v2 = vshll.u32 %v515_v0, 23  ;;  %v4219_v27 = vadd.s32 4294967294, %v815_v6  ;;  %v6896_v61 = vld [vmem:[#allocation10_spill] sm:$0xff] }
 0x1cc   : > { %vm1010_vm2 = vc.u32 %v6082_v46, %v6071_v18  ;;  %v612_v30 = vsel %vm4212_vm15, 0, %v4211_v54  ;;  %vm4216_vm3 = vcmp.lt.s32.totalorder %v4215_v49, 0  ;;  %v910_v29 = vadd.s32 %v909_v23, %v905_v34  ;;  %v6906_v23 = vld [vmem:[#allocation34_spill] sm:$0xff] }
 0x1cd   : > { %v1008_v12 = vmul.u32 %v6049_v31, %v992_v41  ;;  %v415_v33 = vand.u32 2147483647, %v414_v43  ;;  %v417_v1 = vcvt.s32.f32 %v410_v40  ;;  %v1012_v55 = vsel %vm1010_vm2, %v1011_v39, %v6072_v22 }
 0x1ce   : > { %v513_v4 = vor.u32 %v512_v17, %v511_v11  ;;  %v517_v3 = vor.u32 4788187, %v516_v2  ;;  %vm4220_vm0 = vcmp.lt.s32.totalorder %v4219_v27, 0  ;;  %v617_v16 = vsub.s32 4294967266, %v612_v30 }
 0x1cf   : > { %v715_v25 = vsel %vm4216_vm3, 0, %v4215_v49  ;;  %v911_v63 = vadd.s32 536870912, %v910_v29  ;;  %v1013_v9 = vadd.s32 %v1012_v55, %v1008_v12  ;;  %v418_v36 = vmul.f32 %v417_v1, %v415_v33 }
 0x1d0   : > { %v818_v57 = vsel %vm4220_vm0, 0, %v4219_v27  ;;  %v518_v26 = vand.u32 2147483647, %v517_v3  ;;  %v520_v58 = vcvt.s32.f32 %v513_v4  ;;  %v720_v60 = vsub.s32 4294967266, %v715_v25 }
 0x1d1   : > { %v597_v15 = vadd.s32 %v6895_v35, %v6894_v20  ;;  %v613_v31 = vsub.s32 32, %v612_v30  ;;  %v618_v50 = vadd.s32 127, %v617_v16  ;;  %v823_v8 = vsub.s32 4294967266, %v818_v57 }
 0x1d2   : > { %v6113_v59 = vshrl.u32 %v911_v63, 30  ;;  %v1014_v22 = vadd.s32 536870912, %v1013_v9  ;;  %vm337_vm1 = vcmp.lt.s32.totalorder %v6896_v61, 0  ;;  %v419_v37 = vxor.u32 2147483648, %v418_v36  ;;  %v6905_v63 = vld [vmem:[#allocation17_spill] sm:$0xff] }
 0x1d3   : > { %v521_v51 = vmul.f32 %v520_v58, %v518_v26  ;;  %v700_v0 = vadd.s32 %v5742_v52, %v5784_v38  ;;  %v716_v54 = vsub.s32 32, %v715_v25  ;;  %v721_v48 = vadd.s32 127, %v720_v60  ;;  %v6900_v52 = vld [vmem:[#allocation15_spill] sm:$0xff] }
 0x1d4   : > { %v614_v13 = vshll.u32 %v5945_v14, %v612_v30  ;;  %v615_v6 = vshrl.u32 %v597_v15, %v613_v31  ;;  %v619_v32 = vshll.u32 %v618_v50, 23  ;;  %v803_v47 = vadd.s32 %v5843_v44, %v5851_v5  ;;  %v6901_v14 = vld [vmem:[#allocation11_spill] sm:$0xff] }
 0x1d5   : > { %v819_v40 = vsub.s32 32, %v818_v57  ;;  %v824_v43 = vadd.s32 127, %v823_v8  ;;  %v913_v11 = vshll.u32 %v6113_v59, 30  ;;  %v6122_v49 = vshrl.u32 %v1014_v22, 30 }
 0x1d6   : > { %v6897_v34 = vand.u32 2147483647, %v6896_v61  ;;  %v421_v38 = vsub.s32 4, %v6900_v52  ;;  %vm440_vm5 = vcmp.lt.s32.totalorder %v6901_v14, 0  ;;  %v420_v41 = vsel %vm337_vm1, %v419_v37, %v418_v36 }
 0x1d7   : > { %v717_v44 = vshll.u32 %v5995_v53, %v715_v25  ;;  %v718_v5 = vshrl.u32 %v700_v0, %v716_v54  ;;  %v722_v39 = vshll.u32 %v721_v48, 23  ;;  %v522_v17 = vxor.u32 2147483648, %v521_v51 }
 0x1d8   : > { %vm6126_vm4 = vcmp.le.f32.partialorder %v6897_v34, 0.7853982  ;;  %v616_v2 = vor.u32 %v615_v6, %v614_v13  ;;  %v620_v27 = vor.u32 4788187, %v619_v32  ;;  %v820_v30 = vshll.u32 %v6014_v19, %v818_v57 }
 0x1d9   : > { %v821_v12 = vshrl.u32 %v803_v47, %v819_v40  ;;  %v825_v33 = vshll.u32 %v824_v43, 23  ;;  %v6136_v1 = vsub.s32 %v910_v29, %v913_v11  ;;  %v1016_v55 = vshll.u32 %v6122_v49, 30 }
 0x1da   : > { %v6902_v4 = vand.u32 2147483647, %v6901_v14  ;;  %v422_v53 = vsel %vm337_vm1, %v421_v38, %v6900_v52  ;;  %v423_v19 = vsel %vm6126_vm4, %v6896_v61, %v420_v41  ;;  %v719_v16 = vor.u32 %v718_v5, %v717_v44 }
 0x1db   : > { %v723_v25 = vor.u32 4788187, %v722_v39  ;;  %v523_v29 = vsel %vm440_vm5, %v522_v17, %v521_v51  ;;  %v524_v36 = vsub.s32 4, %v6905_v63  ;;  %v621_v57 = vand.u32 2147483647, %v620_v27  ;;  %v6910_v39 = vld [vmem:[#allocation8_spill] sm:$0xff] }
 0x1dc   : > { %vm6141_vm6 = vcmp.le.f32.partialorder %v6902_v4, 0.7853982  ;;  %v623_v26 = vcvt.s32.f32 %v616_v2  ;;  %v822_v58 = vor.u32 %v821_v12, %v820_v30  ;;  %v826_v60 = vor.u32 4788187, %v825_v33 }
 0x1dd   : > { %v916_v20 = vsub.s32 0, %v6136_v1  ;;  %v6155_v35 = vsub.s32 %v1013_v9, %v1016_v55  ;;  %v424_v15 = vsel %vm6126_vm4, 0, %v422_v53  ;;  %4553 = vcosq.f32 %v423_v19  ;;  %v6911_v55 = vld [vmem:[#allocation14_spill] sm:$0xff] }
 0x1de   : > { %v724_v31 = vand.u32 2147483647, %v723_v25  ;;  %v726_v50 = vcvt.s32.f32 %v719_v16  ;;  %4555 = vsinq.f32 %v423_v19  ;;  %v525_v8 = vsel %vm440_vm5, %v524_v36, %v6905_v63 }
 0x1df   : > { %v526_v22 = vsel %vm6141_vm6, %v6901_v14, %v523_v29  ;;  %v624_v37 = vmul.f32 %v623_v26, %v621_v57  ;;  %v827_v51 = vand.u32 2147483647, %v826_v60  ;;  %v829_v0 = vcvt.s32.f32 %v822_v58 }
 0x1e0   : > { %v4222_v9 = vmin.u32 %v916_v20, %v6136_v1  ;;  %v1019_v54 = vsub.s32 0, %v6155_v35  ;;  %v1253_v48 = vadd.s32 3, %v424_v15  ;;  %4557 = vcosq.f32 %v526_v22 }
 0x1e1   : > { %v727_v13 = vmul.f32 %v726_v50, %v724_v31  ;;  %v527_v6 = vsel %vm6141_vm6, 0, %v525_v8  ;;  %4559 = vsinq.f32 %v526_v22  ;;  %v625_v32 = vxor.u32 2147483648, %v624_v37 }
 0x1e2   : > { %v830_v47 = vmul.f32 %v829_v0, %v827_v51  ;;  %v918_v40 = vclz %v4222_v9  ;;  %v4226_v43 = vmin.u32 %v1019_v54, %v6155_v35  ;;  %v6170_v11 = vand.u32 3, %v424_v15 }
 0x1e3   : > { %v6172_v34 = vand.u32 3, %v1253_v48  ;;  %vm543_vm7 = vcmp.lt.s32.totalorder %v6906_v23, 0  ;;  %v1357_v52 = vadd.s32 3, %v527_v6  ;;  %v627_v38 = vsub.s32 4, %v5899_v56 }
 0x1e4   : > { %v728_v41 = vxor.u32 2147483648, %v727_v13  ;;  %v6907_v44 = vand.u32 2147483647, %v6906_v23  ;;  %vm646_vm11 = vcmp.lt.s32.totalorder %v6910_v39, 0  ;;  %v626_v2 = vsel %vm543_vm7, %v625_v32, %v624_v37 }
 0x1e5   : > { %v831_v27 = vxor.u32 2147483648, %v830_v47  ;;  %v4223_v30 = vadd.s32 4294967294, %v918_v40  ;;  %v1021_v12 = vclz %v4226_v43  ;;  %vm430_vm9 = vcmp.eq.s32.totalorder %v6170_v11, 0 }
 0x1e6   : > { %vm6178_vm8 = vcmp.le.f32.partialorder %v6907_v44, 0.7853982  ;;  %vm433_vm10 = vcmp.eq.s32.totalorder %v6170_v11, 2  ;;  %vm1255_vm12 = vcmp.lt.s32.totalorder %v6172_v34, 2  ;;  %vm749_vm13 = vcmp.lt.s32.totalorder %v6911_v55, 0 }
 0x1e7   : > { %v4554_v17 = vpop.eup %4553  ;;  %v6189_v4 = vand.u32 3, %v1357_v52  ;;  %v628_v3 = vsel %vm543_vm7, %v627_v38, %v5899_v56  ;;  %v6912_v53 = vand.u32 2147483647, %v6910_v39  ;;  %v729_v16 = vsel %vm646_vm11, %v728_v41, %v727_v13 }
 0x1e8   : > { %v4556_v33 = vpop.eup %4555  ;;  %v434_v25 = vxor.u32 2147483648, %v4554_v17  ;;  %vm1256_vm15 = vcmp.eq.s32.totalorder %v6172_v34, 0  ;;  %vm1259_vm2 = vcmp.eq.s32.totalorder %v6172_v34, 2  ;;  %v629_v29 = vsel %vm6178_vm8, %v6906_v23, %v626_v2 }
 0x1e9   : > { %vm6196_vm14 = vcmp.le.f32.partialorder %v6912_v53, 0.7853982  ;;  %vm429_vm3 = vcmp.lt.s32.totalorder %v6170_v11, 2  ;;  %v6915_v56 = vand.u32 2147483647, %v6911_v55  ;;  %v832_v57 = vsel %vm749_vm13, %v831_v27, %v830_v47 }
 0x1ea   : > { %v6207_v63 = vpop.eup %4557  ;;  %vm4224_vm1 = vcmp.lt.s32.totalorder %v4223_v30, 0  ;;  %v4227_v26 = vadd.s32 4294967294, %v1021_v12  ;;  %vm427_vm4 = vweird.f32 %v6896_v61  ;;  %v431_v60 = vxor.u32 2147483648, %v4556_v33 }
 0x1eb   : > { %vm6212_vm0 = vcmp.le.f32.partialorder %v6915_v56, 0.7853982  ;;  %v6218_v58 = vpop.eup %4559  ;;  %v6221_v20 = vand.u32 3, %v527_v6  ;;  %v630_v15 = vsel %vm6178_vm8, 0, %v628_v3  ;;  %v732_v31 = vsel %vm6196_vm14, %v6910_v39, %v729_v16 }
 0x1ec   : > { %vm1360_vm5 = vcmp.eq.s32.totalorder %v6189_v4, 0  ;;  %4561 = vcosq.f32 %v629_v29  ;;  %v730_v50 = vsub.s32 4, %v5915_v24  ;;  %v833_v8 = vsub.s32 4, %v5957_v28 }
 0x1ed   : > { %vm1363_vm6 = vcmp.eq.s32.totalorder %v6189_v4, 2  ;;  %4563 = vsinq.f32 %v629_v29  ;;  %v835_v22 = vsel %vm6212_vm0, %v6911_v55, %v832_v57  ;;  %v6235_v37 = vsel %vm4224_vm1, 0, %v4223_v30 }
 0x1ee   : > { %v1261_v51 = vsel %vm1259_vm2, %v434_v25, %v4556_v33  ;;  %v1461_v0 = vadd.s32 3, %v630_v15  ;;  %4565 = vcosq.f32 %v732_v31  ;;  %vm4228_vm7 = vcmp.lt.s32.totalorder %v4227_v26, 0 }
 0x1ef   : > { %v1258_v9 = vsel %vm1256_vm15, %v4554_v17, %v431_v60  ;;  %v534_v54 = vxor.u32 2147483648, %v6218_v58  ;;  %v537_v48 = vxor.u32 2147483648, %v6207_v63  ;;  %4567 = vsinq.f32 %v732_v31 }
 0x1f0   : > { %v731_v13 = vsel %vm646_vm11, %v730_v50, %v5915_v24  ;;  %v834_v6 = vsel %vm749_vm13, %v833_v8, %v5957_v28  ;;  %4569 = vcosq.f32 %v835_v22  ;;  %v926_v32 = vsub.s32 4294967266, %v6235_v37 }
 0x1f1   : > { %v435_v47 = vsel %vm433_vm10, %v434_v25, %v4556_v33  ;;  %vm1359_vm8 = vcmp.lt.s32.totalorder %v6189_v4, 2  ;;  %4571 = vsinq.f32 %v835_v22  ;;  %v6253_v40 = vsel %vm4228_vm7, 0, %v4227_v26 }
 0x1f2   : > { %v432_v43 = vsel %vm430_vm9, %v4554_v17, %v431_v60  ;;  %v1262_v24 = vsel %vm1255_vm12, %v1258_v9, %v1261_v51  ;;  %v6259_v52 = vand.u32 3, %v630_v15  ;;  %v6261_v28 = vand.u32 3, %v1461_v0 }
 0x1f3   : > { %v1362_v38 = vsel %vm1360_vm5, %v6207_v63, %v534_v54  ;;  %v1365_v41 = vsel %vm1363_vm6, %v537_v48, %v6218_v58  ;;  %v733_v44 = vsel %vm6196_vm14, 0, %v731_v13  ;;  %v836_v5 = vsel %vm6212_vm0, 0, %v834_v6 }
 0x1f4   : > { %v906_v34 = vadd.s32 %v6045_v10, %v6053_v45  ;;  %v922_v17 = vsub.s32 32, %v6235_v37  ;;  %v927_v2 = vadd.s32 127, %v926_v32  ;;  %v1029_v27 = vsub.s32 4294967266, %v6253_v40 }
 0x1f5   : > { %v6279_v30 = vsel %vm429_vm3, %v432_v43, %v435_v47  ;;  %vm6796_vm11 = vweird.f32 %v6901_v14  ;;  %vm533_vm9 = vcmp.eq.s32.totalorder %v6221_v20, 0  ;;  %vm536_vm10 = vcmp.eq.s32.totalorder %v6221_v20, 2 }
 0x1f6   : > { %v4562_v12 = vpop.eup %4561  ;;  %v6286_v33 = vsel %vm427_vm4, nan, %v1262_v24  ;;  %vm636_vm12 = vcmp.eq.s32.totalorder %v6259_v52, 0  ;;  %vm639_vm13 = vcmp.eq.s32.totalorder %v6259_v52, 2  ;;  %v1565_v10 = vadd.s32 3, %v733_v44 }
 0x1f7   : > { %v4564_v45 = vpop.eup %4563  ;;  %v1366_v11 = vsel %vm1359_vm8, %v1362_v38, %v1365_v41  ;;  %v1669_v3 = vadd.s32 3, %v836_v5  ;;  %v1009_v53 = vadd.s32 %v6071_v18, %v6082_v46  ;;  %v1025_v19 = vsub.s32 32, %v6253_v40 }
 0x1f8   : > { %v6295_v16 = vpop.eup %4565  ;;  %vm1463_vm14 = vcmp.lt.s32.totalorder %v6261_v28, 2  ;;  %v923_v25 = vshll.u32 %v6136_v1, %v6235_v37  ;;  %v924_v29 = vshrl.u32 %v906_v34, %v922_v17  ;;  %v928_v56 = vshll.u32 %v927_v2, 23 }
 0x1f9   : > { %v1030_v36 = vadd.s32 127, %v1029_v27  ;;  %v4568_v57 = vpop.eup %4567  ;;  %v6303_v4 = vsel %vm536_vm10, %v537_v48, %v6218_v58  ;;  %v640_v26 = vxor.u32 2147483648, %v4562_v12  ;;  %vm1464_vm15 = vcmp.eq.s32.totalorder %v6261_v28, 0 }
 0x1fa   : > { %vm1467_vm2 = vcmp.eq.s32.totalorder %v6261_v28, 2  ;;  %v4570_v18 = vpop.eup %4569  ;;  %v535_v46 = vsel %vm533_vm9, %v6207_v63, %v534_v54  ;;  %v6312_v1 = vsel %vm6796_vm11, nan, %v1366_v11  ;;  %v737_v60 = vand.u32 3, %v733_v44 }
 0x1fb   : > { %v1566_v15 = vand.u32 3, %v1565_v10  ;;  %v4572_v31 = vpop.eup %4571  ;;  %v637_v50 = vxor.u32 2147483648, %v4564_v45  ;;  %v1670_v58 = vand.u32 3, %v1669_v3  ;;  %v1026_v8 = vshll.u32 %v6155_v35, %v6253_v40 }
 0x1fc   : > { %v1027_v22 = vshrl.u32 %v1009_v53, %v1025_v19  ;;  %vm532_vm3 = vcmp.lt.s32.totalorder %v6221_v20, 2  ;;  %v641_v37 = vsel %vm639_vm13, %v640_v26, %v4564_v45  ;;  %v925_v51 = vor.u32 %v924_v29, %v923_v25 }
 0x1fd   : > { %v929_v63 = vor.u32 4788187, %v928_v56  ;;  %v1031_v0 = vshll.u32 %v1030_v36, 23  ;;  %vm633_vm0 = vweird.f32 %v6906_v23  ;;  %v638_v9 = vsel %vm636_vm12, %v4562_v12, %v637_v50 }
 0x1fe   : > { %v1469_v54 = vsel %vm1467_vm2, %v640_v26, %v4564_v45  ;;  %v740_v48 = vxor.u32 2147483648, %v4568_v57  ;;  %v743_v35 = vxor.u32 2147483648, %v6295_v16  ;;  %vm1568_vm5 = vcmp.eq.s32.totalorder %v1566_v15, 0 }
 0x1ff   : > { %vm1571_vm6 = vcmp.eq.s32.totalorder %v1566_v15, 2  ;;  %v843_v13 = vxor.u32 2147483648, %v4572_v31  ;;  %v846_v6 = vxor.u32 2147483648, %v4570_v18  ;;  %v840_v32 = vand.u32 3, %v836_v5 }
 0x200   : > { %v1028_v47 = vor.u32 %v1027_v22, %v1026_v8  ;;  %vm1672_vm7 = vcmp.eq.s32.totalorder %v1670_v58, 0  ;;  %vm1675_vm8 = vcmp.eq.s32.totalorder %v1670_v58, 2  ;;  %v1466_v40 = vsel %vm1464_vm15, %v4562_v12, %v637_v50 }
 0x201   : > { %v930_v43 = vand.u32 2147483647, %v929_v63  ;;  %v932_v24 = vcvt.s32.f32 %v925_v51  ;;  %v1032_v38 = vor.u32 4788187, %v1031_v0  ;;  %vm739_vm9 = vcmp.eq.s32.totalorder %v737_v60, 0 }
 0x202   : > { %vm1567_vm10 = vcmp.lt.s32.totalorder %v1566_v15, 2  ;;  %v1570_v41 = vsel %vm1568_vm5, %v6295_v16, %v740_v48  ;;  %v1573_v44 = vsel %vm1571_vm6, %v743_v35, %v4568_v57  ;;  %vm742_vm12 = vcmp.eq.s32.totalorder %v737_v60, 2 }
 0x203   : > { %vm1671_vm13 = vcmp.lt.s32.totalorder %v1670_v58, 2  ;;  %v1674_v34 = vsel %vm1672_vm7, %v4570_v18, %v843_v13  ;;  %v1677_v17 = vsel %vm1675_vm8, %v846_v6, %v4572_v31  ;;  %v1470_v5 = vsel %vm1463_vm14, %v1466_v40, %v1469_v54 }
 0x204   : > { %v1035_v2 = vcvt.s32.f32 %v1028_v47  ;;  %vm842_vm2 = vcmp.eq.s32.totalorder %v840_v32, 0  ;;  %vm845_vm11 = vcmp.eq.s32.totalorder %v840_v32, 2  ;;  %v1033_v27 = vand.u32 2147483647, %v1032_v38  ;;  %v6386_v47 = vpop.permute.xlu0 %2912 }
 0x205   : > { %vm736_vm15 = vweird.f32 %v6910_v39  ;;  %vm738_vm1 = vcmp.lt.s32.totalorder %v737_v60, 2  ;;  %v1574_v12 = vsel %vm1567_vm10, %v1570_v41, %v1573_v44  ;;  %v741_v10 = vsel %vm739_vm9, %v6295_v16, %v740_v48 }
 0x206   : > { %v744_v45 = vsel %vm742_vm12, %v743_v35, %v4568_v57  ;;  %vm839_vm5 = vweird.f32 %v6911_v55  ;;  %v1678_v11 = vsel %vm1671_vm13, %v1674_v34, %v1677_v17  ;;  %v933_v3 = vmul.f32 %v932_v24, %v930_v43  ;;  %v6373_v35 = vpop.permute.xlu1 %2916 }
 0x207   : > { %vm841_vm6 = vcmp.lt.s32.totalorder %v840_v32, 2  ;;  %v844_v53 = vsel %vm842_vm2, %v4570_v18, %v843_v13  ;;  %v847_v28 = vsel %vm845_vm11, %v846_v6, %v4572_v31  ;;  %v437_v19 = vsel %vm427_vm4, nan, %v6279_v30 }
 0x208   : > { %v539_v25 = vsel %vm532_vm3, %v535_v46, %v6303_v4  ;;  %v1575_v29 = vsel %vm736_vm15, nan, %v1574_v12  ;;  %v4262_v16 = vrot.slane %v6286_v33, 9  ;;  %v1471_v56 = vsel %vm633_vm0, nan, %v1470_v5 }
 0x209   : > { %v745_v36 = vsel %vm738_vm1, %v741_v10, %v744_v45  ;;  %v1679_v57 = vsel %vm839_vm5, nan, %v1678_v11  ;;  %v4263_v26 = vrot.slane %v6312_v1, 9  ;;  %vm6918_vm4 = vcmp.lt.s32.totalorder %v6259_v52, 2 }
 0x20a   : > { %v642_v61 = vsel %vm6918_vm4, %v638_v9, %v641_v37  ;;  %v1036_v30 = vmul.f32 %v1035_v2, %v1033_v27  ;;  %v848_v20 = vsel %vm841_vm6, %v844_v53, %v847_v28  ;;  %vm6919_vm11 = vweird.f32 %v6901_v14 }
 0x20b   : > { %v540_v4 = vsel %vm6919_vm11, nan, %v539_v25  ;;  %v934_v18 = vxor.u32 2147483648, %v933_v3  ;;  %v4265_v46 = vrot.slane %v1575_v29, 9  ;;  %v4264_v60 = vrot.slane %v1471_v56, 9 }
 0x20c   : > { %vm852_vm14 = vcmp.lt.s32.totalorder %v5727_v7, 0  ;;  %v746_v15 = vsel %vm736_vm15, nan, %v745_v36  ;;  %v4266_v31 = vrot.slane %v1679_v57, 9  ;;  %v1921_v50 = vmul.f32 %v4262_v16, %v437_v19 }
 0x20d   : > { %v1969_v58 = vrot.slane %v6286_v33, 6  ;;  %v643_v52 = vsel %vm633_vm0, nan, %v642_v61  ;;  %v849_v8 = vsel %vm839_vm5, nan, %v848_v20  ;;  %v1922_v14 = vmul.f32 %v4263_v26, %v540_v4 }
 0x20e   : > { %v1970_v22 = vrot.slane %v6312_v1, 6  ;;  %vm6364_vm3 = vcmp.le.f32.partialorder %v850_v42, 0.7853982  ;;  %v1037_v39 = vxor.u32 2147483648, %v1036_v30  ;;  %v935_v51 = vsel %vm852_vm14, %v934_v18, %v933_v3  ;;  %v6397_v3 = vpop.permute.xlu1 %2920 }
 0x20f   : > { %vm955_vm1 = vcmp.lt.s32.totalorder %v5807_v21, 0  ;;  %v1924_v23 = vmul.f32 %v4265_v46, %v746_v15  ;;  %v1972_v33 = vrot.slane %v1575_v29, 6  ;;  %v1923_v63 = vmul.f32 %v4264_v60, %v643_v52 }
 0x210   : > { %v1971_v55 = vrot.slane %v1471_v56, 6  ;;  %v1925_v0 = vmul.f32 %v4266_v31, %v849_v8  ;;  %v1973_v9 = vrot.slane %v1679_v57, 6  ;;  %v4270_v54 = vrot.slane %v1921_v50, 9  ;;  %v6403_v57 = vpop.permute.xlu0 %2924 }
 0x211   : > { %v1985_v1 = vmul.f32 %v1969_v58, %v437_v19  ;;  %v936_v48 = vsub.s32 4, %v6113_v59  ;;  %v1039_v42 = vsub.s32 4, %v6122_v49  ;;  %v938_v13 = vsel %vm6364_vm3, %v5727_v7, %v935_v51  ;;  %v6924_v51 = vld [vmem:[#allocation9_spill] sm:$0xff] }
 0x212   : > { %vm6380_vm0 = vcmp.le.f32.partialorder %v953_v62, 0.7853982  ;;  %v1038_v32 = vsel %vm955_vm1, %v1037_v39, %v1036_v30  ;;  %v4273_v40 = vrot.slane %v1924_v23, 9  ;;  %v1988_v43 = vmul.f32 %v1972_v33, %v746_v15  ;;  %v6413_v39 = vpop.permute.xlu1 %3717 }
 0x213   : > { %v4271_v24 = vrot.slane %v1922_v14, 9  ;;  %v1986_v38 = vmul.f32 %v1970_v22, %v540_v4  ;;  %v4274_v41 = vrot.slane %v1925_v0, 9  ;;  %v1989_v44 = vmul.f32 %v1973_v9, %v849_v8 }
 0x214   : > { %v4272_v34 = vrot.slane %v1923_v63, 9  ;;  %v1987_v17 = vmul.f32 %v1971_v55, %v643_v52  ;;  %v1961_v5 = vadd.f32 %v4270_v54, %v1921_v50  ;;  %v4278_v2 = vrot.slane %v1985_v1, 10 }
 0x215   : > { %v937_v62 = vsel %vm852_vm14, %v936_v48, %v6113_v59  ;;  %v1040_v27 = vsel %vm955_vm1, %v1039_v42, %v6122_v49  ;;  %4573 = vcosq.f32 %v938_v13  ;;  %v1041_v12 = vsel %vm6380_vm0, %v5807_v21, %v1038_v32 }
 0x216   : > { %v4694_v10 = vmov 1966171168   ;;  %v4012_v11 = vlaneseq  ;;  %v1964_v53 = vadd.f32 %v4273_v40, %v1924_v23  ;;  %v4281_v28 = vrot.slane %v1988_v43, 10 }
 0x217   : > { %v4010_v45 = vunpack.c.l.s4 %v4694_v10  ;;  %v1962_v19 = vadd.f32 %v4271_v24, %v1922_v14  ;;  %v4279_v25 = vrot.slane %v1986_v38, 10  ;;  %v1965_v29 = vadd.f32 %v4274_v41, %v1925_v0  ;;  %v6432_v38 = vpop.permute.xlu0 %3721 }
 0x218   : > { %v4282_v59 = vrot.slane %v1989_v44, 10  ;;  %v1963_v16 = vadd.f32 %v4272_v34, %v1923_v63  ;;  %v4280_v56 = vrot.slane %v1987_v17, 10  ;;  %v2025_v36 = vadd.f32 %v4278_v2, %v1961_v5  ;;  %v6438_v5 = vpop.permute.xlu1 %3725 }
 0x219   : > { %v6401_v49 = vsel %vm6364_vm3, 0, %v937_v62  ;;  %4575 = vsinq.f32 %v938_v13  ;;  %v6407_v26 = vsel %vm6380_vm0, 0, %v1040_v27  ;;  %v4011_v20 = vunpack.c.0.s8 %v4010_v45 }
 0x21a   : > { %4577 = vcosq.f32 %v1041_v12  ;;  %v4013_v4 = vshrl.u32 %v4012_v11, 7  ;;  %v2028_v31 = vadd.f32 %v4281_v28, %v1964_v53  ;;  %v2026_v50 = vadd.f32 %v4279_v25, %v1962_v19 }
 0x21b   : > { %v2029_v8 = vadd.f32 %v4282_v59, %v1965_v29  ;;  %v2027_v14 = vadd.f32 %v4280_v56, %v1963_v16  ;;  %4579 = vsinq.f32 %v1041_v12  ;;  %v6416_v23 = vadd.f32 -0.25, %v6924_v51 }
 0x21c   : > { %v6418_v9 = vadd.f32 -0.25, %v2025_v36  ;;  %v6420_v54 = vsub.s32 %v4011_v20, %v4013_v4  ;;  %v6424_v6 = vadd.f32 -0.25, %v2028_v31  ;;  %v6426_v32 = vadd.f32 -0.25, %v2026_v50 }
 0x21d   : > { %v6434_v41 = vadd.f32 -0.25, %v2029_v8  ;;  %v6436_v44 = vadd.f32 -0.25, %v2027_v14  ;;  %vm942_vm4 = vweird.f32 %v5727_v7  ;;  %vm1045_vm3 = vweird.f32 %v5807_v21 }
 0x21f   : > { %v6428_v40 = vpop.eup %4573 }
 0x223   : > { %v6444_v28 = vpop.eup %4575 }
 0x224   : > { %v6450_v36 = vpop.eup %4577 }
 0x22f   : > { %v3006_v61 = vpop.f32.mrb[32].mxu0  ;;  %v3095_v30 = vpop.f32.mrb[32].mxu1 }
 0x230   : > { %v3007_v18 = vadd.f32 %v3006_v61, %v6386_v47  ;;  %v3096_v46 = vadd.f32 %v3095_v30, %v6386_v47  ;;  %v3008_v60 = vpop.f32.mrb[33].mxu0  ;;  %v3097_v15 = vpop.f32.mrb[33].mxu1 }
 0x231   : > { %v3009_v58 = vadd.f32 %v3008_v60, %v6386_v47  ;;  %v3098_v52 = vadd.f32 %v3097_v15, %v6386_v47 }
 0x232   : > { %v3652_v22 = vmax.f32 %v3007_v18, 0.0  ;;  %v3654_v37 = vmax.f32 %v3096_v46, 0.0 }
 0x233   : > { %v3653_v33 = vmax.f32 %v3009_v58, 0.0  ;;  %v3655_v63 = vmax.f32 %v3098_v52, 0.0  ;;  %v3012_v55 = vpop.f32.mrb[34].mxu0  ;;  %v3101_v0 = vpop.f32.mrb[34].mxu1 }
 0x234   : > { %v3013_v1 = vadd.f32 %v3012_v55, %v6373_v35  ;;  %v3102_v48 = vadd.f32 %v3101_v0, %v6373_v35  ;;  %v3014_v42 = vpop.f32.mrb[35].mxu0  ;;  %v3103_v13 = vpop.f32.mrb[35].mxu1  ;;  %v3732_v2 = vmul.f32 %v6413_v39, %v3652_v22  ;;  %v3734_v62 = vmul.f32 %v6413_v39, %v3654_v37 }
 0x235   : > { %v3015_v43 = vadd.f32 %v3014_v42, %v6373_v35  ;;  %v3104_v24 = vadd.f32 %v3103_v13, %v6373_v35  ;;  %v3733_v11 = vmul.f32 %v6413_v39, %v3653_v33  ;;  %v3735_v53 = vmul.f32 %v6413_v39, %v3655_v63  ;;  %v6456_v22 = vpop.eup %4579  ;;  %v6464_v42 = vpop.permute.xlu1 %3729 }
 0x236   : > { %v3668_v34 = vmax.f32 %v3013_v1, 0.0  ;;  %v3670_v17 = vmax.f32 %v3102_v48, 0.0 }
 0x237   : > { %v3669_v27 = vmax.f32 %v3015_v43, 0.0  ;;  %v3671_v12 = vmax.f32 %v3104_v24, 0.0  ;;  %v3018_v10 = vpop.f32.mrb[36].mxu0  ;;  %v3107_v45 = vpop.f32.mrb[36].mxu1 }
 0x238   : > { %v3019_v19 = vadd.f32 %v3018_v10, %v6397_v3  ;;  %v3108_v25 = vadd.f32 %v3107_v45, %v6397_v3  ;;  %v3020_v29 = vpop.f32.mrb[37].mxu0  ;;  %v3109_v59 = vpop.f32.mrb[37].mxu1  ;;  %v3748_v16 = vmul.f32 %v6432_v38, %v3668_v34  ;;  %v3750_v56 = vmul.f32 %v6432_v38, %v3670_v17 }
 0x239   : > { %v3021_v61 = vadd.f32 %v3020_v29, %v6397_v3  ;;  %v3110_v30 = vadd.f32 %v3109_v59, %v6397_v3  ;;  %v3749_v20 = vmul.f32 %v6432_v38, %v3669_v27  ;;  %v3751_v4 = vmul.f32 %v6432_v38, %v3671_v12 }
 0x23a   : > { %v3684_v18 = vmax.f32 %v3019_v19, 0.0  ;;  %v3686_v46 = vmax.f32 %v3108_v25, 0.0  ;;  %v3796_v60 = vadd.f32 %v3748_v16, %v3732_v2  ;;  %v3814_v15 = vadd.f32 %v3750_v56, %v3734_v62 }
 0x23b   : > { %v3685_v31 = vmax.f32 %v3021_v61, 0.0  ;;  %v3687_v50 = vmax.f32 %v3110_v30, 0.0  ;;  %v3024_v58 = vpop.f32.mrb[38].mxu0  ;;  %v3113_v52 = vpop.f32.mrb[38].mxu1  ;;  %v3805_v8 = vadd.f32 %v3749_v20, %v3733_v11  ;;  %v3823_v14 = vadd.f32 %v3751_v4, %v3735_v53 }
 0x23c   : > { %v3025_v37 = vadd.f32 %v3024_v58, %v6403_v57  ;;  %v3114_v51 = vadd.f32 %v3113_v52, %v6403_v57  ;;  %v3026_v33 = vpop.f32.mrb[39].mxu0  ;;  %v3115_v63 = vpop.f32.mrb[39].mxu1  ;;  %v3764_v55 = vmul.f32 %v6438_v5, %v3684_v18  ;;  %v3766_v0 = vmul.f32 %v6438_v5, %v3686_v46 }
 0x23d   : > { %v3027_v1 = vadd.f32 %v3026_v33, %v6403_v57  ;;  %v3116_v48 = vadd.f32 %v3115_v63, %v6403_v57  ;;  %v3765_v13 = vmul.f32 %v6438_v5, %v3685_v31  ;;  %v3767_v43 = vmul.f32 %v6438_v5, %v3687_v50 }
 0x23e   : > { %v3700_v24 = vmax.f32 %v3025_v37, 0.0  ;;  %v3702_v34 = vmax.f32 %v3114_v51, 0.0  ;;  %v3797_v17 = vadd.f32 %v3796_v60, %v3764_v55  ;;  %v3815_v2 = vadd.f32 %v3814_v15, %v3766_v0 }
 0x23f   : > { %v3701_v62 = vmax.f32 %v3027_v1, 0.0  ;;  %v3703_v27 = vmax.f32 %v3116_v48, 0.0  ;;  %v3184_v12 = vpop.f32.mrb[40].mxu0  ;;  %v3273_v10 = vpop.f32.mrb[40].mxu1  ;;  %v3806_v45 = vadd.f32 %v3805_v8, %v3765_v13  ;;  %v3824_v11 = vadd.f32 %v3823_v14, %v3767_v43 }
 0x240   : > { %v3185_v53 = vadd.f32 %v3184_v12, %v6386_v47  ;;  %v3274_v19 = vadd.f32 %v3273_v10, %v6386_v47  ;;  %v3186_v25 = vpop.f32.mrb[41].mxu0  ;;  %v3275_v29 = vpop.f32.mrb[41].mxu1  ;;  %v3780_v59 = vmul.f32 %v6464_v42, %v3700_v24  ;;  %v3782_v16 = vmul.f32 %v6464_v42, %v3702_v34 }
 0x241   : > { %v3187_v56 = vadd.f32 %v3186_v25, %v6386_v47  ;;  %v3276_v61 = vadd.f32 %v3275_v29, %v6386_v47  ;;  %v3781_v30 = vmul.f32 %v6464_v42, %v3701_v62  ;;  %v3783_v20 = vmul.f32 %v6464_v42, %v3703_v27 }
 0x242   : > { %v3656_v4 = vmax.f32 %v3185_v53, 0.0  ;;  %v3658_v18 = vmax.f32 %v3274_v19, 0.0  ;;  %v6476_v46 = vadd.f32 %v3797_v17, %v3780_v59  ;;  %v6478_v60 = vadd.f32 %v3815_v2, %v3782_v16 }
 0x243   : > { %v3657_v15 = vmax.f32 %v3187_v56, 0.0  ;;  %v3659_v31 = vmax.f32 %v3276_v61, 0.0  ;;  %v3190_v50 = vpop.f32.mrb[42].mxu0  ;;  %v3279_v58 = vpop.f32.mrb[42].mxu1  ;;  %v6480_v52 = vadd.f32 %v3806_v45, %v3781_v30  ;;  %v6482_v8 = vadd.f32 %v3824_v11, %v3783_v20 }
 0x244   : > { %v3736_v14 = vmul.f32 %v6413_v39, %v3656_v4  ;;  %v3738_v37 = vmul.f32 %v6413_v39, %v3658_v18  ;;  %v3191_v51 = vadd.f32 %v3190_v50, %v6373_v35  ;;  %v3280_v33 = vadd.f32 %v3279_v58, %v6373_v35  ;;  %v3192_v63 = vpop.f32.mrb[43].mxu0  ;;  %v3281_v55 = vpop.f32.mrb[43].mxu1 }
 0x245   : > { %v3737_v0 = vmul.f32 %v6413_v39, %v3657_v15  ;;  %v3739_v1 = vmul.f32 %v6413_v39, %v3659_v31  ;;  %v3193_v48 = vadd.f32 %v3192_v63, %v6373_v35  ;;  %v3282_v13 = vadd.f32 %v3281_v55, %v6373_v35 }
 0x246   : > { %v3672_v43 = vmax.f32 %v3191_v51, 0.0  ;;  %v3674_v24 = vmax.f32 %v3280_v33, 0.0  ;;  %v3799_v34 = vrot.slane %v6476_v46, 4 }
 0x247   : > { %v3673_v2 = vmax.f32 %v3193_v48, 0.0  ;;  %v3675_v62 = vmax.f32 %v3282_v13, 0.0  ;;  %v3196_v27 = vpop.f32.mrb[44].mxu0  ;;  %v3285_v12 = vpop.f32.mrb[44].mxu1 }
 0x248   : > { %v3752_v11 = vmul.f32 %v6432_v38, %v3672_v43  ;;  %v3754_v53 = vmul.f32 %v6432_v38, %v3674_v24  ;;  %v3197_v19 = vadd.f32 %v3196_v27, %v6397_v3  ;;  %v3286_v25 = vadd.f32 %v3285_v12, %v6397_v3  ;;  %v3198_v29 = vpop.f32.mrb[45].mxu0  ;;  %v3287_v59 = vpop.f32.mrb[45].mxu1 }
 0x249   : > { %v3753_v16 = vmul.f32 %v6432_v38, %v3673_v2  ;;  %v3755_v56 = vmul.f32 %v6432_v38, %v3675_v62  ;;  %v3199_v61 = vadd.f32 %v3198_v29, %v6397_v3  ;;  %v3288_v30 = vadd.f32 %v3287_v59, %v6397_v3 }
 0x24a   : > { %v3832_v20 = vadd.f32 %v3752_v11, %v3736_v14  ;;  %v3850_v4 = vadd.f32 %v3754_v53, %v3738_v37  ;;  %v3688_v18 = vmax.f32 %v3197_v19, 0.0  ;;  %v3690_v15 = vmax.f32 %v3286_v25, 0.0 }
 0x24b   : > { %v3841_v31 = vadd.f32 %v3753_v16, %v3737_v0  ;;  %v3859_v50 = vadd.f32 %v3755_v56, %v3739_v1  ;;  %v3689_v58 = vmax.f32 %v3199_v61, 0.0  ;;  %v3691_v51 = vmax.f32 %v3288_v30, 0.0  ;;  %v3202_v33 = vpop.f32.mrb[46].mxu0  ;;  %v3291_v63 = vpop.f32.mrb[46].mxu1 }
 0x24c   : > { %v3768_v55 = vmul.f32 %v6438_v5, %v3688_v18  ;;  %v3770_v48 = vmul.f32 %v6438_v5, %v3690_v15  ;;  %v3203_v13 = vadd.f32 %v3202_v33, %v6403_v57  ;;  %v3292_v43 = vadd.f32 %v3291_v63, %v6403_v57  ;;  %v3204_v24 = vpop.f32.mrb[47].mxu0  ;;  %v3293_v2 = vpop.f32.mrb[47].mxu1 }
 0x24d   : > { %v3769_v14 = vmul.f32 %v6438_v5, %v3689_v58  ;;  %v3771_v37 = vmul.f32 %v6438_v5, %v3691_v51  ;;  %v3205_v0 = vadd.f32 %v3204_v24, %v6403_v57  ;;  %v3294_v1 = vadd.f32 %v3293_v2, %v6403_v57 }
 0x24e   : > { %v3833_v62 = vadd.f32 %v3832_v20, %v3768_v55  ;;  %v3851_v27 = vadd.f32 %v3850_v4, %v3770_v48  ;;  %v3704_v12 = vmax.f32 %v3203_v13, 0.0  ;;  %v3706_v11 = vmax.f32 %v3292_v43, 0.0 }
 0x24f   : > { %v3842_v53 = vadd.f32 %v3841_v31, %v3769_v14  ;;  %v3860_v19 = vadd.f32 %v3859_v50, %v3771_v37  ;;  %v3705_v25 = vmax.f32 %v3205_v0, 0.0  ;;  %v3707_v29 = vmax.f32 %v3294_v1, 0.0  ;;  %v3362_v59 = vpop.f32.mrb[48].mxu0  ;;  %v3451_v16 = vpop.f32.mrb[48].mxu1 }
 0x250   : > { %v3784_v56 = vmul.f32 %v6464_v42, %v3704_v12  ;;  %v3786_v61 = vmul.f32 %v6464_v42, %v3706_v11  ;;  %v3363_v30 = vadd.f32 %v3362_v59, %v6386_v47  ;;  %v3452_v18 = vadd.f32 %v3451_v16, %v6386_v47  ;;  %v3364_v15 = vpop.f32.mrb[49].mxu0  ;;  %v3453_v58 = vpop.f32.mrb[49].mxu1 }
 0x251   : > { %v3785_v20 = vmul.f32 %v6464_v42, %v3705_v25  ;;  %v3787_v4 = vmul.f32 %v6464_v42, %v3707_v29  ;;  %v3365_v31 = vadd.f32 %v3364_v15, %v6386_v47  ;;  %v3454_v50 = vadd.f32 %v3453_v58, %v6386_v47 }
 0x252   : > { %v3834_v51 = vadd.f32 %v3833_v62, %v3784_v56  ;;  %v3852_v33 = vadd.f32 %v3851_v27, %v3786_v61  ;;  %v3660_v63 = vmax.f32 %v3363_v30, 0.0  ;;  %v3662_v55 = vmax.f32 %v3452_v18, 0.0 }
 0x253   : > { %v3843_v48 = vadd.f32 %v3842_v53, %v3785_v20  ;;  %v3861_v13 = vadd.f32 %v3860_v19, %v3787_v4  ;;  %v3661_v43 = vmax.f32 %v3365_v31, 0.0  ;;  %v3663_v24 = vmax.f32 %v3454_v50, 0.0  ;;  %v3368_v2 = vpop.f32.mrb[50].mxu0  ;;  %v3457_v14 = vpop.f32.mrb[50].mxu1 }
 0x254   : > { %v3835_v37 = vrot.slane %v3834_v51, 4  ;;  %v3853_v0 = vrot.slane %v3852_v33, 4  ;;  %v3740_v1 = vmul.f32 %v6413_v39, %v3660_v63  ;;  %v3742_v12 = vmul.f32 %v6413_v39, %v3662_v55  ;;  %v3370_v11 = vpop.f32.mrb[51].mxu0  ;;  %v3459_v25 = vpop.f32.mrb[51].mxu1 }
 0x255   : > { %v3844_v29 = vrot.slane %v3843_v48, 4  ;;  %v3862_v59 = vrot.slane %v3861_v13, 4  ;;  %v3741_v62 = vmul.f32 %v6413_v39, %v3661_v43  ;;  %v3743_v27 = vmul.f32 %v6413_v39, %v3663_v24 }
 0x256   : > { %v3836_v53 = vadd.f32 %v3835_v37, %v3834_v51  ;;  %v3854_v19 = vadd.f32 %v3853_v0, %v3852_v33  ;;  %v3369_v16 = vadd.f32 %v3368_v2, %v6373_v35  ;;  %v3458_v56 = vadd.f32 %v3457_v14, %v6373_v35 }
 0x257   : > { %v3845_v61 = vadd.f32 %v3844_v29, %v3843_v48  ;;  %v3863_v30 = vadd.f32 %v3862_v59, %v3861_v13  ;;  %v3371_v18 = vadd.f32 %v3370_v11, %v6373_v35  ;;  %v3460_v15 = vadd.f32 %v3459_v25, %v6373_v35  ;;  %v3374_v58 = vpop.f32.mrb[52].mxu0  ;;  %v3463_v20 = vpop.f32.mrb[52].mxu1 }
 0x258   : > { %v3837_v4 = vrot.slane %v3836_v53, 2  ;;  %v3855_v31 = vrot.slane %v3854_v19, 2  ;;  %v3676_v50 = vmax.f32 %v3369_v16, 0.0  ;;  %v3678_v63 = vmax.f32 %v3458_v56, 0.0  ;;  %v3376_v55 = vpop.f32.mrb[53].mxu0  ;;  %v3465_v43 = vpop.f32.mrb[53].mxu1 }
 0x259   : > { %v3846_v51 = vrot.slane %v3845_v61, 2  ;;  %v3864_v33 = vrot.slane %v3863_v30, 2  ;;  %v3677_v24 = vmax.f32 %v3371_v18, 0.0  ;;  %v3679_v2 = vmax.f32 %v3460_v15, 0.0 }
 0x25a   : > { %v3838_v37 = vadd.f32 %v3837_v4, %v3836_v53  ;;  %v3856_v14 = vadd.f32 %v3855_v31, %v3854_v19  ;;  %v3756_v48 = vmul.f32 %v6432_v38, %v3676_v50  ;;  %v3758_v13 = vmul.f32 %v6432_v38, %v3678_v63 }
 0x25b   : > { %v3847_v0 = vadd.f32 %v3846_v51, %v3845_v61  ;;  %v3865_v11 = vadd.f32 %v3864_v33, %v3863_v30  ;;  %v3757_v25 = vmul.f32 %v6432_v38, %v3677_v24  ;;  %v3759_v29 = vmul.f32 %v6432_v38, %v3679_v2  ;;  %v3380_v59 = vpop.f32.mrb[54].mxu0  ;;  %v3469_v16 = vpop.f32.mrb[54].mxu1 }
 0x25c   : > { %v3839_v56 = vrot.slane %v3838_v37, 1  ;;  %v3857_v45 = vrot.slane %v3856_v14, 1  ;;  %v3868_v10 = vadd.f32 %v3756_v48, %v3740_v1  ;;  %v3886_v17 = vadd.f32 %v3758_v13, %v3742_v12  ;;  %v3382_v18 = vpop.f32.mrb[55].mxu0  ;;  %v3471_v15 = vpop.f32.mrb[55].mxu1 }
 0x25d   : > { %v3848_v53 = vrot.slane %v3847_v0, 1  ;;  %v3866_v19 = vrot.slane %v3865_v11, 1  ;;  %v3877_v4 = vadd.f32 %v3757_v25, %v3741_v62  ;;  %v3895_v31 = vadd.f32 %v3759_v29, %v3743_v27 }
 0x25e   : > { %v6532_v50 = vadd.f32 %v3839_v56, %v3838_v37  ;;  %v6534_v61 = vadd.f32 %v3857_v45, %v3856_v14  ;;  %v3375_v30 = vadd.f32 %v3374_v58, %v6397_v3  ;;  %v3464_v63 = vadd.f32 %v3463_v20, %v6397_v3 }
 0x25f   : > { %v6538_v51 = vadd.f32 %v3848_v53, %v3847_v0  ;;  %v6540_v33 = vadd.f32 %v3866_v19, %v3865_v11  ;;  %v3377_v1 = vadd.f32 %v3376_v55, %v6397_v3  ;;  %v3466_v12 = vadd.f32 %v3465_v43, %v6397_v3 }
 0x260   : > { %v3692_v24 = vmax.f32 %v3375_v30, 0.0  ;;  %v3694_v2 = vmax.f32 %v3464_v63, 0.0  ;;  %v3381_v62 = vadd.f32 %v3380_v59, %v6403_v57  ;;  %v3470_v27 = vadd.f32 %v3469_v16, %v6403_v57 }
 0x261   : > { %v3693_v45 = vmax.f32 %v3377_v1, 0.0  ;;  %v3695_v37 = vmax.f32 %v3466_v12, 0.0  ;;  %v3383_v58 = vadd.f32 %v3382_v18, %v6403_v57  ;;  %v3472_v20 = vadd.f32 %v3471_v15, %v6403_v57 }
 0x262   : > { %v3772_v14 = vmul.f32 %v6438_v5, %v3692_v24  ;;  %v3774_v48 = vmul.f32 %v6438_v5, %v3694_v2  ;;  %v3708_v13 = vmax.f32 %v3381_v62, 0.0  ;;  %v3710_v55 = vmax.f32 %v3470_v27, 0.0 }
 0x263   : > { %v3773_v43 = vmul.f32 %v6438_v5, %v3693_v45  ;;  %v3775_v0 = vmul.f32 %v6438_v5, %v3695_v37  ;;  %v3709_v11 = vmax.f32 %v3383_v58, 0.0  ;;  %v3711_v25 = vmax.f32 %v3472_v20, 0.0 }
 0x264   : > { %v3869_v29 = vadd.f32 %v3868_v10, %v3772_v14  ;;  %v3887_v59 = vadd.f32 %v3886_v17, %v3774_v48  ;;  %v3788_v16 = vmul.f32 %v6464_v42, %v3708_v13  ;;  %v3790_v56 = vmul.f32 %v6464_v42, %v3710_v55 }
 0x265   : > { %v3878_v18 = vadd.f32 %v3877_v4, %v3773_v43  ;;  %v3896_v15 = vadd.f32 %v3895_v31, %v3775_v0  ;;  %v3789_v53 = vmul.f32 %v6464_v42, %v3709_v11  ;;  %v3791_v19 = vmul.f32 %v6464_v42, %v3711_v25 }
 0x266   : > { %v3870_v30 = vadd.f32 %v3869_v29, %v3788_v16  ;;  %v3888_v63 = vadd.f32 %v3887_v59, %v3790_v56  ;;  %v3800_v1 = vadd.f32 %v3799_v34, %v6476_v46  ;;  %v6925_v10 = vrot.slane %v6480_v52, 4  ;;  %v6568_v16 = vpop.permute.xlu0 %3942 }
 0x267   : > { %v3879_v12 = vadd.f32 %v3878_v18, %v3789_v53  ;;  %v3897_v24 = vadd.f32 %v3896_v15, %v3791_v19  ;;  %v6926_v4 = vrot.slane %v6478_v60, 4  ;;  %v6927_v2 = vrot.slane %v6482_v8, 4 }
 0x268   : > { %v3809_v17 = vadd.f32 %v6925_v10, %v6480_v52  ;;  %v3871_v27 = vrot.slane %v3870_v30, 4  ;;  %v3889_v45 = vrot.slane %v3888_v63, 4  ;;  %v3801_v37 = vrot.slane %v3800_v1, 2 }
 0x269   : > { %v3818_v31 = vadd.f32 %v6926_v4, %v6478_v60  ;;  %v3827_v62 = vadd.f32 %v6927_v2, %v6482_v8  ;;  %v3880_v20 = vrot.slane %v3879_v12, 4  ;;  %v3898_v46 = vrot.slane %v3897_v24, 4 }
 0x26a   : > { %v3810_v58 = vrot.slane %v3809_v17, 2  ;;  %v3872_v48 = vadd.f32 %v3871_v27, %v3870_v30  ;;  %v3890_v52 = vadd.f32 %v3889_v45, %v3888_v63  ;;  %v3802_v13 = vadd.f32 %v3801_v37, %v3800_v1 }
 0x26b   : > { %v3819_v34 = vrot.slane %v3818_v31, 2  ;;  %v3828_v14 = vrot.slane %v3827_v62, 2  ;;  %v3881_v43 = vadd.f32 %v3880_v20, %v3879_v12  ;;  %v3899_v0 = vadd.f32 %v3898_v46, %v3897_v24 }
 0x26c   : > { %v3811_v55 = vadd.f32 %v3810_v58, %v3809_v17  ;;  %v3873_v25 = vrot.slane %v3872_v48, 2  ;;  %v3891_v29 = vrot.slane %v3890_v52, 2  ;;  %v3803_v59 = vrot.slane %v3802_v13, 1 }
 0x26d   : > { %v3820_v11 = vadd.f32 %v3819_v34, %v3818_v31  ;;  %v3829_v60 = vadd.f32 %v3828_v14, %v3827_v62  ;;  %v3882_v56 = vrot.slane %v3881_v43, 2  ;;  %v3900_v18 = vrot.slane %v3899_v0, 2 }
 0x26e   : > { %v3812_v8 = vrot.slane %v3811_v55, 1  ;;  %v3874_v19 = vadd.f32 %v3873_v25, %v3872_v48  ;;  %v3892_v10 = vadd.f32 %v3891_v29, %v3890_v52  ;;  %v3804_v30 = vadd.f32 %v3803_v59, %v3802_v13 }
 0x26f   : > { %v3821_v15 = vrot.slane %v3820_v11, 1  ;;  %v3830_v53 = vrot.slane %v3829_v60, 1  ;;  %v3883_v1 = vadd.f32 %v3882_v56, %v3881_v43  ;;  %v3901_v17 = vadd.f32 %v3900_v18, %v3899_v0 }
 0x270   : > { %v3813_v63 = vadd.f32 %v3812_v8, %v3811_v55  ;;  %v3875_v4 = vrot.slane %v3874_v19, 1  ;;  %v3893_v31 = vrot.slane %v3892_v10, 1  ;;  %v3945_v2 = vadd.f32 %v6568_v16, %v3804_v30 }
 0x271   : > { %v3822_v12 = vadd.f32 %v3821_v15, %v3820_v11  ;;  %v3831_v24 = vadd.f32 %v3830_v53, %v3829_v60  ;;  %v3884_v27 = vrot.slane %v3883_v1, 1  ;;  %v3902_v45 = vrot.slane %v3901_v17, 1 }
 0x272   : > { %v3946_v62 = vadd.f32 %v6568_v16, %v3813_v63  ;;  %v3876_v20 = vadd.f32 %v3875_v4, %v3874_v19  ;;  %v3894_v46 = vadd.f32 %v3893_v31, %v3892_v10  ;;  %v3949_v34 = vadd.f32 %v6568_v16, %v6532_v50 }
 0x273   : > { %v3947_v37 = vadd.f32 %v6568_v16, %v3822_v12  ;;  %v3948_v58 = vadd.f32 %v6568_v16, %v3831_v24  ;;  %v3950_v14 = vadd.f32 %v6568_v16, %v6538_v51  ;;  %v3885_v48 = vadd.f32 %v3884_v27, %v3883_v1 }
 0x274   : > { %v3903_v52 = vadd.f32 %v3902_v45, %v3901_v17  ;;  %v3951_v13 = vadd.f32 %v6568_v16, %v6534_v61  ;;  %v3952_v55 = vadd.f32 %v6568_v16, %v6540_v33  ;;  %v3953_v43 = vadd.f32 %v6568_v16, %v3876_v20 }
 0x275   : > { %v3955_v0 = vadd.f32 %v6568_v16, %v3894_v46  ;;  %v3977_v11 = vcombine.low %v3945_v2, %v3946_v62  ;;  %v3978_v60 = vcombine.low %v3947_v37, %v3948_v58  ;;  %v3954_v25 = vadd.f32 %v6568_v16, %v3885_v48 }
 0x276   : > { %v3956_v50 = vadd.f32 %v6568_v16, %v3903_v52  ;;  %v3979_v29 = vcombine.low %v3949_v34, %v3950_v14  ;;  %v3980_v51 = vcombine.low %v3951_v13, %v3952_v55  ;;  %v1773_v59 = vadd.s32 3, %v6401_v49 }
 0x277   : > { %v3993_v61 = vmax.f32 %v6416_v23, %v3977_v11  ;;  %v3994_v8 = vmax.f32 %v6418_v9, %v3978_v60  ;;  %v3981_v33 = vcombine.low %v3953_v43, %v3954_v25  ;;  %v1877_v53 = vadd.s32 3, %v6407_v26 }
 0x278   : > { %v3982_v56 = vcombine.low %v3955_v0, %v3956_v50  ;;  %v3995_v18 = vmax.f32 %v6426_v32, %v3979_v29  ;;  %v3996_v15 = vmax.f32 %v6436_v44, %v3980_v51  ;;  %v1774_v1 = vand.u32 3, %v1773_v59 }
 0x279   : > { %v4015_v19 = vrot.slane %v3993_v61, %v6420_v54  ;;  %v4022_v10 = vrot.slane %v3994_v8, %v6420_v54  ;;  %v3997_v30 = vmax.f32 %v6424_v6, %v3981_v33  ;;  %v943_v24 = vand.u32 3, %v6401_v49 }
 0x27a   : > { %v3998_v63 = vmax.f32 %v6434_v41, %v3982_v56  ;;  %v4029_v23 = vrot.slane %v3995_v18, %v6420_v54  ;;  %v4036_v9 = vrot.slane %v3996_v15, %v6420_v54  ;;  %v1878_v4 = vand.u32 3, %v1877_v53 }
 0x27b   : > { %v4037_v17 = vcombine.low %v4015_v19, %v4022_v10  ;;  %v4060_v44 = vrot.slane %v3997_v30, %v6420_v54  ;;  %v946_v31 = vxor.u32 2147483648, %v6444_v28  ;;  %v949_v6 = vxor.u32 2147483648, %v6428_v40 }
 0x27c   : > { %v4038_v32 = vcombine.low %v4029_v23, %v4036_v9  ;;  %v4067_v12 = vrot.slane %v3998_v63, %v6420_v54  ;;  %v1046_v27 = vand.u32 3, %v6407_v26  ;;  %vm1776_vm7 = vcmp.eq.s32.totalorder %v1774_v1, 0 }
 0x27d   : > { %v4045_v41 = vrot.slane %v4037_v17, %v6420_v54  ;;  %vm1779_vm8 = vcmp.eq.s32.totalorder %v1774_v1, 2  ;;  %v1049_v45 = vxor.u32 2147483648, %v6456_v22  ;;  %v1052_v37 = vxor.u32 2147483648, %v6450_v36  ;;  %v3540_v48 = vpop.f32.mrb[56].mxu0 }
 0x27e   : > { %v4052_v2 = vrot.slane %v4038_v32, %v6420_v54  ;;  %v6606_v62 = vcombine.low %v4060_v44, %v4067_v12  ;;  %vm1880_vm9 = vcmp.eq.s32.totalorder %v1878_v4, 0  ;;  %vm1883_vm10 = vcmp.eq.s32.totalorder %v1878_v4, 2  ;;  %v3629_v0 = vpop.f32.mrb[56].mxu1  ;;  %v3542_v11 = vpop.f32.mrb[57].mxu0 }
 0x27f   : > { %vm945_vm12 = vcmp.eq.s32.totalorder %v943_v24, 0  ;;  %vm1775_vm13 = vcmp.lt.s32.totalorder %v1774_v1, 2  ;;  %v1778_v58 = vsel %vm1776_vm7, %v6428_v40, %v946_v31  ;;  %v1781_v20 = vsel %vm1779_vm8, %v949_v6, %v6444_v28  ;;  %v3631_v50 = vpop.f32.mrb[57].mxu1 }
 0x280   : > { %v4053_v49 = vcombine.low %v4045_v41, %v4052_v2  ;;  %vm948_vm2 = vcmp.eq.s32.totalorder %v943_v24, 2  ;;  %vm1048_vm15 = vcmp.eq.s32.totalorder %v1046_v27, 0  ;;  %vm1051_vm5 = vcmp.eq.s32.totalorder %v1046_v27, 2 }
 0x281   : > { %vm1879_vm6 = vcmp.lt.s32.totalorder %v1878_v4, 2  ;;  %v1882_v26 = vsel %vm1880_vm9, %v6450_v36, %v1049_v45  ;;  %v1885_v46 = vsel %vm1883_vm10, %v1052_v37, %v6456_v22  ;;  %vm944_vm11 = vcmp.lt.s32.totalorder %v943_v24, 2  ;;  %v3546_v8 = vpop.f32.mrb[58].mxu0 }
 0x282   : > { %4101 = vst [vmem:[%s6613_s5] sm:$0xff] %v4053_v49  ;;  %v947_v34 = vsel %vm945_vm12, %v6428_v40, %v946_v31  ;;  %v1782_v14 = vsel %vm1775_vm13, %v1778_v58, %v1781_v20  ;;  %v950_v52 = vsel %vm948_vm2, %v949_v6, %v6444_v28  ;;  %vm1047_vm14 = vcmp.lt.s32.totalorder %v1046_v27, 2  ;;  %v3635_v15 = vpop.f32.mrb[58].mxu1  ;;  %v3548_v53 = vpop.f32.mrb[59].mxu0 }
 0x283   : > { %v1050_v13 = vsel %vm1048_vm15, %v6450_v36, %v1049_v45  ;;  %v1053_v55 = vsel %vm1051_vm5, %v1052_v37, %v6456_v22  ;;  %v3541_v43 = vadd.f32 %v3540_v48, %v6386_v47  ;;  %v1886_v60 = vsel %vm1879_vm6, %v1882_v26, %v1885_v46  ;;  %v3637_v30 = vpop.f32.mrb[59].mxu1 }
 0x284   : > { %v3630_v25 = vadd.f32 %v3629_v0, %v6386_v47  ;;  %v3543_v40 = vadd.f32 %v3542_v11, %v6386_v47  ;;  %v6630_v28 = vsel %vm942_vm4, nan, %v1782_v14  ;;  %v3632_v22 = vadd.f32 %v3631_v50, %v6386_v47 }
 0x285   : > { %v3664_v36 = vmax.f32 %v3541_v43, 0.0  ;;  %v951_v29 = vsel %vm944_vm11, %v947_v34, %v950_v52  ;;  %v1054_v51 = vsel %vm1047_vm14, %v1050_v13, %v1053_v55  ;;  %v6636_v33 = vsel %vm1045_vm3, nan, %v1886_v60  ;;  %v3552_v7 = vpop.f32.mrb[60].mxu0 }
 0x286   : > { %v3666_v59 = vmax.f32 %v3630_v25, 0.0  ;;  %v3665_v61 = vmax.f32 %v3543_v40, 0.0  ;;  %v3667_v56 = vmax.f32 %v3632_v22, 0.0  ;;  %v3547_v18 = vadd.f32 %v3546_v8, %v6373_v35  ;;  %v3641_v2 = vpop.f32.mrb[60].mxu1  ;;  %v3554_v27 = vpop.f32.mrb[61].mxu0 }
 0x287   : > { %v4267_v19 = vrot.slane %v6630_v28, 9  ;;  %v3636_v10 = vadd.f32 %v3635_v15, %v6373_v35  ;;  %v3549_v47 = vadd.f32 %v3548_v53, %v6373_v35  ;;  %v6644_v63 = vsel %vm942_vm4, nan, %v951_v29  ;;  %v3643_v58 = vpop.f32.mrb[61].mxu1 }
 0x288   : > { %v6648_v23 = vsel %vm1045_vm3, nan, %v1054_v51  ;;  %v3744_v9 = vmul.f32 %v6413_v39, %v3664_v36  ;;  %v3680_v1 = vmax.f32 %v3547_v18, 0.0  ;;  %v3638_v17 = vadd.f32 %v3637_v30, %v6373_v35 }
 0x289   : > { %v4268_v32 = vrot.slane %v6636_v33, 9  ;;  %v3746_v44 = vmul.f32 %v6413_v39, %v3666_v59  ;;  %v3745_v12 = vmul.f32 %v6413_v39, %v3665_v61  ;;  %v3682_v24 = vmax.f32 %v3636_v10, 0.0  ;;  %v3558_v13 = vpop.f32.mrb[62].mxu0 }
 0x28a   : > { %v3681_v4 = vmax.f32 %v3549_v47, 0.0  ;;  %v3747_v31 = vmul.f32 %v6413_v39, %v3667_v56  ;;  %v3760_v21 = vmul.f32 %v6432_v38, %v3680_v1  ;;  %v3683_v6 = vmax.f32 %v3638_v17, 0.0  ;;  %v3647_v60 = vpop.f32.mrb[62].mxu1  ;;  %v3560_v25 = vpop.f32.mrb[63].mxu0 }
 0x28b   : > { %v3553_v41 = vadd.f32 %v3552_v7, %v6397_v3  ;;  %v3762_v35 = vmul.f32 %v6432_v38, %v3682_v24  ;;  %v3642_v37 = vadd.f32 %v3641_v2, %v6397_v3  ;;  %v3555_v49 = vadd.f32 %v3554_v27, %v6397_v3  ;;  %v3649_v36 = vpop.f32.mrb[63].mxu1 }
 0x28c   : > { %v3761_v45 = vmul.f32 %v6432_v38, %v3681_v4  ;;  %v3904_v20 = vadd.f32 %v3760_v21, %v3744_v9  ;;  %v3763_v26 = vmul.f32 %v6432_v38, %v3683_v6  ;;  %v3644_v46 = vadd.f32 %v3643_v58, %v6397_v3 }
 0x28d   : > { %v3696_v39 = vmax.f32 %v3553_v41, 0.0  ;;  %v3922_v34 = vadd.f32 %v3762_v35, %v3746_v44  ;;  %v3698_v48 = vmax.f32 %v3642_v37, 0.0  ;;  %v3697_v52 = vmax.f32 %v3555_v49, 0.0 }
 0x28e   : > { %v3913_v14 = vadd.f32 %v3761_v45, %v3745_v12  ;;  %v3931_v55 = vadd.f32 %v3763_v26, %v3747_v31  ;;  %v3699_v0 = vmax.f32 %v3644_v46, 0.0  ;;  %v3559_v11 = vadd.f32 %v3558_v13, %v6403_v57 }
 0x28f   : > { %v3776_v43 = vmul.f32 %v6438_v5, %v3696_v39  ;;  %v3778_v40 = vmul.f32 %v6438_v5, %v3698_v48  ;;  %v3777_v38 = vmul.f32 %v6438_v5, %v3697_v52  ;;  %v3648_v50 = vadd.f32 %v3647_v60, %v6403_v57 }
 0x290   : > { %v3561_v3 = vadd.f32 %v3560_v25, %v6403_v57  ;;  %v3779_v29 = vmul.f32 %v6438_v5, %v3699_v0  ;;  %v3712_v51 = vmax.f32 %v3559_v11, 0.0  ;;  %v3650_v59 = vadd.f32 %v3649_v36, %v6403_v57 }
 0x291   : > { %v3905_v22 = vadd.f32 %v3904_v20, %v3776_v43  ;;  %v3923_v61 = vadd.f32 %v3922_v34, %v3778_v40  ;;  %v3914_v8 = vadd.f32 %v3913_v14, %v3777_v38  ;;  %v3714_v56 = vmax.f32 %v3648_v50, 0.0 }
 0x292   : > { %v3713_v18 = vmax.f32 %v3561_v3, 0.0  ;;  %v3932_v15 = vadd.f32 %v3931_v55, %v3779_v29  ;;  %v3792_v53 = vmul.f32 %v6464_v42, %v3712_v51  ;;  %v3715_v10 = vmax.f32 %v3650_v59, 0.0 }
 0x293   : > { %v3794_v47 = vmul.f32 %v6464_v42, %v3714_v56  ;;  %v1926_v30 = vmul.f32 %v4267_v19, %v6644_v63  ;;  %v1974_v9 = vrot.slane %v6630_v28, 6  ;;  %v1927_v17 = vmul.f32 %v4268_v32, %v6648_v23 }
 0x294   : > { %v3793_v1 = vmul.f32 %v6464_v42, %v3713_v18  ;;  %v3906_v5 = vadd.f32 %v3905_v22, %v3792_v53  ;;  %v1975_v57 = vrot.slane %v6636_v33, 6  ;;  %v3795_v44 = vmul.f32 %v6464_v42, %v3715_v10 }
 0x295   : > { %v3924_v12 = vadd.f32 %v3923_v61, %v3794_v47  ;;  %v4275_v21 = vrot.slane %v1926_v30, 9  ;;  %v1990_v6 = vmul.f32 %v1974_v9, %v6644_v63  ;;  %v4276_v28 = vrot.slane %v1927_v17, 9 }
 0x296   : > { %v3915_v24 = vadd.f32 %v3914_v8, %v3793_v1  ;;  %v3907_v4 = vrot.slane %v3906_v5, 4  ;;  %v3933_v7 = vadd.f32 %v3932_v15, %v3795_v44  ;;  %v1991_v2 = vmul.f32 %v1975_v57, %v6648_v23 }
 0x297   : > { %v3925_v31 = vrot.slane %v3924_v12, 4  ;;  %v1966_v42 = vadd.f32 %v4275_v21, %v1926_v30  ;;  %v4283_v49 = vrot.slane %v1990_v6, 10  ;;  %v1967_v26 = vadd.f32 %v4276_v28, %v1927_v17 }
 0x298   : > { %v3916_v19 = vrot.slane %v3915_v24, 4  ;;  %v3908_v41 = vadd.f32 %v3907_v4, %v3906_v5  ;;  %v3934_v27 = vrot.slane %v3933_v7, 4  ;;  %v4284_v39 = vrot.slane %v1991_v2, 10 }
 0x299   : > { %v3926_v35 = vadd.f32 %v3925_v31, %v3924_v12  ;;  %v2030_v13 = vadd.f32 %v4283_v49, %v1966_v42  ;;  %v4090_v15 = vrot.slane %v6606_v62, %v6420_v54 }
 0x29a   : > { %v3917_v32 = vadd.f32 %v3916_v19, %v3915_v24  ;;  %v3909_v45 = vrot.slane %v3908_v41, 2  ;;  %v3935_v33 = vadd.f32 %v3934_v27, %v3933_v7  ;;  %v2031_v43 = vadd.f32 %v4284_v39, %v1967_v26 }
 0x29b   : > { %v3927_v37 = vrot.slane %v3926_v35, 2  ;;  %v4291_v50 = vadd.f32 -0.25, %v2030_v13 }
 0x29c   : > { %v3918_v58 = vrot.slane %v3917_v32, 2  ;;  %v3910_v20 = vadd.f32 %v3909_v45, %v3908_v41  ;;  %v3936_v46 = vrot.slane %v3935_v33, 2  ;;  %v4292_v36 = vadd.f32 -0.25, %v2031_v43 }
 0x29d   : > { %v3928_v34 = vadd.f32 %v3927_v37, %v3926_v35 }
 0x29e   : > { %v3919_v63 = vadd.f32 %v3918_v58, %v3917_v32  ;;  %v3911_v14 = vrot.slane %v3910_v20, 1  ;;  %v3937_v48 = vadd.f32 %v3936_v46, %v3935_v33 }
 0x29f   : > { %v3929_v52 = vrot.slane %v3928_v34, 1 }
 0x2a0   : > { %v3920_v23 = vrot.slane %v3919_v63, 1  ;;  %v3912_v55 = vadd.f32 %v3911_v14, %v3910_v20  ;;  %v3938_v0 = vrot.slane %v3937_v48, 1 }
 0x2a1   : > { %v3930_v11 = vadd.f32 %v3929_v52, %v3928_v34 }
 0x2a2   : > { %v3921_v60 = vadd.f32 %v3920_v23, %v3919_v63  ;;  %v3957_v25 = vadd.f32 %v6568_v16, %v3912_v55  ;;  %v3939_v40 = vadd.f32 %v3938_v0, %v3937_v48 }
 0x2a3   : > { %v3959_v38 = vadd.f32 %v6568_v16, %v3930_v11 }
 0x2a4   : > { %v3958_v3 = vadd.f32 %v6568_v16, %v3921_v60  ;;  %v3960_v22 = vadd.f32 %v6568_v16, %v3939_v40 }
 0x2a6   : > { %v3983_v29 = vcombine.low %v3957_v25, %v3958_v3  ;;  %v3984_v51 = vcombine.low %v3959_v38, %v3960_v22 }
 0x2a8   : > { %v3999_v59 = vmax.f32 %v4291_v50, %v3983_v29  ;;  %v4000_v61 = vmax.f32 %v4292_v36, %v3984_v51 }
 0x2aa   : > { %v4074_v8 = vrot.slane %v3999_v59, %v6420_v54  ;;  %v4081_v56 = vrot.slane %v4000_v61, %v6420_v54 }
 0x2ac   : > { %v4083_v18 = vcombine.low %v4074_v8, %v4081_v56 }
 0x2ae   : > { %v4097_v53 = vrot.slane %v4083_v18, %v6420_v54 }
 0x2b0   : > { %v4098_v10 = vcombine.low %v4090_v15, %v4097_v53 }
 0x2b2   : > { %4102 = vst [vmem:[%s6613_s5 + $0x8] sm:$0xff] %v4098_v10 }
 0x2b3   : > { %4627 = shalt.err (!%p4624_p4)
}
 0x2b4   : > { %s4628_s7 = scalar_lea.hbm %s6696_s8, 256  ;;  %s4632_s25 = scalar_lea.hbm %s6745_s4, 512 }
 0x2b5   : > { %p4629_p5 = scmp.ne.s32.totalorder %s6696_s8, %s4628_s7  ;;  %p4633_p0 = scmp.lt.u32.totalorder %s6696_s8, %s6745_s4 }
 0x2b6   : > { %p4634_p1 = scmp.lt.u32.totalorder %s4632_s25, %s4628_s7  ;;  %p4636_p6 = scmp.lt.u32.totalorder %s4628_s7, %s6696_s8 }
 0x2b7   : > { %p4630_p8 = pnand %p4629_p5, %p6928_p11 }
 0x2b8   : > { %p4635_p3 = por %p4634_p1, %p4633_p0 }
 0x2b9   : > { %p4631_p9 = pneg %p4630_p8 }
 0x2ba   : > { %p4637_p12 = por %p4636_p6, %p4635_p3 }
 0x2bc   : > { %p4638_p13 = pnand %p4637_p12, %p4631_p9 }
 0x2be   : > { %4641 = shalt.err (!%p4638_p13)
}
 0x2bf   : > { %4478 = dma.vmem_to_hbm [thread:$0]  (%p6928_p11), %s6698_s9, 256, %s6696_s8, %s4104_s10  }
 0x2c0 PF: > { %s4130_s14 = sand.u32 1, %s4668_s15   ;;  %p6929_p7 = scmp.ne.s32.totalorder %s6800_s28, 0 }
 0x2c1   : > { %p6930_p10 = scmp.ge.s32.totalorder %s4680_s18, 2  ;;  %s4131_s5 = scalar_lea.sflag [#allocation4], %s4130_s14 }
 0x2c3   : > { %p4485_p2 = pnand %p6930_p10, %p6929_p7 }
 0x2c5   : > { %4663 = dma.done.wait (!%p4485_p2), %s4131_s5, 256  }
 0x2c6   : > { %4665 = vsyncadd (!%p4485_p2), %s4131_s5, 4294967040  ;;  %p17_p4 = scmp.ge.s32.totalorder %s4746_s21, 4   ;;  %s6931_s15 = smov %s4672_s16 }
 0x2c7   : > { %s6932_s16 = smov %s4676_s17  ;;  %s6933_s17 = smov %s4758_s24 }
 0x2c8   : > { %s6934_s18 = smov %s4746_s21  ;;  %19 = sbr.rel (!%p17_p4) target bundleno = 5 (0x5), region = 81 }
 0x2cf   :  { %4136 = vsyncpa [#allocation3], 1 }
 0x2d0   :  { %4138 = vsyncpa [#allocation3 + $0x1], 1 }
 0x2d1   :  { %4139 = vsyncpa [#allocation4], 1 }
 0x2d2   :  { %4141 = vsyncpa [#allocation4 + $0x1], 1 }

</bundles_post_ra>
